<compile_context>
chip_gen: v7x
topology: tpu7x:2x2x1
jax: 0.10.0
libtpu: 0.0.40
codegen_flags: <defaults>
</compile_context>

<pallas_src>
import functools

import jax
import jax.numpy as jnp
from jax.experimental import pallas as pl
from jax.experimental.pallas import tpu as pltpu


# ------------------------------ in-kernel helpers ----------------------------

def _layernorm(x, g, b):
    # PyTorch nn.LayerNorm (biased variance), eps=1e-5, f32 math.
    mu = jnp.mean(x, axis=-1, keepdims=True)
    var = jnp.mean(jnp.square(x - mu), axis=-1, keepdims=True)
    return (x - mu) * jax.lax.rsqrt(var + 1e-5) * g + b


def _mm(x, w):
    # bf16 MXU operands, f32 accumulation.
    return jnp.dot(x.astype(jnp.bfloat16), w, preferred_element_type=jnp.float32)


# ------------------------------ fused ViT kernel -----------------------------

def _vit_kernel(patches_ref,
                pe_ln1_g, pe_ln1_b, pe_w, pe_b, pe_ln2_g, pe_ln2_b,
                cls_ref, pos_cls_ref, pos_patch_ref,
                attn_ln_g, attn_ln_b, wq, wk, wv, wo, wo_b,
                ff_ln_g, ff_ln_b, ff1_w, ff1_b, ff2_w, ff2_b,
                fin_ln_g, fin_ln_b,
                o_ref, x_scr,
                *, depth, heads, n_tokens, n_pad):
    """One grid step == one image. Entire ViT forward fused in a single call."""
    f32 = jnp.float32
    bf16 = jnp.bfloat16
    n = n_tokens - 1                                  # number of patch tokens

    # ---- patch embedding: LN -> Linear(+bias) -> LN (fused) ----
    h = _layernorm(patches_ref[0], pe_ln1_g[...], pe_ln1_b[...])
    h = _mm(h, pe_w[...]) + pe_b[...]
    h = _layernorm(h, pe_ln2_g[...], pe_ln2_b[...])   # (n, dim)

    # ---- token slab, sublane-padded to n_pad rows: patches in rows [0, n),
    #      cls token at row n (keeps every store 8-row aligned), zeros beyond.
    x_scr[...] = jnp.zeros_like(x_scr)
    x_scr[0:n, :] = h + pos_patch_ref[...]
    x_scr[n:n_tokens, :] = cls_ref[...] + pos_cls_ref[...]
    x = x_scr[...]                                    # (n_pad, dim) f32

    # keys >= n_tokens are padding -> masked out of every softmax
    col = jax.lax.broadcasted_iota(jnp.int32, (n_pad, n_pad), 1)
    key_mask = jnp.where(col < n_tokens, 0.0, -1e30).astype(f32)

    for l in range(depth):
        # --- pre-norm multi-head self-attention + output proj + residual ---
        hn = _layernorm(x, attn_ln_g[l], attn_ln_b[l]).astype(bf16)
        acc = wo_b[l]                                 # (1, dim), broadcasts
        for hd in range(heads):
            q = jnp.dot(hn, wq[l, hd], preferred_element_type=f32)  # scale baked in
            k = jnp.dot(hn, wk[l, hd], preferred_element_type=f32)
            v = jnp.dot(hn, wv[l, hd], preferred_element_type=f32)
            s = jax.lax.dot_general(q.astype(bf16), k.astype(bf16),
                                    (((1,), (1,)), ((), ())),
                                    preferred_element_type=f32)      # (n_pad, n_pad)
            s = s + key_mask
            e = jnp.exp(s - jnp.max(s, axis=-1, keepdims=True))
            p = e * pl.reciprocal(jnp.sum(e, axis=-1, keepdims=True), approx=True)
            oh = jnp.dot(p.astype(bf16), v.astype(bf16),
                         preferred_element_type=f32)                 # (n_pad, dh)
            # per-head slice of the output projection, summed over heads
            acc = acc + jnp.dot(oh.astype(bf16), wo[l, hd],
                                preferred_element_type=f32)          # (n_pad, dim)
        x = x + acc

        # --- pre-norm MLP: LN -> Linear -> GELU -> Linear + residual ---
        hm = _layernorm(x, ff_ln_g[l], ff_ln_b[l])
        hm = _mm(hm, ff1_w[l]) + ff1_b[l]
        # TODO(synk): PyTorch nn.GELU defaults to the exact erf form; tanh
        # approximation used here for guaranteed Mosaic lowering.
        hm = jax.nn.gelu(hm, approximate=True)
        hm = _mm(hm, ff2_w[l]) + ff2_b[l]
        x = x + hm

    # ---- final LN on the cls row (row n) + cls pooling; mlp_head = Identity ----
    cls_row = x[n:n_tokens, :]
    o_ref[0] = _layernorm(cls_row, fin_ln_g[...], fin_ln_b[...])


# ------------------------------ wrapper / params -----------------------------

def init_vit_params(key, *, image_size, patch_size, channels, dim, depth,
                    heads, dim_head, mlp_dim):
    patch_dim = channels * patch_size * patch_size
    num_patches = (image_size // patch_size) ** 2
    f32, bf16 = jnp.float32, jnp.bfloat16
    keys = jax.random.split(key, 9)

    def w_init(k, shape, fan_in, scale=1.0):
        w = jax.random.normal(k, shape, f32) * (fan_in ** -0.5) * scale
        return w.astype(bf16)                       # bf16 MXU operands in HBM/VMEM

    return {
        "pe_ln1_g": jnp.ones((1, patch_dim), f32),
        "pe_ln1_b": jnp.zeros((1, patch_dim), f32),
        "pe_w": w_init(keys[0], (patch_dim, dim), patch_dim),
        "pe_b": jnp.zeros((1, dim), f32),
        "pe_ln2_g": jnp.ones((1, dim), f32),
        "pe_ln2_b": jnp.zeros((1, dim), f32),
        "cls": jax.random.normal(keys[1], (1, dim), f32) * 0.02,
        "pos_emb": jax.random.normal(keys[2], (num_patches + 1, dim), f32) * 0.02,
        "attn_ln_g": jnp.ones((depth, 1, dim), f32),
        "attn_ln_b": jnp.zeros((depth, 1, dim), f32),
        # qkv projection has no bias (vit-pytorch); 1/sqrt(dh) folded into wq.
        "wq": w_init(keys[3], (depth, heads, dim, dim_head), dim,
                     scale=dim_head ** -0.5),
        "wk": w_init(keys[4], (depth, heads, dim, dim_head), dim),
        "wv": w_init(keys[5], (depth, heads, dim, dim_head), dim),
        "wo": w_init(keys[6], (depth, heads, dim_head, dim), heads * dim_head),
        "wo_b": jnp.zeros((depth, 1, dim), f32),
        "ff_ln_g": jnp.ones((depth, 1, dim), f32),
        "ff_ln_b": jnp.zeros((depth, 1, dim), f32),
        "ff1_w": w_init(keys[7], (depth, dim, mlp_dim), dim),
        "ff1_b": jnp.zeros((depth, 1, mlp_dim), f32),
        "ff2_w": w_init(keys[8], (depth, mlp_dim, dim), mlp_dim),
        "ff2_b": jnp.zeros((depth, 1, dim), f32),
        "fin_ln_g": jnp.ones((1, dim), f32),
        "fin_ln_b": jnp.zeros((1, dim), f32),
    }


def vit_forward(params, img, *, patch_size):
    """ViT (vit-pytorch style, cls pooling, mlp_head=Identity), inference mode.
    Single fused pallas_call; grid over batch only."""
    B, C, H, W = img.shape
    p = patch_size
    hh, ww = H // p, W // p
    n = hh * ww
    patch_dim = p * p * C
    dim = params["pe_w"].shape[1]
    depth, heads = params["wq"].shape[0], params["wq"].shape[1]
    n_tokens = n + 1
    n_pad = ((n_tokens + 7) // 8) * 8               # sublane-pad token count

    # b c (h p1) (w p2) -> b (h w) (p1 p2 c)   (cheap XLA glue)
    patches = img.reshape(B, C, hh, p, ww, p)
    patches = jnp.transpose(patches, (0, 2, 4, 3, 5, 1)).reshape(B, n, patch_dim)
    patches = patches.astype(jnp.float32)

    pos = params["pos_emb"][:n_tokens]
    pos_cls, pos_patch = pos[0:1], pos[1:n_tokens]

    const_args = [
        params["pe_ln1_g"], params["pe_ln1_b"], params["pe_w"], params["pe_b"],
        params["pe_ln2_g"], params["pe_ln2_b"],
        params["cls"], pos_cls, pos_patch,
        params["attn_ln_g"], params["attn_ln_b"],
        params["wq"], params["wk"], params["wv"], params["wo"], params["wo_b"],
        params["ff_ln_g"], params["ff_ln_b"],
        params["ff1_w"], params["ff1_b"], params["ff2_w"], params["ff2_b"],
        params["fin_ln_g"], params["fin_ln_b"],
    ]

    def _const_spec(a):                              # full array, same block every step
        nd = a.ndim
        return pl.BlockSpec(a.shape, lambda b, _nd=nd: (0,) * _nd)

    in_specs = [pl.BlockSpec((1, n, patch_dim), lambda b: (b, 0, 0))]
    in_specs += [_const_spec(a) for a in const_args]

    kern = functools.partial(_vit_kernel, depth=depth, heads=heads,
                             n_tokens=n_tokens, n_pad=n_pad)

    out = pl.pallas_call(
        kern,
        out_shape=jax.ShapeDtypeStruct((B, 1, dim), jnp.float32),
        grid=(B,),
        in_specs=in_specs,
        out_specs=pl.BlockSpec((1, 1, dim), lambda b: (b, 0, 0)),
        scratch_shapes=[pltpu.VMEM((n_pad, dim), jnp.float32)],
        compiler_params=pltpu.CompilerParams(
            dimension_semantics=("parallel",)),      # shards across TCs on v7x
    )(patches, *const_args)
    # TODO(synk): at realistic ViT sizes (dim~768) add M/K tiling + vmem_limit.
    return out.reshape(B, dim)


# ------------------------------- TrajectoryModel ------------------------------

class TrajectoryModel:
    def __init__(self, state_dim, act_dim, encoder="vit",
                 use_pretrained_cad_model=False, max_length=None, *,
                 vit_config, key):
        if encoder != "vit":
            raise ValueError(f"Model type {encoder} not supported")
        self.state_dim = state_dim
        self.act_dim = act_dim
        self.max_length = max_length
        self.vit_config = vit_config
        self._vit_fwd = jax.jit(functools.partial(
            vit_forward, patch_size=vit_config["patch_size"]))
        k_state, k_cad = jax.random.split(key)
        if state_dim > 0:
            self.state_embedding_model = init_vit_params(k_state, **vit_config)
            self.state_embedding_model_size = vit_config["dim"]
        else:
            self.state_embedding_model = None
            self.state_embedding_model_size = 0
        # 'gencad' pretrained weights unavailable: same ViT arch, synthetic init.
        self.cad_embedding_model = init_vit_params(k_cad, **vit_config)
        self.cad_embedding_model_size = vit_config["dim"]

    def process_state(self, state):
        emb = self._vit_fwd(self.state_embedding_model, state)
        return emb                      # squeeze(-1).squeeze(-1) is a no-op on (B, dim)

    def process_image(self, image):
        emb = self._vit_fwd(self.cad_embedding_model, image)
        return emb.reshape(-1, self.cad_embedding_model_size)

    def process_multiview_images(self, multiview_images, seq_length):
        batch_size, num_views = multiview_images.shape[0], multiview_images.shape[1]
        flat = multiview_images.reshape(-1, *multiview_images.shape[2:])
        emb = self.process_image(flat).reshape(batch_size, num_views, -1)
        emb = jnp.broadcast_to(emb[:, None],
                               (batch_size, seq_length, num_views, emb.shape[-1]))
        return emb.reshape(batch_size, seq_length, -1)

    def forward(self, states, actions, timesteps, cad_image, masks=None,
                attention_mask=None):
        return (None, None, None)

    def get_action(self, states, actions, rewards, **kwargs):
        return jnp.zeros_like(actions[-1])


# ------------------------------------ main ------------------------------------

if __name__ == "__main__":
    key = jax.random.PRNGKey(0)
    k_params, k_img, k_state, k_act = jax.random.split(key, 4)

    # small ViT config consistent with the module (image, patch, dim, heads, mlp)
    vit_config = dict(image_size=32, patch_size=8, channels=1, dim=64,
                      depth=2, heads=4, dim_head=16, mlp_dim=64)

    model = TrajectoryModel(state_dim=64, act_dim=7, encoder="vit",
                            use_pretrained_cad_model=False, max_length=8,
                            vit_config=vit_config, key=k_params)

    B, seq = 2, 4
    cad_image = jax.random.normal(k_img, (B, 1, 32, 32), jnp.float32)
    states = jax.random.normal(k_state, (B, 1, 32, 32), jnp.float32)
    actions = jax.random.normal(k_act, (seq, B, 7), jnp.float32)
    timesteps = jnp.arange(seq, dtype=jnp.int32)

    cad_emb = model.process_image(cad_image)
    state_emb = model.process_state(states)
    multiview = jnp.stack([cad_image, cad_image], axis=1)   # (B, 2 views, 1, 32, 32)
    mv_emb = model.process_multiview_images(multiview, seq_length=seq)
    fwd_out = model.forward(states, actions, timesteps, cad_image)
    act = model.get_action(states, actions, rewards=None)

    jax.block_until_ready((cad_emb, state_emb, mv_emb, act))

    assert fwd_out == (None, None, None)
    assert cad_emb.shape == (B, vit_config["dim"])
    assert state_emb.shape == (B, vit_config["dim"])
    assert mv_emb.shape == (B, seq, 2 * vit_config["dim"])
    assert act.shape == (B, 7)
    assert bool(jnp.all(jnp.isfinite(cad_emb))) and bool(jnp.all(jnp.isfinite(state_emb)))

    print("KERNEL_OK")
</pallas_src>

<mosaic_0001>
module attributes {stable_mosaic.version = 11 : i64} {
  func.func @_vit_kernel(%arg0: i32, %arg1: memref<1x16x64xf32, #tpu.memory_space<vmem>>, %arg2: memref<1x64xf32, #tpu.memory_space<vmem>>, %arg3: memref<1x64xf32, #tpu.memory_space<vmem>>, %arg4: memref<64x64xbf16, #tpu.memory_space<vmem>>, %arg5: memref<1x64xf32, #tpu.memory_space<vmem>>, %arg6: memref<1x64xf32, #tpu.memory_space<vmem>>, %arg7: memref<1x64xf32, #tpu.memory_space<vmem>>, %arg8: memref<1x64xf32, #tpu.memory_space<vmem>>, %arg9: memref<1x64xf32, #tpu.memory_space<vmem>>, %arg10: memref<16x64xf32, #tpu.memory_space<vmem>>, %arg11: memref<2x1x64xf32, #tpu.memory_space<vmem>>, %arg12: memref<2x1x64xf32, #tpu.memory_space<vmem>>, %arg13: memref<2x4x64x16xbf16, #tpu.memory_space<vmem>>, %arg14: memref<2x4x64x16xbf16, #tpu.memory_space<vmem>>, %arg15: memref<2x4x64x16xbf16, #tpu.memory_space<vmem>>, %arg16: memref<2x4x16x64xbf16, #tpu.memory_space<vmem>>, %arg17: memref<2x1x64xf32, #tpu.memory_space<vmem>>, %arg18: memref<2x1x64xf32, #tpu.memory_space<vmem>>, %arg19: memref<2x1x64xf32, #tpu.memory_space<vmem>>, %arg20: memref<2x64x64xbf16, #tpu.memory_space<vmem>>, %arg21: memref<2x1x64xf32, #tpu.memory_space<vmem>>, %arg22: memref<2x64x64xbf16, #tpu.memory_space<vmem>>, %arg23: memref<2x1x64xf32, #tpu.memory_space<vmem>>, %arg24: memref<1x64xf32, #tpu.memory_space<vmem>>, %arg25: memref<1x64xf32, #tpu.memory_space<vmem>>, %arg26: memref<1x1x64xf32, #tpu.memory_space<vmem>>, %arg27: memref<24x64xf32, #tpu.memory_space<vmem>>) attributes {dimension_semantics = [#tpu.dimension_semantics<parallel>], iteration_bounds = array<i64: 2>, scalar_prefetch = 0 : i64, scratch_operands = 1 : i64, tpu.core_type = #tpu.core_type<tc>, window_params = [{transform_indices = @transform_0, window_bounds = array<i64: 1, 16, 64>}, {pipeline_mode = #tpu.pipeline_mode<synchronous>, transform_indices = @transform_1, window_bounds = array<i64: 1, 64>}, {pipeline_mode = #tpu.pipeline_mode<synchronous>, transform_indices = @transform_2, window_bounds = array<i64: 1, 64>}, {pipeline_mode = #tpu.pipeline_mode<synchronous>, transform_indices = @transform_3, window_bounds = array<i64: 64, 64>}, {pipeline_mode = #tpu.pipeline_mode<synchronous>, transform_indices = @transform_4, window_bounds = array<i64: 1, 64>}, {pipeline_mode = #tpu.pipeline_mode<synchronous>, transform_indices = @transform_5, window_bounds = array<i64: 1, 64>}, {pipeline_mode = #tpu.pipeline_mode<synchronous>, transform_indices = @transform_6, window_bounds = array<i64: 1, 64>}, {pipeline_mode = #tpu.pipeline_mode<synchronous>, transform_indices = @transform_7, window_bounds = array<i64: 1, 64>}, {pipeline_mode = #tpu.pipeline_mode<synchronous>, transform_indices = @transform_8, window_bounds = array<i64: 1, 64>}, {pipeline_mode = #tpu.pipeline_mode<synchronous>, transform_indices = @transform_9, window_bounds = array<i64: 16, 64>}, {pipeline_mode = #tpu.pipeline_mode<synchronous>, transform_indices = @transform_10, window_bounds = array<i64: 2, 1, 64>}, {pipeline_mode = #tpu.pipeline_mode<synchronous>, transform_indices = @transform_11, window_bounds = array<i64: 2, 1, 64>}, {pipeline_mode = #tpu.pipeline_mode<synchronous>, transform_indices = @transform_12, window_bounds = array<i64: 2, 4, 64, 16>}, {pipeline_mode = #tpu.pipeline_mode<synchronous>, transform_indices = @transform_13, window_bounds = array<i64: 2, 4, 64, 16>}, {pipeline_mode = #tpu.pipeline_mode<synchronous>, transform_indices = @transform_14, window_bounds = array<i64: 2, 4, 64, 16>}, {pipeline_mode = #tpu.pipeline_mode<synchronous>, transform_indices = @transform_15, window_bounds = array<i64: 2, 4, 16, 64>}, {pipeline_mode = #tpu.pipeline_mode<synchronous>, transform_indices = @transform_16, window_bounds = array<i64: 2, 1, 64>}, {pipeline_mode = #tpu.pipeline_mode<synchronous>, transform_indices = @transform_17, window_bounds = array<i64: 2, 1, 64>}, {pipeline_mode = #tpu.pipeline_mode<synchronous>, transform_indices = @transform_18, window_bounds = array<i64: 2, 1, 64>}, {pipeline_mode = #tpu.pipeline_mode<synchronous>, transform_indices = @transform_19, window_bounds = array<i64: 2, 64, 64>}, {pipeline_mode = #tpu.pipeline_mode<synchronous>, transform_indices = @transform_20, window_bounds = array<i64: 2, 1, 64>}, {pipeline_mode = #tpu.pipeline_mode<synchronous>, transform_indices = @transform_21, window_bounds = array<i64: 2, 64, 64>}, {pipeline_mode = #tpu.pipeline_mode<synchronous>, transform_indices = @transform_22, window_bounds = array<i64: 2, 1, 64>}, {pipeline_mode = #tpu.pipeline_mode<synchronous>, transform_indices = @transform_23, window_bounds = array<i64: 1, 64>}, {pipeline_mode = #tpu.pipeline_mode<synchronous>, transform_indices = @transform_24, window_bounds = array<i64: 1, 64>}, {transform_indices = @transform_25, window_bounds = array<i64: 1, 1, 64>}]} {
    %c0 = arith.constant 0 : index
    %c0_0 = arith.constant 0 : index
    %c0_1 = arith.constant 0 : index
    %0 = vector.load %arg1[%c0, %c0_0, %c0_1] : memref<1x16x64xf32, #tpu.memory_space<vmem>>, vector<1x16x64xf32>
    %1 = vector.shape_cast %0 : vector<1x16x64xf32> to vector<16x64xf32>
    %c0_2 = arith.constant 0 : index
    %c0_3 = arith.constant 0 : index
    %2 = vector.load %arg2[%c0_2, %c0_3] : memref<1x64xf32, #tpu.memory_space<vmem>>, vector<1x64xf32>
    %c0_4 = arith.constant 0 : index
    %c0_5 = arith.constant 0 : index
    %3 = vector.load %arg3[%c0_4, %c0_5] : memref<1x64xf32, #tpu.memory_space<vmem>>, vector<1x64xf32>
    %cst = arith.constant dense<0.000000e+00> : vector<16xf32>
    %4 = vector.multi_reduction <add>, %1, %cst [1] : vector<16x64xf32> to vector<16xf32>
    %5 = vector.shape_cast %4 : vector<16xf32> to vector<16x1xf32>
    %cst_6 = arith.constant 6.400000e+01 : f32
    %6 = vector.broadcast %cst_6 : f32 to vector<16x1xf32>
    %7 = arith.divf %5, %6 : vector<16x1xf32>
    %8 = vector.broadcast %7 : vector<16x1xf32> to vector<16x64xf32>
    %9 = arith.subf %1, %8 : vector<16x64xf32>
    %10 = arith.mulf %9, %9 : vector<16x64xf32>
    %cst_7 = arith.constant dense<0.000000e+00> : vector<16xf32>
    %11 = vector.multi_reduction <add>, %10, %cst_7 [1] : vector<16x64xf32> to vector<16xf32>
    %12 = vector.shape_cast %11 : vector<16xf32> to vector<16x1xf32>
    %cst_8 = arith.constant 6.400000e+01 : f32
    %13 = vector.broadcast %cst_8 : f32 to vector<16x1xf32>
    %14 = arith.divf %12, %13 : vector<16x1xf32>
    %15 = vector.broadcast %7 : vector<16x1xf32> to vector<16x64xf32>
    %16 = arith.subf %1, %15 : vector<16x64xf32>
    %cst_9 = arith.constant 9.99999974E-6 : f32
    %17 = vector.broadcast %cst_9 : f32 to vector<16x1xf32>
    %18 = arith.addf %14, %17 : vector<16x1xf32>
    %19 = math.rsqrt %18 : vector<16x1xf32>
    %20 = vector.broadcast %19 : vector<16x1xf32> to vector<16x64xf32>
    %21 = arith.mulf %16, %20 : vector<16x64xf32>
    %22 = vector.broadcast %2 : vector<1x64xf32> to vector<16x64xf32>
    %23 = arith.mulf %21, %22 : vector<16x64xf32>
    %24 = vector.broadcast %3 : vector<1x64xf32> to vector<16x64xf32>
    %25 = arith.addf %23, %24 : vector<16x64xf32>
    %c0_10 = arith.constant 0 : index
    %c0_11 = arith.constant 0 : index
    %26 = vector.load %arg4[%c0_10, %c0_11] : memref<64x64xbf16, #tpu.memory_space<vmem>>, vector<64x64xbf16>
    %27 = arith.truncf %25 : vector<16x64xf32> to vector<16x64xbf16>
    %cst_12 = arith.constant dense<0.000000e+00> : vector<16x64xf32>
    %28 = tpu.matmul %27, %26, %cst_12 {dimension_numbers = #tpu.dot_dimension_numbers<[1], [0], [0], [1], [0, 0, 1, 1], [], []>} : vector<16x64xbf16>, vector<64x64xbf16>, vector<16x64xf32> -> vector<16x64xf32>
    %c0_13 = arith.constant 0 : index
    %c0_14 = arith.constant 0 : index
    %29 = vector.load %arg5[%c0_13, %c0_14] : memref<1x64xf32, #tpu.memory_space<vmem>>, vector<1x64xf32>
    %30 = vector.broadcast %29 : vector<1x64xf32> to vector<16x64xf32>
    %31 = arith.addf %28, %30 : vector<16x64xf32>
    %c0_15 = arith.constant 0 : index
    %c0_16 = arith.constant 0 : index
    %32 = vector.load %arg6[%c0_15, %c0_16] : memref<1x64xf32, #tpu.memory_space<vmem>>, vector<1x64xf32>
    %c0_17 = arith.constant 0 : index
    %c0_18 = arith.constant 0 : index
    %33 = vector.load %arg7[%c0_17, %c0_18] : memref<1x64xf32, #tpu.memory_space<vmem>>, vector<1x64xf32>
    %cst_19 = arith.constant dense<0.000000e+00> : vector<16xf32>
    %34 = vector.multi_reduction <add>, %31, %cst_19 [1] : vector<16x64xf32> to vector<16xf32>
    %35 = vector.shape_cast %34 : vector<16xf32> to vector<16x1xf32>
    %cst_20 = arith.constant 6.400000e+01 : f32
    %36 = vector.broadcast %cst_20 : f32 to vector<16x1xf32>
    %37 = arith.divf %35, %36 : vector<16x1xf32>
    %38 = vector.broadcast %37 : vector<16x1xf32> to vector<16x64xf32>
    %39 = arith.subf %31, %38 : vector<16x64xf32>
    %40 = arith.mulf %39, %39 : vector<16x64xf32>
    %cst_21 = arith.constant dense<0.000000e+00> : vector<16xf32>
    %41 = vector.multi_reduction <add>, %40, %cst_21 [1] : vector<16x64xf32> to vector<16xf32>
    %42 = vector.shape_cast %41 : vector<16xf32> to vector<16x1xf32>
    %cst_22 = arith.constant 6.400000e+01 : f32
    %43 = vector.broadcast %cst_22 : f32 to vector<16x1xf32>
    %44 = arith.divf %42, %43 : vector<16x1xf32>
    %45 = vector.broadcast %37 : vector<16x1xf32> to vector<16x64xf32>
    %46 = arith.subf %31, %45 : vector<16x64xf32>
    %cst_23 = arith.constant 9.99999974E-6 : f32
    %47 = vector.broadcast %cst_23 : f32 to vector<16x1xf32>
    %48 = arith.addf %44, %47 : vector<16x1xf32>
    %49 = math.rsqrt %48 : vector<16x1xf32>
    %50 = vector.broadcast %49 : vector<16x1xf32> to vector<16x64xf32>
    %51 = arith.mulf %46, %50 : vector<16x64xf32>
    %52 = vector.broadcast %32 : vector<1x64xf32> to vector<16x64xf32>
    %53 = arith.mulf %51, %52 : vector<16x64xf32>
    %54 = vector.broadcast %33 : vector<1x64xf32> to vector<16x64xf32>
    %55 = arith.addf %53, %54 : vector<16x64xf32>
    %cst_24 = arith.constant 0.000000e+00 : f32
    %56 = vector.broadcast %cst_24 : f32 to vector<24x64xf32>
    %c0_25 = arith.constant 0 : index
    %c0_26 = arith.constant 0 : index
    %57 = vector.load %arg27[%c0_25, %c0_26] : memref<24x64xf32, #tpu.memory_space<vmem>>, vector<24x64xf32>
    tpu.vector_store %arg27[%c0_25, %c0_26], %56 {strides = array<i32>} : memref<24x64xf32, #tpu.memory_space<vmem>>, vector<24x64xf32>,
    %c0_27 = arith.constant 0 : index
    %c0_28 = arith.constant 0 : index
    %58 = vector.load %arg10[%c0_27, %c0_28] : memref<16x64xf32, #tpu.memory_space<vmem>>, vector<16x64xf32>
    %59 = arith.addf %55, %58 : vector<16x64xf32>
    %c0_29 = arith.constant 0 : index
    %c0_30 = arith.constant 0 : index
    %60 = vector.load %arg27[%c0_29, %c0_30] : memref<24x64xf32, #tpu.memory_space<vmem>>, vector<16x64xf32>
    tpu.vector_store %arg27[%c0_29, %c0_30], %59 {strides = array<i32>} : memref<24x64xf32, #tpu.memory_space<vmem>>, vector<16x64xf32>,
    %c0_31 = arith.constant 0 : index
    %c0_32 = arith.constant 0 : index
    %61 = vector.load %arg8[%c0_31, %c0_32] : memref<1x64xf32, #tpu.memory_space<vmem>>, vector<1x64xf32>
    %c0_33 = arith.constant 0 : index
    %c0_34 = arith.constant 0 : index
    %62 = vector.load %arg9[%c0_33, %c0_34] : memref<1x64xf32, #tpu.memory_space<vmem>>, vector<1x64xf32>
    %63 = arith.addf %61, %62 : vector<1x64xf32>
    %c16 = arith.constant 16 : index
    %c0_35 = arith.constant 0 : index
    %64 = vector.load %arg27[%c16, %c0_35] : memref<24x64xf32, #tpu.memory_space<vmem>>, vector<1x64xf32>
    tpu.vector_store %arg27[%c16, %c0_35], %63 {strides = array<i32>} : memref<24x64xf32, #tpu.memory_space<vmem>>, vector<1x64xf32>,
    %c0_36 = arith.constant 0 : index
    %c0_37 = arith.constant 0 : index
    %65 = vector.load %arg27[%c0_36, %c0_37] : memref<24x64xf32, #tpu.memory_space<vmem>>, vector<24x64xf32>
    %66 = tpu.iota {dimensions = array<i32: 1>} : vector<24x24xi32>
    %c17_i32 = arith.constant 17 : i32
    %67 = vector.broadcast %c17_i32 : i32 to vector<24x24xi32>
    %68 = arith.cmpi slt, %66, %67 : vector<24x24xi32>
    %cst_38 = arith.constant 0.000000e+00 : f32
    %cst_39 = arith.constant -1.000000e+30 : f32
    %69 = vector.broadcast %cst_38 : f32 to vector<24x24xf32>
    %70 = vector.broadcast %cst_39 : f32 to vector<24x24xf32>
    %71 = arith.select %68, %69, %70 : vector<24x24xi1>, vector<24x24xf32>
    %c0_40 = arith.constant 0 : index
    %c0_41 = arith.constant 0 : index
    %c0_42 = arith.constant 0 : index
    %72 = vector.load %arg11[%c0_40, %c0_41, %c0_42] : memref<2x1x64xf32, #tpu.memory_space<vmem>>, vector<1x1x64xf32>
    %73 = vector.shape_cast %72 : vector<1x1x64xf32> to vector<1x64xf32>
    %c0_43 = arith.constant 0 : index
    %c0_44 = arith.constant 0 : index
    %c0_45 = arith.constant 0 : index
    %74 = vector.load %arg12[%c0_43, %c0_44, %c0_45] : memref<2x1x64xf32, #tpu.memory_space<vmem>>, vector<1x1x64xf32>
    %75 = vector.shape_cast %74 : vector<1x1x64xf32> to vector<1x64xf32>
    %cst_46 = arith.constant dense<0.000000e+00> : vector<24xf32>
    %76 = vector.multi_reduction <add>, %65, %cst_46 [1] : vector<24x64xf32> to vector<24xf32>
    %77 = vector.shape_cast %76 : vector<24xf32> to vector<24x1xf32>
    %cst_47 = arith.constant 6.400000e+01 : f32
    %78 = vector.broadcast %cst_47 : f32 to vector<24x1xf32>
    %79 = arith.divf %77, %78 : vector<24x1xf32>
    %80 = vector.broadcast %79 : vector<24x1xf32> to vector<24x64xf32>
    %81 = arith.subf %65, %80 : vector<24x64xf32>
    %82 = arith.mulf %81, %81 : vector<24x64xf32>
    %cst_48 = arith.constant dense<0.000000e+00> : vector<24xf32>
    %83 = vector.multi_reduction <add>, %82, %cst_48 [1] : vector<24x64xf32> to vector<24xf32>
    %84 = vector.shape_cast %83 : vector<24xf32> to vector<24x1xf32>
    %cst_49 = arith.constant 6.400000e+01 : f32
    %85 = vector.broadcast %cst_49 : f32 to vector<24x1xf32>
    %86 = arith.divf %84, %85 : vector<24x1xf32>
    %87 = vector.broadcast %79 : vector<24x1xf32> to vector<24x64xf32>
    %88 = arith.subf %65, %87 : vector<24x64xf32>
    %cst_50 = arith.constant 9.99999974E-6 : f32
    %89 = vector.broadcast %cst_50 : f32 to vector<24x1xf32>
    %90 = arith.addf %86, %89 : vector<24x1xf32>
    %91 = math.rsqrt %90 : vector<24x1xf32>
    %92 = vector.broadcast %91 : vector<24x1xf32> to vector<24x64xf32>
    %93 = arith.mulf %88, %92 : vector<24x64xf32>
    %94 = vector.broadcast %73 : vector<1x64xf32> to vector<24x64xf32>
    %95 = arith.mulf %93, %94 : vector<24x64xf32>
    %96 = vector.broadcast %75 : vector<1x64xf32> to vector<24x64xf32>
    %97 = arith.addf %95, %96 : vector<24x64xf32>
    %98 = arith.truncf %97 : vector<24x64xf32> to vector<24x64xbf16>
    %c0_51 = arith.constant 0 : index
    %c0_52 = arith.constant 0 : index
    %c0_53 = arith.constant 0 : index
    %99 = vector.load %arg17[%c0_51, %c0_52, %c0_53] : memref<2x1x64xf32, #tpu.memory_space<vmem>>, vector<1x1x64xf32>
    %100 = vector.shape_cast %99 : vector<1x1x64xf32> to vector<1x64xf32>
    %c0_54 = arith.constant 0 : index
    %c0_55 = arith.constant 0 : index
    %c0_56 = arith.constant 0 : index
    %c0_57 = arith.constant 0 : index
    %101 = vector.load %arg13[%c0_54, %c0_55, %c0_56, %c0_57] : memref<2x4x64x16xbf16, #tpu.memory_space<vmem>>, vector<1x1x64x16xbf16>
    %102 = vector.shape_cast %101 : vector<1x1x64x16xbf16> to vector<64x16xbf16>
    %cst_58 = arith.constant dense<0.000000e+00> : vector<24x16xf32>
    %103 = tpu.matmul %98, %102, %cst_58 {dimension_numbers = #tpu.dot_dimension_numbers<[1], [0], [0], [1], [0, 0, 1, 1], [], []>} : vector<24x64xbf16>, vector<64x16xbf16>, vector<24x16xf32> -> vector<24x16xf32>
    %c0_59 = arith.constant 0 : index
    %c0_60 = arith.constant 0 : index
    %c0_61 = arith.constant 0 : index
    %c0_62 = arith.constant 0 : index
    %104 = vector.load %arg14[%c0_59, %c0_60, %c0_61, %c0_62] : memref<2x4x64x16xbf16, #tpu.memory_space<vmem>>, vector<1x1x64x16xbf16>
    %105 = vector.shape_cast %104 : vector<1x1x64x16xbf16> to vector<64x16xbf16>
    %cst_63 = arith.constant dense<0.000000e+00> : vector<24x16xf32>
    %106 = tpu.matmul %98, %105, %cst_63 {dimension_numbers = #tpu.dot_dimension_numbers<[1], [0], [0], [1], [0, 0, 1, 1], [], []>} : vector<24x64xbf16>, vector<64x16xbf16>, vector<24x16xf32> -> vector<24x16xf32>
    %c0_64 = arith.constant 0 : index
    %c0_65 = arith.constant 0 : index
    %c0_66 = arith.constant 0 : index
    %c0_67 = arith.constant 0 : index
    %107 = vector.load %arg15[%c0_64, %c0_65, %c0_66, %c0_67] : memref<2x4x64x16xbf16, #tpu.memory_space<vmem>>, vector<1x1x64x16xbf16>
    %108 = vector.shape_cast %107 : vector<1x1x64x16xbf16> to vector<64x16xbf16>
    %cst_68 = arith.constant dense<0.000000e+00> : vector<24x16xf32>
    %109 = tpu.matmul %98, %108, %cst_68 {dimension_numbers = #tpu.dot_dimension_numbers<[1], [0], [0], [1], [0, 0, 1, 1], [], []>} : vector<24x64xbf16>, vector<64x16xbf16>, vector<24x16xf32> -> vector<24x16xf32>
    %110 = arith.truncf %103 : vector<24x16xf32> to vector<24x16xbf16>
    %111 = arith.truncf %106 : vector<24x16xf32> to vector<24x16xbf16>
    %cst_69 = arith.constant dense<0.000000e+00> : vector<24x24xf32>
    %112 = tpu.matmul %110, %111, %cst_69 {dimension_numbers = #tpu.dot_dimension_numbers<[1], [1], [0], [0], [0, 0, 1, 0], [], []>} : vector<24x16xbf16>, vector<24x16xbf16>, vector<24x24xf32> -> vector<24x24xf32>
    %113 = arith.addf %112, %71 : vector<24x24xf32>
    %cst_70 = arith.constant dense<0xFF800000> : vector<24xf32>
    %114 = vector.multi_reduction <maximumf>, %113, %cst_70 [1] : vector<24x24xf32> to vector<24xf32>
    %115 = vector.shape_cast %114 : vector<24xf32> to vector<24x1xf32>
    %116 = vector.broadcast %115 : vector<24x1xf32> to vector<24x24xf32>
    %117 = arith.subf %113, %116 : vector<24x24xf32>
    %118 = math.exp %117 : vector<24x24xf32>
    %cst_71 = arith.constant dense<0.000000e+00> : vector<24xf32>
    %119 = vector.multi_reduction <add>, %118, %cst_71 [1] : vector<24x24xf32> to vector<24xf32>
    %120 = vector.shape_cast %119 : vector<24xf32> to vector<24x1xf32>
    %121 = tpu.reciprocal %120 {approx = true} : vector<24x1xf32> -> vector<24x1xf32>
    %122 = vector.broadcast %121 : vector<24x1xf32> to vector<24x24xf32>
    %123 = arith.mulf %118, %122 : vector<24x24xf32>
    %124 = arith.truncf %123 : vector<24x24xf32> to vector<24x24xbf16>
    %125 = arith.truncf %109 : vector<24x16xf32> to vector<24x16xbf16>
    %cst_72 = arith.constant dense<0.000000e+00> : vector<24x16xf32>
    %126 = tpu.matmul %124, %125, %cst_72 {dimension_numbers = #tpu.dot_dimension_numbers<[1], [0], [0], [1], [0, 0, 1, 1], [], []>} : vector<24x24xbf16>, vector<24x16xbf16>, vector<24x16xf32> -> vector<24x16xf32>
    %127 = arith.truncf %126 : vector<24x16xf32> to vector<24x16xbf16>
    %c0_73 = arith.constant 0 : index
    %c0_74 = arith.constant 0 : index
    %c0_75 = arith.constant 0 : index
    %c0_76 = arith.constant 0 : index
    %128 = vector.load %arg16[%c0_73, %c0_74, %c0_75, %c0_76] : memref<2x4x16x64xbf16, #tpu.memory_space<vmem>>, vector<1x1x16x64xbf16>
    %129 = vector.shape_cast %128 : vector<1x1x16x64xbf16> to vector<16x64xbf16>
    %cst_77 = arith.constant dense<0.000000e+00> : vector<24x64xf32>
    %130 = tpu.matmul %127, %129, %cst_77 {dimension_numbers = #tpu.dot_dimension_numbers<[1], [0], [0], [1], [0, 0, 1, 1], [], []>} : vector<24x16xbf16>, vector<16x64xbf16>, vector<24x64xf32> -> vector<24x64xf32>
    %131 = vector.broadcast %100 : vector<1x64xf32> to vector<24x64xf32>
    %132 = arith.addf %131, %130 : vector<24x64xf32>
    %c0_78 = arith.constant 0 : index
    %c1 = arith.constant 1 : index
    %c0_79 = arith.constant 0 : index
    %c0_80 = arith.constant 0 : index
    %133 = vector.load %arg13[%c0_78, %c1, %c0_79, %c0_80] : memref<2x4x64x16xbf16, #tpu.memory_space<vmem>>, vector<1x1x64x16xbf16>
    %134 = vector.shape_cast %133 : vector<1x1x64x16xbf16> to vector<64x16xbf16>
    %cst_81 = arith.constant dense<0.000000e+00> : vector<24x16xf32>
    %135 = tpu.matmul %98, %134, %cst_81 {dimension_numbers = #tpu.dot_dimension_numbers<[1], [0], [0], [1], [0, 0, 1, 1], [], []>} : vector<24x64xbf16>, vector<64x16xbf16>, vector<24x16xf32> -> vector<24x16xf32>
    %c0_82 = arith.constant 0 : index
    %c1_83 = arith.constant 1 : index
    %c0_84 = arith.constant 0 : index
    %c0_85 = arith.constant 0 : index
    %136 = vector.load %arg14[%c0_82, %c1_83, %c0_84, %c0_85] : memref<2x4x64x16xbf16, #tpu.memory_space<vmem>>, vector<1x1x64x16xbf16>
    %137 = vector.shape_cast %136 : vector<1x1x64x16xbf16> to vector<64x16xbf16>
    %cst_86 = arith.constant dense<0.000000e+00> : vector<24x16xf32>
    %138 = tpu.matmul %98, %137, %cst_86 {dimension_numbers = #tpu.dot_dimension_numbers<[1], [0], [0], [1], [0, 0, 1, 1], [], []>} : vector<24x64xbf16>, vector<64x16xbf16>, vector<24x16xf32> -> vector<24x16xf32>
    %c0_87 = arith.constant 0 : index
    %c1_88 = arith.constant 1 : index
    %c0_89 = arith.constant 0 : index
    %c0_90 = arith.constant 0 : index
    %139 = vector.load %arg15[%c0_87, %c1_88, %c0_89, %c0_90] : memref<2x4x64x16xbf16, #tpu.memory_space<vmem>>, vector<1x1x64x16xbf16>
    %140 = vector.shape_cast %139 : vector<1x1x64x16xbf16> to vector<64x16xbf16>
    %cst_91 = arith.constant dense<0.000000e+00> : vector<24x16xf32>
    %141 = tpu.matmul %98, %140, %cst_91 {dimension_numbers = #tpu.dot_dimension_numbers<[1], [0], [0], [1], [0, 0, 1, 1], [], []>} : vector<24x64xbf16>, vector<64x16xbf16>, vector<24x16xf32> -> vector<24x16xf32>
    %142 = arith.truncf %135 : vector<24x16xf32> to vector<24x16xbf16>
    %143 = arith.truncf %138 : vector<24x16xf32> to vector<24x16xbf16>
    %cst_92 = arith.constant dense<0.000000e+00> : vector<24x24xf32>
    %144 = tpu.matmul %142, %143, %cst_92 {dimension_numbers = #tpu.dot_dimension_numbers<[1], [1], [0], [0], [0, 0, 1, 0], [], []>} : vector<24x16xbf16>, vector<24x16xbf16>, vector<24x24xf32> -> vector<24x24xf32>
    %145 = arith.addf %144, %71 : vector<24x24xf32>
    %cst_93 = arith.constant dense<0xFF800000> : vector<24xf32>
    %146 = vector.multi_reduction <maximumf>, %145, %cst_93 [1] : vector<24x24xf32> to vector<24xf32>
    %147 = vector.shape_cast %146 : vector<24xf32> to vector<24x1xf32>
    %148 = vector.broadcast %147 : vector<24x1xf32> to vector<24x24xf32>
    %149 = arith.subf %145, %148 : vector<24x24xf32>
    %150 = math.exp %149 : vector<24x24xf32>
    %cst_94 = arith.constant dense<0.000000e+00> : vector<24xf32>
    %151 = vector.multi_reduction <add>, %150, %cst_94 [1] : vector<24x24xf32> to vector<24xf32>
    %152 = vector.shape_cast %151 : vector<24xf32> to vector<24x1xf32>
    %153 = tpu.reciprocal %152 {approx = true} : vector<24x1xf32> -> vector<24x1xf32>
    %154 = vector.broadcast %153 : vector<24x1xf32> to vector<24x24xf32>
    %155 = arith.mulf %150, %154 : vector<24x24xf32>
    %156 = arith.truncf %155 : vector<24x24xf32> to vector<24x24xbf16>
    %157 = arith.truncf %141 : vector<24x16xf32> to vector<24x16xbf16>
    %cst_95 = arith.constant dense<0.000000e+00> : vector<24x16xf32>
    %158 = tpu.matmul %156, %157, %cst_95 {dimension_numbers = #tpu.dot_dimension_numbers<[1], [0], [0], [1], [0, 0, 1, 1], [], []>} : vector<24x24xbf16>, vector<24x16xbf16>, vector<24x16xf32> -> vector<24x16xf32>
    %159 = arith.truncf %158 : vector<24x16xf32> to vector<24x16xbf16>
    %c0_96 = arith.constant 0 : index
    %c1_97 = arith.constant 1 : index
    %c0_98 = arith.constant 0 : index
    %c0_99 = arith.constant 0 : index
    %160 = vector.load %arg16[%c0_96, %c1_97, %c0_98, %c0_99] : memref<2x4x16x64xbf16, #tpu.memory_space<vmem>>, vector<1x1x16x64xbf16>
    %161 = vector.shape_cast %160 : vector<1x1x16x64xbf16> to vector<16x64xbf16>
    %cst_100 = arith.constant dense<0.000000e+00> : vector<24x64xf32>
    %162 = tpu.matmul %159, %161, %cst_100 {dimension_numbers = #tpu.dot_dimension_numbers<[1], [0], [0], [1], [0, 0, 1, 1], [], []>} : vector<24x16xbf16>, vector<16x64xbf16>, vector<24x64xf32> -> vector<24x64xf32>
    %163 = arith.addf %132, %162 : vector<24x64xf32>
    %c0_101 = arith.constant 0 : index
    %c2 = arith.constant 2 : index
    %c0_102 = arith.constant 0 : index
    %c0_103 = arith.constant 0 : index
    %164 = vector.load %arg13[%c0_101, %c2, %c0_102, %c0_103] : memref<2x4x64x16xbf16, #tpu.memory_space<vmem>>, vector<1x1x64x16xbf16>
    %165 = vector.shape_cast %164 : vector<1x1x64x16xbf16> to vector<64x16xbf16>
    %cst_104 = arith.constant dense<0.000000e+00> : vector<24x16xf32>
    %166 = tpu.matmul %98, %165, %cst_104 {dimension_numbers = #tpu.dot_dimension_numbers<[1], [0], [0], [1], [0, 0, 1, 1], [], []>} : vector<24x64xbf16>, vector<64x16xbf16>, vector<24x16xf32> -> vector<24x16xf32>
    %c0_105 = arith.constant 0 : index
    %c2_106 = arith.constant 2 : index
    %c0_107 = arith.constant 0 : index
    %c0_108 = arith.constant 0 : index
    %167 = vector.load %arg14[%c0_105, %c2_106, %c0_107, %c0_108] : memref<2x4x64x16xbf16, #tpu.memory_space<vmem>>, vector<1x1x64x16xbf16>
    %168 = vector.shape_cast %167 : vector<1x1x64x16xbf16> to vector<64x16xbf16>
    %cst_109 = arith.constant dense<0.000000e+00> : vector<24x16xf32>
    %169 = tpu.matmul %98, %168, %cst_109 {dimension_numbers = #tpu.dot_dimension_numbers<[1], [0], [0], [1], [0, 0, 1, 1], [], []>} : vector<24x64xbf16>, vector<64x16xbf16>, vector<24x16xf32> -> vector<24x16xf32>
    %c0_110 = arith.constant 0 : index
    %c2_111 = arith.constant 2 : index
    %c0_112 = arith.constant 0 : index
    %c0_113 = arith.constant 0 : index
    %170 = vector.load %arg15[%c0_110, %c2_111, %c0_112, %c0_113] : memref<2x4x64x16xbf16, #tpu.memory_space<vmem>>, vector<1x1x64x16xbf16>
    %171 = vector.shape_cast %170 : vector<1x1x64x16xbf16> to vector<64x16xbf16>
    %cst_114 = arith.constant dense<0.000000e+00> : vector<24x16xf32>
    %172 = tpu.matmul %98, %171, %cst_114 {dimension_numbers = #tpu.dot_dimension_numbers<[1], [0], [0], [1], [0, 0, 1, 1], [], []>} : vector<24x64xbf16>, vector<64x16xbf16>, vector<24x16xf32> -> vector<24x16xf32>
    %173 = arith.truncf %166 : vector<24x16xf32> to vector<24x16xbf16>
    %174 = arith.truncf %169 : vector<24x16xf32> to vector<24x16xbf16>
    %cst_115 = arith.constant dense<0.000000e+00> : vector<24x24xf32>
    %175 = tpu.matmul %173, %174, %cst_115 {dimension_numbers = #tpu.dot_dimension_numbers<[1], [1], [0], [0], [0, 0, 1, 0], [], []>} : vector<24x16xbf16>, vector<24x16xbf16>, vector<24x24xf32> -> vector<24x24xf32>
    %176 = arith.addf %175, %71 : vector<24x24xf32>
    %cst_116 = arith.constant dense<0xFF800000> : vector<24xf32>
    %177 = vector.multi_reduction <maximumf>, %176, %cst_116 [1] : vector<24x24xf32> to vector<24xf32>
    %178 = vector.shape_cast %177 : vector<24xf32> to vector<24x1xf32>
    %179 = vector.broadcast %178 : vector<24x1xf32> to vector<24x24xf32>
    %180 = arith.subf %176, %179 : vector<24x24xf32>
    %181 = math.exp %180 : vector<24x24xf32>
    %cst_117 = arith.constant dense<0.000000e+00> : vector<24xf32>
    %182 = vector.multi_reduction <add>, %181, %cst_117 [1] : vector<24x24xf32> to vector<24xf32>
    %183 = vector.shape_cast %182 : vector<24xf32> to vector<24x1xf32>
    %184 = tpu.reciprocal %183 {approx = true} : vector<24x1xf32> -> vector<24x1xf32>
    %185 = vector.broadcast %184 : vector<24x1xf32> to vector<24x24xf32>
    %186 = arith.mulf %181, %185 : vector<24x24xf32>
    %187 = arith.truncf %186 : vector<24x24xf32> to vector<24x24xbf16>
    %188 = arith.truncf %172 : vector<24x16xf32> to vector<24x16xbf16>
    %cst_118 = arith.constant dense<0.000000e+00> : vector<24x16xf32>
    %189 = tpu.matmul %187, %188, %cst_118 {dimension_numbers = #tpu.dot_dimension_numbers<[1], [0], [0], [1], [0, 0, 1, 1], [], []>} : vector<24x24xbf16>, vector<24x16xbf16>, vector<24x16xf32> -> vector<24x16xf32>
    %190 = arith.truncf %189 : vector<24x16xf32> to vector<24x16xbf16>
    %c0_119 = arith.constant 0 : index
    %c2_120 = arith.constant 2 : index
    %c0_121 = arith.constant 0 : index
    %c0_122 = arith.constant 0 : index
    %191 = vector.load %arg16[%c0_119, %c2_120, %c0_121, %c0_122] : memref<2x4x16x64xbf16, #tpu.memory_space<vmem>>, vector<1x1x16x64xbf16>
    %192 = vector.shape_cast %191 : vector<1x1x16x64xbf16> to vector<16x64xbf16>
    %cst_123 = arith.constant dense<0.000000e+00> : vector<24x64xf32>
    %193 = tpu.matmul %190, %192, %cst_123 {dimension_numbers = #tpu.dot_dimension_numbers<[1], [0], [0], [1], [0, 0, 1, 1], [], []>} : vector<24x16xbf16>, vector<16x64xbf16>, vector<24x64xf32> -> vector<24x64xf32>
    %194 = arith.addf %163, %193 : vector<24x64xf32>
    %c0_124 = arith.constant 0 : index
    %c3 = arith.constant 3 : index
    %c0_125 = arith.constant 0 : index
    %c0_126 = arith.constant 0 : index
    %195 = vector.load %arg13[%c0_124, %c3, %c0_125, %c0_126] : memref<2x4x64x16xbf16, #tpu.memory_space<vmem>>, vector<1x1x64x16xbf16>
    %196 = vector.shape_cast %195 : vector<1x1x64x16xbf16> to vector<64x16xbf16>
    %cst_127 = arith.constant dense<0.000000e+00> : vector<24x16xf32>
    %197 = tpu.matmul %98, %196, %cst_127 {dimension_numbers = #tpu.dot_dimension_numbers<[1], [0], [0], [1], [0, 0, 1, 1], [], []>} : vector<24x64xbf16>, vector<64x16xbf16>, vector<24x16xf32> -> vector<24x16xf32>
    %c0_128 = arith.constant 0 : index
    %c3_129 = arith.constant 3 : index
    %c0_130 = arith.constant 0 : index
    %c0_131 = arith.constant 0 : index
    %198 = vector.load %arg14[%c0_128, %c3_129, %c0_130, %c0_131] : memref<2x4x64x16xbf16, #tpu.memory_space<vmem>>, vector<1x1x64x16xbf16>
    %199 = vector.shape_cast %198 : vector<1x1x64x16xbf16> to vector<64x16xbf16>
    %cst_132 = arith.constant dense<0.000000e+00> : vector<24x16xf32>
    %200 = tpu.matmul %98, %199, %cst_132 {dimension_numbers = #tpu.dot_dimension_numbers<[1], [0], [0], [1], [0, 0, 1, 1], [], []>} : vector<24x64xbf16>, vector<64x16xbf16>, vector<24x16xf32> -> vector<24x16xf32>
    %c0_133 = arith.constant 0 : index
    %c3_134 = arith.constant 3 : index
    %c0_135 = arith.constant 0 : index
    %c0_136 = arith.constant 0 : index
    %201 = vector.load %arg15[%c0_133, %c3_134, %c0_135, %c0_136] : memref<2x4x64x16xbf16, #tpu.memory_space<vmem>>, vector<1x1x64x16xbf16>
    %202 = vector.shape_cast %201 : vector<1x1x64x16xbf16> to vector<64x16xbf16>
    %cst_137 = arith.constant dense<0.000000e+00> : vector<24x16xf32>
    %203 = tpu.matmul %98, %202, %cst_137 {dimension_numbers = #tpu.dot_dimension_numbers<[1], [0], [0], [1], [0, 0, 1, 1], [], []>} : vector<24x64xbf16>, vector<64x16xbf16>, vector<24x16xf32> -> vector<24x16xf32>
    %204 = arith.truncf %197 : vector<24x16xf32> to vector<24x16xbf16>
    %205 = arith.truncf %200 : vector<24x16xf32> to vector<24x16xbf16>
    %cst_138 = arith.constant dense<0.000000e+00> : vector<24x24xf32>
    %206 = tpu.matmul %204, %205, %cst_138 {dimension_numbers = #tpu.dot_dimension_numbers<[1], [1], [0], [0], [0, 0, 1, 0], [], []>} : vector<24x16xbf16>, vector<24x16xbf16>, vector<24x24xf32> -> vector<24x24xf32>
    %207 = arith.addf %206, %71 : vector<24x24xf32>
    %cst_139 = arith.constant dense<0xFF800000> : vector<24xf32>
    %208 = vector.multi_reduction <maximumf>, %207, %cst_139 [1] : vector<24x24xf32> to vector<24xf32>
    %209 = vector.shape_cast %208 : vector<24xf32> to vector<24x1xf32>
    %210 = vector.broadcast %209 : vector<24x1xf32> to vector<24x24xf32>
    %211 = arith.subf %207, %210 : vector<24x24xf32>
    %212 = math.exp %211 : vector<24x24xf32>
    %cst_140 = arith.constant dense<0.000000e+00> : vector<24xf32>
    %213 = vector.multi_reduction <add>, %212, %cst_140 [1] : vector<24x24xf32> to vector<24xf32>
    %214 = vector.shape_cast %213 : vector<24xf32> to vector<24x1xf32>
    %215 = tpu.reciprocal %214 {approx = true} : vector<24x1xf32> -> vector<24x1xf32>
    %216 = vector.broadcast %215 : vector<24x1xf32> to vector<24x24xf32>
    %217 = arith.mulf %212, %216 : vector<24x24xf32>
    %218 = arith.truncf %217 : vector<24x24xf32> to vector<24x24xbf16>
    %219 = arith.truncf %203 : vector<24x16xf32> to vector<24x16xbf16>
    %cst_141 = arith.constant dense<0.000000e+00> : vector<24x16xf32>
    %220 = tpu.matmul %218, %219, %cst_141 {dimension_numbers = #tpu.dot_dimension_numbers<[1], [0], [0], [1], [0, 0, 1, 1], [], []>} : vector<24x24xbf16>, vector<24x16xbf16>, vector<24x16xf32> -> vector<24x16xf32>
    %221 = arith.truncf %220 : vector<24x16xf32> to vector<24x16xbf16>
    %c0_142 = arith.constant 0 : index
    %c3_143 = arith.constant 3 : index
    %c0_144 = arith.constant 0 : index
    %c0_145 = arith.constant 0 : index
    %222 = vector.load %arg16[%c0_142, %c3_143, %c0_144, %c0_145] : memref<2x4x16x64xbf16, #tpu.memory_space<vmem>>, vector<1x1x16x64xbf16>
    %223 = vector.shape_cast %222 : vector<1x1x16x64xbf16> to vector<16x64xbf16>
    %cst_146 = arith.constant dense<0.000000e+00> : vector<24x64xf32>
    %224 = tpu.matmul %221, %223, %cst_146 {dimension_numbers = #tpu.dot_dimension_numbers<[1], [0], [0], [1], [0, 0, 1, 1], [], []>} : vector<24x16xbf16>, vector<16x64xbf16>, vector<24x64xf32> -> vector<24x64xf32>
    %225 = arith.addf %194, %224 : vector<24x64xf32>
    %226 = arith.addf %65, %225 : vector<24x64xf32>
    %c0_147 = arith.constant 0 : index
    %c0_148 = arith.constant 0 : index
    %c0_149 = arith.constant 0 : index
    %227 = vector.load %arg18[%c0_147, %c0_148, %c0_149] : memref<2x1x64xf32, #tpu.memory_space<vmem>>, vector<1x1x64xf32>
    %228 = vector.shape_cast %227 : vector<1x1x64xf32> to vector<1x64xf32>
    %c0_150 = arith.constant 0 : index
    %c0_151 = arith.constant 0 : index
    %c0_152 = arith.constant 0 : index
    %229 = vector.load %arg19[%c0_150, %c0_151, %c0_152] : memref<2x1x64xf32, #tpu.memory_space<vmem>>, vector<1x1x64xf32>
    %230 = vector.shape_cast %229 : vector<1x1x64xf32> to vector<1x64xf32>
    %cst_153 = arith.constant dense<0.000000e+00> : vector<24xf32>
    %231 = vector.multi_reduction <add>, %226, %cst_153 [1] : vector<24x64xf32> to vector<24xf32>
    %232 = vector.shape_cast %231 : vector<24xf32> to vector<24x1xf32>
    %cst_154 = arith.constant 6.400000e+01 : f32
    %233 = vector.broadcast %cst_154 : f32 to vector<24x1xf32>
    %234 = arith.divf %232, %233 : vector<24x1xf32>
    %235 = vector.broadcast %234 : vector<24x1xf32> to vector<24x64xf32>
    %236 = arith.subf %226, %235 : vector<24x64xf32>
    %237 = arith.mulf %236, %236 : vector<24x64xf32>
    %cst_155 = arith.constant dense<0.000000e+00> : vector<24xf32>
    %238 = vector.multi_reduction <add>, %237, %cst_155 [1] : vector<24x64xf32> to vector<24xf32>
    %239 = vector.shape_cast %238 : vector<24xf32> to vector<24x1xf32>
    %cst_156 = arith.constant 6.400000e+01 : f32
    %240 = vector.broadcast %cst_156 : f32 to vector<24x1xf32>
    %241 = arith.divf %239, %240 : vector<24x1xf32>
    %242 = vector.broadcast %234 : vector<24x1xf32> to vector<24x64xf32>
    %243 = arith.subf %226, %242 : vector<24x64xf32>
    %cst_157 = arith.constant 9.99999974E-6 : f32
    %244 = vector.broadcast %cst_157 : f32 to vector<24x1xf32>
    %245 = arith.addf %241, %244 : vector<24x1xf32>
    %246 = math.rsqrt %245 : vector<24x1xf32>
    %247 = vector.broadcast %246 : vector<24x1xf32> to vector<24x64xf32>
    %248 = arith.mulf %243, %247 : vector<24x64xf32>
    %249 = vector.broadcast %228 : vector<1x64xf32> to vector<24x64xf32>
    %250 = arith.mulf %248, %249 : vector<24x64xf32>
    %251 = vector.broadcast %230 : vector<1x64xf32> to vector<24x64xf32>
    %252 = arith.addf %250, %251 : vector<24x64xf32>
    %c0_158 = arith.constant 0 : index
    %c0_159 = arith.constant 0 : index
    %c0_160 = arith.constant 0 : index
    %253 = vector.load %arg20[%c0_158, %c0_159, %c0_160] : memref<2x64x64xbf16, #tpu.memory_space<vmem>>, vector<1x64x64xbf16>
    %254 = vector.shape_cast %253 : vector<1x64x64xbf16> to vector<64x64xbf16>
    %255 = arith.truncf %252 : vector<24x64xf32> to vector<24x64xbf16>
    %cst_161 = arith.constant dense<0.000000e+00> : vector<24x64xf32>
    %256 = tpu.matmul %255, %254, %cst_161 {dimension_numbers = #tpu.dot_dimension_numbers<[1], [0], [0], [1], [0, 0, 1, 1], [], []>} : vector<24x64xbf16>, vector<64x64xbf16>, vector<24x64xf32> -> vector<24x64xf32>
    %c0_162 = arith.constant 0 : index
    %c0_163 = arith.constant 0 : index
    %c0_164 = arith.constant 0 : index
    %257 = vector.load %arg21[%c0_162, %c0_163, %c0_164] : memref<2x1x64xf32, #tpu.memory_space<vmem>>, vector<1x1x64xf32>
    %258 = vector.shape_cast %257 : vector<1x1x64xf32> to vector<1x64xf32>
    %259 = vector.broadcast %258 : vector<1x64xf32> to vector<24x64xf32>
    %260 = arith.addf %256, %259 : vector<24x64xf32>
    %261 = arith.mulf %260, %260 : vector<24x64xf32>
    %262 = arith.mulf %260, %261 : vector<24x64xf32>
    %cst_165 = arith.constant 4.471500e-02 : f32
    %263 = vector.broadcast %cst_165 : f32 to vector<24x64xf32>
    %264 = arith.mulf %263, %262 : vector<24x64xf32>
    %265 = arith.addf %260, %264 : vector<24x64xf32>
    %cst_166 = arith.constant 0.797884583 : f32
    %266 = vector.broadcast %cst_166 : f32 to vector<24x64xf32>
    %267 = arith.mulf %266, %265 : vector<24x64xf32>
    %268 = math.tanh %267 : vector<24x64xf32>
    %cst_167 = arith.constant 1.000000e+00 : f32
    %269 = vector.broadcast %cst_167 : f32 to vector<24x64xf32>
    %270 = arith.addf %269, %268 : vector<24x64xf32>
    %cst_168 = arith.constant 5.000000e-01 : f32
    %271 = vector.broadcast %cst_168 : f32 to vector<24x64xf32>
    %272 = arith.mulf %271, %270 : vector<24x64xf32>
    %273 = arith.mulf %260, %272 : vector<24x64xf32>
    %c0_169 = arith.constant 0 : index
    %c0_170 = arith.constant 0 : index
    %c0_171 = arith.constant 0 : index
    %274 = vector.load %arg22[%c0_169, %c0_170, %c0_171] : memref<2x64x64xbf16, #tpu.memory_space<vmem>>, vector<1x64x64xbf16>
    %275 = vector.shape_cast %274 : vector<1x64x64xbf16> to vector<64x64xbf16>
    %276 = arith.truncf %273 : vector<24x64xf32> to vector<24x64xbf16>
    %cst_172 = arith.constant dense<0.000000e+00> : vector<24x64xf32>
    %277 = tpu.matmul %276, %275, %cst_172 {dimension_numbers = #tpu.dot_dimension_numbers<[1], [0], [0], [1], [0, 0, 1, 1], [], []>} : vector<24x64xbf16>, vector<64x64xbf16>, vector<24x64xf32> -> vector<24x64xf32>
    %c0_173 = arith.constant 0 : index
    %c0_174 = arith.constant 0 : index
    %c0_175 = arith.constant 0 : index
    %278 = vector.load %arg23[%c0_173, %c0_174, %c0_175] : memref<2x1x64xf32, #tpu.memory_space<vmem>>, vector<1x1x64xf32>
    %279 = vector.shape_cast %278 : vector<1x1x64xf32> to vector<1x64xf32>
    %280 = vector.broadcast %279 : vector<1x64xf32> to vector<24x64xf32>
    %281 = arith.addf %277, %280 : vector<24x64xf32>
    %282 = arith.addf %226, %281 : vector<24x64xf32>
    %c1_176 = arith.constant 1 : index
    %c0_177 = arith.constant 0 : index
    %c0_178 = arith.constant 0 : index
    %283 = vector.load %arg11[%c1_176, %c0_177, %c0_178] : memref<2x1x64xf32, #tpu.memory_space<vmem>>, vector<1x1x64xf32>
    %284 = vector.shape_cast %283 : vector<1x1x64xf32> to vector<1x64xf32>
    %c1_179 = arith.constant 1 : index
    %c0_180 = arith.constant 0 : index
    %c0_181 = arith.constant 0 : index
    %285 = vector.load %arg12[%c1_179, %c0_180, %c0_181] : memref<2x1x64xf32, #tpu.memory_space<vmem>>, vector<1x1x64xf32>
    %286 = vector.shape_cast %285 : vector<1x1x64xf32> to vector<1x64xf32>
    %cst_182 = arith.constant dense<0.000000e+00> : vector<24xf32>
    %287 = vector.multi_reduction <add>, %282, %cst_182 [1] : vector<24x64xf32> to vector<24xf32>
    %288 = vector.shape_cast %287 : vector<24xf32> to vector<24x1xf32>
    %cst_183 = arith.constant 6.400000e+01 : f32
    %289 = vector.broadcast %cst_183 : f32 to vector<24x1xf32>
    %290 = arith.divf %288, %289 : vector<24x1xf32>
    %291 = vector.broadcast %290 : vector<24x1xf32> to vector<24x64xf32>
    %292 = arith.subf %282, %291 : vector<24x64xf32>
    %293 = arith.mulf %292, %292 : vector<24x64xf32>
    %cst_184 = arith.constant dense<0.000000e+00> : vector<24xf32>
    %294 = vector.multi_reduction <add>, %293, %cst_184 [1] : vector<24x64xf32> to vector<24xf32>
    %295 = vector.shape_cast %294 : vector<24xf32> to vector<24x1xf32>
    %cst_185 = arith.constant 6.400000e+01 : f32
    %296 = vector.broadcast %cst_185 : f32 to vector<24x1xf32>
    %297 = arith.divf %295, %296 : vector<24x1xf32>
    %298 = vector.broadcast %290 : vector<24x1xf32> to vector<24x64xf32>
    %299 = arith.subf %282, %298 : vector<24x64xf32>
    %cst_186 = arith.constant 9.99999974E-6 : f32
    %300 = vector.broadcast %cst_186 : f32 to vector<24x1xf32>
    %301 = arith.addf %297, %300 : vector<24x1xf32>
    %302 = math.rsqrt %301 : vector<24x1xf32>
    %303 = vector.broadcast %302 : vector<24x1xf32> to vector<24x64xf32>
    %304 = arith.mulf %299, %303 : vector<24x64xf32>
    %305 = vector.broadcast %284 : vector<1x64xf32> to vector<24x64xf32>
    %306 = arith.mulf %304, %305 : vector<24x64xf32>
    %307 = vector.broadcast %286 : vector<1x64xf32> to vector<24x64xf32>
    %308 = arith.addf %306, %307 : vector<24x64xf32>
    %309 = arith.truncf %308 : vector<24x64xf32> to vector<24x64xbf16>
    %c1_187 = arith.constant 1 : index
    %c0_188 = arith.constant 0 : index
    %c0_189 = arith.constant 0 : index
    %310 = vector.load %arg17[%c1_187, %c0_188, %c0_189] : memref<2x1x64xf32, #tpu.memory_space<vmem>>, vector<1x1x64xf32>
    %311 = vector.shape_cast %310 : vector<1x1x64xf32> to vector<1x64xf32>
    %c1_190 = arith.constant 1 : index
    %c0_191 = arith.constant 0 : index
    %c0_192 = arith.constant 0 : index
    %c0_193 = arith.constant 0 : index
    %312 = vector.load %arg13[%c1_190, %c0_191, %c0_192, %c0_193] : memref<2x4x64x16xbf16, #tpu.memory_space<vmem>>, vector<1x1x64x16xbf16>
    %313 = vector.shape_cast %312 : vector<1x1x64x16xbf16> to vector<64x16xbf16>
    %cst_194 = arith.constant dense<0.000000e+00> : vector<24x16xf32>
    %314 = tpu.matmul %309, %313, %cst_194 {dimension_numbers = #tpu.dot_dimension_numbers<[1], [0], [0], [1], [0, 0, 1, 1], [], []>} : vector<24x64xbf16>, vector<64x16xbf16>, vector<24x16xf32> -> vector<24x16xf32>
    %c1_195 = arith.constant 1 : index
    %c0_196 = arith.constant 0 : index
    %c0_197 = arith.constant 0 : index
    %c0_198 = arith.constant 0 : index
    %315 = vector.load %arg14[%c1_195, %c0_196, %c0_197, %c0_198] : memref<2x4x64x16xbf16, #tpu.memory_space<vmem>>, vector<1x1x64x16xbf16>
    %316 = vector.shape_cast %315 : vector<1x1x64x16xbf16> to vector<64x16xbf16>
    %cst_199 = arith.constant dense<0.000000e+00> : vector<24x16xf32>
    %317 = tpu.matmul %309, %316, %cst_199 {dimension_numbers = #tpu.dot_dimension_numbers<[1], [0], [0], [1], [0, 0, 1, 1], [], []>} : vector<24x64xbf16>, vector<64x16xbf16>, vector<24x16xf32> -> vector<24x16xf32>
    %c1_200 = arith.constant 1 : index
    %c0_201 = arith.constant 0 : index
    %c0_202 = arith.constant 0 : index
    %c0_203 = arith.constant 0 : index
    %318 = vector.load %arg15[%c1_200, %c0_201, %c0_202, %c0_203] : memref<2x4x64x16xbf16, #tpu.memory_space<vmem>>, vector<1x1x64x16xbf16>
    %319 = vector.shape_cast %318 : vector<1x1x64x16xbf16> to vector<64x16xbf16>
    %cst_204 = arith.constant dense<0.000000e+00> : vector<24x16xf32>
    %320 = tpu.matmul %309, %319, %cst_204 {dimension_numbers = #tpu.dot_dimension_numbers<[1], [0], [0], [1], [0, 0, 1, 1], [], []>} : vector<24x64xbf16>, vector<64x16xbf16>, vector<24x16xf32> -> vector<24x16xf32>
    %321 = arith.truncf %314 : vector<24x16xf32> to vector<24x16xbf16>
    %322 = arith.truncf %317 : vector<24x16xf32> to vector<24x16xbf16>
    %cst_205 = arith.constant dense<0.000000e+00> : vector<24x24xf32>
    %323 = tpu.matmul %321, %322, %cst_205 {dimension_numbers = #tpu.dot_dimension_numbers<[1], [1], [0], [0], [0, 0, 1, 0], [], []>} : vector<24x16xbf16>, vector<24x16xbf16>, vector<24x24xf32> -> vector<24x24xf32>
    %324 = arith.addf %323, %71 : vector<24x24xf32>
    %cst_206 = arith.constant dense<0xFF800000> : vector<24xf32>
    %325 = vector.multi_reduction <maximumf>, %324, %cst_206 [1] : vector<24x24xf32> to vector<24xf32>
    %326 = vector.shape_cast %325 : vector<24xf32> to vector<24x1xf32>
    %327 = vector.broadcast %326 : vector<24x1xf32> to vector<24x24xf32>
    %328 = arith.subf %324, %327 : vector<24x24xf32>
    %329 = math.exp %328 : vector<24x24xf32>
    %cst_207 = arith.constant dense<0.000000e+00> : vector<24xf32>
    %330 = vector.multi_reduction <add>, %329, %cst_207 [1] : vector<24x24xf32> to vector<24xf32>
    %331 = vector.shape_cast %330 : vector<24xf32> to vector<24x1xf32>
    %332 = tpu.reciprocal %331 {approx = true} : vector<24x1xf32> -> vector<24x1xf32>
    %333 = vector.broadcast %332 : vector<24x1xf32> to vector<24x24xf32>
    %334 = arith.mulf %329, %333 : vector<24x24xf32>
    %335 = arith.truncf %334 : vector<24x24xf32> to vector<24x24xbf16>
    %336 = arith.truncf %320 : vector<24x16xf32> to vector<24x16xbf16>
    %cst_208 = arith.constant dense<0.000000e+00> : vector<24x16xf32>
    %337 = tpu.matmul %335, %336, %cst_208 {dimension_numbers = #tpu.dot_dimension_numbers<[1], [0], [0], [1], [0, 0, 1, 1], [], []>} : vector<24x24xbf16>, vector<24x16xbf16>, vector<24x16xf32> -> vector<24x16xf32>
    %338 = arith.truncf %337 : vector<24x16xf32> to vector<24x16xbf16>
    %c1_209 = arith.constant 1 : index
    %c0_210 = arith.constant 0 : index
    %c0_211 = arith.constant 0 : index
    %c0_212 = arith.constant 0 : index
    %339 = vector.load %arg16[%c1_209, %c0_210, %c0_211, %c0_212] : memref<2x4x16x64xbf16, #tpu.memory_space<vmem>>, vector<1x1x16x64xbf16>
    %340 = vector.shape_cast %339 : vector<1x1x16x64xbf16> to vector<16x64xbf16>
    %cst_213 = arith.constant dense<0.000000e+00> : vector<24x64xf32>
    %341 = tpu.matmul %338, %340, %cst_213 {dimension_numbers = #tpu.dot_dimension_numbers<[1], [0], [0], [1], [0, 0, 1, 1], [], []>} : vector<24x16xbf16>, vector<16x64xbf16>, vector<24x64xf32> -> vector<24x64xf32>
    %342 = vector.broadcast %311 : vector<1x64xf32> to vector<24x64xf32>
    %343 = arith.addf %342, %341 : vector<24x64xf32>
    %c1_214 = arith.constant 1 : index
    %c1_215 = arith.constant 1 : index
    %c0_216 = arith.constant 0 : index
    %c0_217 = arith.constant 0 : index
    %344 = vector.load %arg13[%c1_214, %c1_215, %c0_216, %c0_217] : memref<2x4x64x16xbf16, #tpu.memory_space<vmem>>, vector<1x1x64x16xbf16>
    %345 = vector.shape_cast %344 : vector<1x1x64x16xbf16> to vector<64x16xbf16>
    %cst_218 = arith.constant dense<0.000000e+00> : vector<24x16xf32>
    %346 = tpu.matmul %309, %345, %cst_218 {dimension_numbers = #tpu.dot_dimension_numbers<[1], [0], [0], [1], [0, 0, 1, 1], [], []>} : vector<24x64xbf16>, vector<64x16xbf16>, vector<24x16xf32> -> vector<24x16xf32>
    %c1_219 = arith.constant 1 : index
    %c1_220 = arith.constant 1 : index
    %c0_221 = arith.constant 0 : index
    %c0_222 = arith.constant 0 : index
    %347 = vector.load %arg14[%c1_219, %c1_220, %c0_221, %c0_222] : memref<2x4x64x16xbf16, #tpu.memory_space<vmem>>, vector<1x1x64x16xbf16>
    %348 = vector.shape_cast %347 : vector<1x1x64x16xbf16> to vector<64x16xbf16>
    %cst_223 = arith.constant dense<0.000000e+00> : vector<24x16xf32>
    %349 = tpu.matmul %309, %348, %cst_223 {dimension_numbers = #tpu.dot_dimension_numbers<[1], [0], [0], [1], [0, 0, 1, 1], [], []>} : vector<24x64xbf16>, vector<64x16xbf16>, vector<24x16xf32> -> vector<24x16xf32>
    %c1_224 = arith.constant 1 : index
    %c1_225 = arith.constant 1 : index
    %c0_226 = arith.constant 0 : index
    %c0_227 = arith.constant 0 : index
    %350 = vector.load %arg15[%c1_224, %c1_225, %c0_226, %c0_227] : memref<2x4x64x16xbf16, #tpu.memory_space<vmem>>, vector<1x1x64x16xbf16>
    %351 = vector.shape_cast %350 : vector<1x1x64x16xbf16> to vector<64x16xbf16>
    %cst_228 = arith.constant dense<0.000000e+00> : vector<24x16xf32>
    %352 = tpu.matmul %309, %351, %cst_228 {dimension_numbers = #tpu.dot_dimension_numbers<[1], [0], [0], [1], [0, 0, 1, 1], [], []>} : vector<24x64xbf16>, vector<64x16xbf16>, vector<24x16xf32> -> vector<24x16xf32>
    %353 = arith.truncf %346 : vector<24x16xf32> to vector<24x16xbf16>
    %354 = arith.truncf %349 : vector<24x16xf32> to vector<24x16xbf16>
    %cst_229 = arith.constant dense<0.000000e+00> : vector<24x24xf32>
    %355 = tpu.matmul %353, %354, %cst_229 {dimension_numbers = #tpu.dot_dimension_numbers<[1], [1], [0], [0], [0, 0, 1, 0], [], []>} : vector<24x16xbf16>, vector<24x16xbf16>, vector<24x24xf32> -> vector<24x24xf32>
    %356 = arith.addf %355, %71 : vector<24x24xf32>
    %cst_230 = arith.constant dense<0xFF800000> : vector<24xf32>
    %357 = vector.multi_reduction <maximumf>, %356, %cst_230 [1] : vector<24x24xf32> to vector<24xf32>
    %358 = vector.shape_cast %357 : vector<24xf32> to vector<24x1xf32>
    %359 = vector.broadcast %358 : vector<24x1xf32> to vector<24x24xf32>
    %360 = arith.subf %356, %359 : vector<24x24xf32>
    %361 = math.exp %360 : vector<24x24xf32>
    %cst_231 = arith.constant dense<0.000000e+00> : vector<24xf32>
    %362 = vector.multi_reduction <add>, %361, %cst_231 [1] : vector<24x24xf32> to vector<24xf32>
    %363 = vector.shape_cast %362 : vector<24xf32> to vector<24x1xf32>
    %364 = tpu.reciprocal %363 {approx = true} : vector<24x1xf32> -> vector<24x1xf32>
    %365 = vector.broadcast %364 : vector<24x1xf32> to vector<24x24xf32>
    %366 = arith.mulf %361, %365 : vector<24x24xf32>
    %367 = arith.truncf %366 : vector<24x24xf32> to vector<24x24xbf16>
    %368 = arith.truncf %352 : vector<24x16xf32> to vector<24x16xbf16>
    %cst_232 = arith.constant dense<0.000000e+00> : vector<24x16xf32>
    %369 = tpu.matmul %367, %368, %cst_232 {dimension_numbers = #tpu.dot_dimension_numbers<[1], [0], [0], [1], [0, 0, 1, 1], [], []>} : vector<24x24xbf16>, vector<24x16xbf16>, vector<24x16xf32> -> vector<24x16xf32>
    %370 = arith.truncf %369 : vector<24x16xf32> to vector<24x16xbf16>
    %c1_233 = arith.constant 1 : index
    %c1_234 = arith.constant 1 : index
    %c0_235 = arith.constant 0 : index
    %c0_236 = arith.constant 0 : index
    %371 = vector.load %arg16[%c1_233, %c1_234, %c0_235, %c0_236] : memref<2x4x16x64xbf16, #tpu.memory_space<vmem>>, vector<1x1x16x64xbf16>
    %372 = vector.shape_cast %371 : vector<1x1x16x64xbf16> to vector<16x64xbf16>
    %cst_237 = arith.constant dense<0.000000e+00> : vector<24x64xf32>
    %373 = tpu.matmul %370, %372, %cst_237 {dimension_numbers = #tpu.dot_dimension_numbers<[1], [0], [0], [1], [0, 0, 1, 1], [], []>} : vector<24x16xbf16>, vector<16x64xbf16>, vector<24x64xf32> -> vector<24x64xf32>
    %374 = arith.addf %343, %373 : vector<24x64xf32>
    %c1_238 = arith.constant 1 : index
    %c2_239 = arith.constant 2 : index
    %c0_240 = arith.constant 0 : index
    %c0_241 = arith.constant 0 : index
    %375 = vector.load %arg13[%c1_238, %c2_239, %c0_240, %c0_241] : memref<2x4x64x16xbf16, #tpu.memory_space<vmem>>, vector<1x1x64x16xbf16>
    %376 = vector.shape_cast %375 : vector<1x1x64x16xbf16> to vector<64x16xbf16>
    %cst_242 = arith.constant dense<0.000000e+00> : vector<24x16xf32>
    %377 = tpu.matmul %309, %376, %cst_242 {dimension_numbers = #tpu.dot_dimension_numbers<[1], [0], [0], [1], [0, 0, 1, 1], [], []>} : vector<24x64xbf16>, vector<64x16xbf16>, vector<24x16xf32> -> vector<24x16xf32>
    %c1_243 = arith.constant 1 : index
    %c2_244 = arith.constant 2 : index
    %c0_245 = arith.constant 0 : index
    %c0_246 = arith.constant 0 : index
    %378 = vector.load %arg14[%c1_243, %c2_244, %c0_245, %c0_246] : memref<2x4x64x16xbf16, #tpu.memory_space<vmem>>, vector<1x1x64x16xbf16>
    %379 = vector.shape_cast %378 : vector<1x1x64x16xbf16> to vector<64x16xbf16>
    %cst_247 = arith.constant dense<0.000000e+00> : vector<24x16xf32>
    %380 = tpu.matmul %309, %379, %cst_247 {dimension_numbers = #tpu.dot_dimension_numbers<[1], [0], [0], [1], [0, 0, 1, 1], [], []>} : vector<24x64xbf16>, vector<64x16xbf16>, vector<24x16xf32> -> vector<24x16xf32>
    %c1_248 = arith.constant 1 : index
    %c2_249 = arith.constant 2 : index
    %c0_250 = arith.constant 0 : index
    %c0_251 = arith.constant 0 : index
    %381 = vector.load %arg15[%c1_248, %c2_249, %c0_250, %c0_251] : memref<2x4x64x16xbf16, #tpu.memory_space<vmem>>, vector<1x1x64x16xbf16>
    %382 = vector.shape_cast %381 : vector<1x1x64x16xbf16> to vector<64x16xbf16>
    %cst_252 = arith.constant dense<0.000000e+00> : vector<24x16xf32>
    %383 = tpu.matmul %309, %382, %cst_252 {dimension_numbers = #tpu.dot_dimension_numbers<[1], [0], [0], [1], [0, 0, 1, 1], [], []>} : vector<24x64xbf16>, vector<64x16xbf16>, vector<24x16xf32> -> vector<24x16xf32>
    %384 = arith.truncf %377 : vector<24x16xf32> to vector<24x16xbf16>
    %385 = arith.truncf %380 : vector<24x16xf32> to vector<24x16xbf16>
    %cst_253 = arith.constant dense<0.000000e+00> : vector<24x24xf32>
    %386 = tpu.matmul %384, %385, %cst_253 {dimension_numbers = #tpu.dot_dimension_numbers<[1], [1], [0], [0], [0, 0, 1, 0], [], []>} : vector<24x16xbf16>, vector<24x16xbf16>, vector<24x24xf32> -> vector<24x24xf32>
    %387 = arith.addf %386, %71 : vector<24x24xf32>
    %cst_254 = arith.constant dense<0xFF800000> : vector<24xf32>
    %388 = vector.multi_reduction <maximumf>, %387, %cst_254 [1] : vector<24x24xf32> to vector<24xf32>
    %389 = vector.shape_cast %388 : vector<24xf32> to vector<24x1xf32>
    %390 = vector.broadcast %389 : vector<24x1xf32> to vector<24x24xf32>
    %391 = arith.subf %387, %390 : vector<24x24xf32>
    %392 = math.exp %391 : vector<24x24xf32>
    %cst_255 = arith.constant dense<0.000000e+00> : vector<24xf32>
    %393 = vector.multi_reduction <add>, %392, %cst_255 [1] : vector<24x24xf32> to vector<24xf32>
    %394 = vector.shape_cast %393 : vector<24xf32> to vector<24x1xf32>
    %395 = tpu.reciprocal %394 {approx = true} : vector<24x1xf32> -> vector<24x1xf32>
    %396 = vector.broadcast %395 : vector<24x1xf32> to vector<24x24xf32>
    %397 = arith.mulf %392, %396 : vector<24x24xf32>
    %398 = arith.truncf %397 : vector<24x24xf32> to vector<24x24xbf16>
    %399 = arith.truncf %383 : vector<24x16xf32> to vector<24x16xbf16>
    %cst_256 = arith.constant dense<0.000000e+00> : vector<24x16xf32>
    %400 = tpu.matmul %398, %399, %cst_256 {dimension_numbers = #tpu.dot_dimension_numbers<[1], [0], [0], [1], [0, 0, 1, 1], [], []>} : vector<24x24xbf16>, vector<24x16xbf16>, vector<24x16xf32> -> vector<24x16xf32>
    %401 = arith.truncf %400 : vector<24x16xf32> to vector<24x16xbf16>
    %c1_257 = arith.constant 1 : index
    %c2_258 = arith.constant 2 : index
    %c0_259 = arith.constant 0 : index
    %c0_260 = arith.constant 0 : index
    %402 = vector.load %arg16[%c1_257, %c2_258, %c0_259, %c0_260] : memref<2x4x16x64xbf16, #tpu.memory_space<vmem>>, vector<1x1x16x64xbf16>
    %403 = vector.shape_cast %402 : vector<1x1x16x64xbf16> to vector<16x64xbf16>
    %cst_261 = arith.constant dense<0.000000e+00> : vector<24x64xf32>
    %404 = tpu.matmul %401, %403, %cst_261 {dimension_numbers = #tpu.dot_dimension_numbers<[1], [0], [0], [1], [0, 0, 1, 1], [], []>} : vector<24x16xbf16>, vector<16x64xbf16>, vector<24x64xf32> -> vector<24x64xf32>
    %405 = arith.addf %374, %404 : vector<24x64xf32>
    %c1_262 = arith.constant 1 : index
    %c3_263 = arith.constant 3 : index
    %c0_264 = arith.constant 0 : index
    %c0_265 = arith.constant 0 : index
    %406 = vector.load %arg13[%c1_262, %c3_263, %c0_264, %c0_265] : memref<2x4x64x16xbf16, #tpu.memory_space<vmem>>, vector<1x1x64x16xbf16>
    %407 = vector.shape_cast %406 : vector<1x1x64x16xbf16> to vector<64x16xbf16>
    %cst_266 = arith.constant dense<0.000000e+00> : vector<24x16xf32>
    %408 = tpu.matmul %309, %407, %cst_266 {dimension_numbers = #tpu.dot_dimension_numbers<[1], [0], [0], [1], [0, 0, 1, 1], [], []>} : vector<24x64xbf16>, vector<64x16xbf16>, vector<24x16xf32> -> vector<24x16xf32>
    %c1_267 = arith.constant 1 : index
    %c3_268 = arith.constant 3 : index
    %c0_269 = arith.constant 0 : index
    %c0_270 = arith.constant 0 : index
    %409 = vector.load %arg14[%c1_267, %c3_268, %c0_269, %c0_270] : memref<2x4x64x16xbf16, #tpu.memory_space<vmem>>, vector<1x1x64x16xbf16>
    %410 = vector.shape_cast %409 : vector<1x1x64x16xbf16> to vector<64x16xbf16>
    %cst_271 = arith.constant dense<0.000000e+00> : vector<24x16xf32>
    %411 = tpu.matmul %309, %410, %cst_271 {dimension_numbers = #tpu.dot_dimension_numbers<[1], [0], [0], [1], [0, 0, 1, 1], [], []>} : vector<24x64xbf16>, vector<64x16xbf16>, vector<24x16xf32> -> vector<24x16xf32>
    %c1_272 = arith.constant 1 : index
    %c3_273 = arith.constant 3 : index
    %c0_274 = arith.constant 0 : index
    %c0_275 = arith.constant 0 : index
    %412 = vector.load %arg15[%c1_272, %c3_273, %c0_274, %c0_275] : memref<2x4x64x16xbf16, #tpu.memory_space<vmem>>, vector<1x1x64x16xbf16>
    %413 = vector.shape_cast %412 : vector<1x1x64x16xbf16> to vector<64x16xbf16>
    %cst_276 = arith.constant dense<0.000000e+00> : vector<24x16xf32>
    %414 = tpu.matmul %309, %413, %cst_276 {dimension_numbers = #tpu.dot_dimension_numbers<[1], [0], [0], [1], [0, 0, 1, 1], [], []>} : vector<24x64xbf16>, vector<64x16xbf16>, vector<24x16xf32> -> vector<24x16xf32>
    %415 = arith.truncf %408 : vector<24x16xf32> to vector<24x16xbf16>
    %416 = arith.truncf %411 : vector<24x16xf32> to vector<24x16xbf16>
    %cst_277 = arith.constant dense<0.000000e+00> : vector<24x24xf32>
    %417 = tpu.matmul %415, %416, %cst_277 {dimension_numbers = #tpu.dot_dimension_numbers<[1], [1], [0], [0], [0, 0, 1, 0], [], []>} : vector<24x16xbf16>, vector<24x16xbf16>, vector<24x24xf32> -> vector<24x24xf32>
    %418 = arith.addf %417, %71 : vector<24x24xf32>
    %cst_278 = arith.constant dense<0xFF800000> : vector<24xf32>
    %419 = vector.multi_reduction <maximumf>, %418, %cst_278 [1] : vector<24x24xf32> to vector<24xf32>
    %420 = vector.shape_cast %419 : vector<24xf32> to vector<24x1xf32>
    %421 = vector.broadcast %420 : vector<24x1xf32> to vector<24x24xf32>
    %422 = arith.subf %418, %421 : vector<24x24xf32>
    %423 = math.exp %422 : vector<24x24xf32>
    %cst_279 = arith.constant dense<0.000000e+00> : vector<24xf32>
    %424 = vector.multi_reduction <add>, %423, %cst_279 [1] : vector<24x24xf32> to vector<24xf32>
    %425 = vector.shape_cast %424 : vector<24xf32> to vector<24x1xf32>
    %426 = tpu.reciprocal %425 {approx = true} : vector<24x1xf32> -> vector<24x1xf32>
    %427 = vector.broadcast %426 : vector<24x1xf32> to vector<24x24xf32>
    %428 = arith.mulf %423, %427 : vector<24x24xf32>
    %429 = arith.truncf %428 : vector<24x24xf32> to vector<24x24xbf16>
    %430 = arith.truncf %414 : vector<24x16xf32> to vector<24x16xbf16>
    %cst_280 = arith.constant dense<0.000000e+00> : vector<24x16xf32>
    %431 = tpu.matmul %429, %430, %cst_280 {dimension_numbers = #tpu.dot_dimension_numbers<[1], [0], [0], [1], [0, 0, 1, 1], [], []>} : vector<24x24xbf16>, vector<24x16xbf16>, vector<24x16xf32> -> vector<24x16xf32>
    %432 = arith.truncf %431 : vector<24x16xf32> to vector<24x16xbf16>
    %c1_281 = arith.constant 1 : index
    %c3_282 = arith.constant 3 : index
    %c0_283 = arith.constant 0 : index
    %c0_284 = arith.constant 0 : index
    %433 = vector.load %arg16[%c1_281, %c3_282, %c0_283, %c0_284] : memref<2x4x16x64xbf16, #tpu.memory_space<vmem>>, vector<1x1x16x64xbf16>
    %434 = vector.shape_cast %433 : vector<1x1x16x64xbf16> to vector<16x64xbf16>
    %cst_285 = arith.constant dense<0.000000e+00> : vector<24x64xf32>
    %435 = tpu.matmul %432, %434, %cst_285 {dimension_numbers = #tpu.dot_dimension_numbers<[1], [0], [0], [1], [0, 0, 1, 1], [], []>} : vector<24x16xbf16>, vector<16x64xbf16>, vector<24x64xf32> -> vector<24x64xf32>
    %436 = arith.addf %405, %435 : vector<24x64xf32>
    %437 = arith.addf %282, %436 : vector<24x64xf32>
    %c1_286 = arith.constant 1 : index
    %c0_287 = arith.constant 0 : index
    %c0_288 = arith.constant 0 : index
    %438 = vector.load %arg18[%c1_286, %c0_287, %c0_288] : memref<2x1x64xf32, #tpu.memory_space<vmem>>, vector<1x1x64xf32>
    %439 = vector.shape_cast %438 : vector<1x1x64xf32> to vector<1x64xf32>
    %c1_289 = arith.constant 1 : index
    %c0_290 = arith.constant 0 : index
    %c0_291 = arith.constant 0 : index
    %440 = vector.load %arg19[%c1_289, %c0_290, %c0_291] : memref<2x1x64xf32, #tpu.memory_space<vmem>>, vector<1x1x64xf32>
    %441 = vector.shape_cast %440 : vector<1x1x64xf32> to vector<1x64xf32>
    %cst_292 = arith.constant dense<0.000000e+00> : vector<24xf32>
    %442 = vector.multi_reduction <add>, %437, %cst_292 [1] : vector<24x64xf32> to vector<24xf32>
    %443 = vector.shape_cast %442 : vector<24xf32> to vector<24x1xf32>
    %cst_293 = arith.constant 6.400000e+01 : f32
    %444 = vector.broadcast %cst_293 : f32 to vector<24x1xf32>
    %445 = arith.divf %443, %444 : vector<24x1xf32>
    %446 = vector.broadcast %445 : vector<24x1xf32> to vector<24x64xf32>
    %447 = arith.subf %437, %446 : vector<24x64xf32>
    %448 = arith.mulf %447, %447 : vector<24x64xf32>
    %cst_294 = arith.constant dense<0.000000e+00> : vector<24xf32>
    %449 = vector.multi_reduction <add>, %448, %cst_294 [1] : vector<24x64xf32> to vector<24xf32>
    %450 = vector.shape_cast %449 : vector<24xf32> to vector<24x1xf32>
    %cst_295 = arith.constant 6.400000e+01 : f32
    %451 = vector.broadcast %cst_295 : f32 to vector<24x1xf32>
    %452 = arith.divf %450, %451 : vector<24x1xf32>
    %453 = vector.broadcast %445 : vector<24x1xf32> to vector<24x64xf32>
    %454 = arith.subf %437, %453 : vector<24x64xf32>
    %cst_296 = arith.constant 9.99999974E-6 : f32
    %455 = vector.broadcast %cst_296 : f32 to vector<24x1xf32>
    %456 = arith.addf %452, %455 : vector<24x1xf32>
    %457 = math.rsqrt %456 : vector<24x1xf32>
    %458 = vector.broadcast %457 : vector<24x1xf32> to vector<24x64xf32>
    %459 = arith.mulf %454, %458 : vector<24x64xf32>
    %460 = vector.broadcast %439 : vector<1x64xf32> to vector<24x64xf32>
    %461 = arith.mulf %459, %460 : vector<24x64xf32>
    %462 = vector.broadcast %441 : vector<1x64xf32> to vector<24x64xf32>
    %463 = arith.addf %461, %462 : vector<24x64xf32>
    %c1_297 = arith.constant 1 : index
    %c0_298 = arith.constant 0 : index
    %c0_299 = arith.constant 0 : index
    %464 = vector.load %arg20[%c1_297, %c0_298, %c0_299] : memref<2x64x64xbf16, #tpu.memory_space<vmem>>, vector<1x64x64xbf16>
    %465 = vector.shape_cast %464 : vector<1x64x64xbf16> to vector<64x64xbf16>
    %466 = arith.truncf %463 : vector<24x64xf32> to vector<24x64xbf16>
    %cst_300 = arith.constant dense<0.000000e+00> : vector<24x64xf32>
    %467 = tpu.matmul %466, %465, %cst_300 {dimension_numbers = #tpu.dot_dimension_numbers<[1], [0], [0], [1], [0, 0, 1, 1], [], []>} : vector<24x64xbf16>, vector<64x64xbf16>, vector<24x64xf32> -> vector<24x64xf32>
    %c1_301 = arith.constant 1 : index
    %c0_302 = arith.constant 0 : index
    %c0_303 = arith.constant 0 : index
    %468 = vector.load %arg21[%c1_301, %c0_302, %c0_303] : memref<2x1x64xf32, #tpu.memory_space<vmem>>, vector<1x1x64xf32>
    %469 = vector.shape_cast %468 : vector<1x1x64xf32> to vector<1x64xf32>
    %470 = vector.broadcast %469 : vector<1x64xf32> to vector<24x64xf32>
    %471 = arith.addf %467, %470 : vector<24x64xf32>
    %472 = arith.mulf %471, %471 : vector<24x64xf32>
    %473 = arith.mulf %471, %472 : vector<24x64xf32>
    %cst_304 = arith.constant 4.471500e-02 : f32
    %474 = vector.broadcast %cst_304 : f32 to vector<24x64xf32>
    %475 = arith.mulf %474, %473 : vector<24x64xf32>
    %476 = arith.addf %471, %475 : vector<24x64xf32>
    %cst_305 = arith.constant 0.797884583 : f32
    %477 = vector.broadcast %cst_305 : f32 to vector<24x64xf32>
    %478 = arith.mulf %477, %476 : vector<24x64xf32>
    %479 = math.tanh %478 : vector<24x64xf32>
    %cst_306 = arith.constant 1.000000e+00 : f32
    %480 = vector.broadcast %cst_306 : f32 to vector<24x64xf32>
    %481 = arith.addf %480, %479 : vector<24x64xf32>
    %cst_307 = arith.constant 5.000000e-01 : f32
    %482 = vector.broadcast %cst_307 : f32 to vector<24x64xf32>
    %483 = arith.mulf %482, %481 : vector<24x64xf32>
    %484 = arith.mulf %471, %483 : vector<24x64xf32>
    %c1_308 = arith.constant 1 : index
    %c0_309 = arith.constant 0 : index
    %c0_310 = arith.constant 0 : index
    %485 = vector.load %arg22[%c1_308, %c0_309, %c0_310] : memref<2x64x64xbf16, #tpu.memory_space<vmem>>, vector<1x64x64xbf16>
    %486 = vector.shape_cast %485 : vector<1x64x64xbf16> to vector<64x64xbf16>
    %487 = arith.truncf %484 : vector<24x64xf32> to vector<24x64xbf16>
    %cst_311 = arith.constant dense<0.000000e+00> : vector<24x64xf32>
    %488 = tpu.matmul %487, %486, %cst_311 {dimension_numbers = #tpu.dot_dimension_numbers<[1], [0], [0], [1], [0, 0, 1, 1], [], []>} : vector<24x64xbf16>, vector<64x64xbf16>, vector<24x64xf32> -> vector<24x64xf32>
    %c1_312 = arith.constant 1 : index
    %c0_313 = arith.constant 0 : index
    %c0_314 = arith.constant 0 : index
    %489 = vector.load %arg23[%c1_312, %c0_313, %c0_314] : memref<2x1x64xf32, #tpu.memory_space<vmem>>, vector<1x1x64xf32>
    %490 = vector.shape_cast %489 : vector<1x1x64xf32> to vector<1x64xf32>
    %491 = vector.broadcast %490 : vector<1x64xf32> to vector<24x64xf32>
    %492 = arith.addf %488, %491 : vector<24x64xf32>
    %493 = arith.addf %437, %492 : vector<24x64xf32>
    %494 = vector.extract_strided_slice %493 {offsets = [16, 0], sizes = [1, 64], strides = [1, 1]} : vector<24x64xf32> to vector<1x64xf32>
    %c0_315 = arith.constant 0 : index
    %c0_316 = arith.constant 0 : index
    %495 = vector.load %arg24[%c0_315, %c0_316] : memref<1x64xf32, #tpu.memory_space<vmem>>, vector<1x64xf32>
    %c0_317 = arith.constant 0 : index
    %c0_318 = arith.constant 0 : index
    %496 = vector.load %arg25[%c0_317, %c0_318] : memref<1x64xf32, #tpu.memory_space<vmem>>, vector<1x64xf32>
    %cst_319 = arith.constant dense<0.000000e+00> : vector<1xf32>
    %497 = vector.multi_reduction <add>, %494, %cst_319 [1] : vector<1x64xf32> to vector<1xf32>
    %498 = vector.shape_cast %497 : vector<1xf32> to vector<1x1xf32>
    %cst_320 = arith.constant 6.400000e+01 : f32
    %499 = vector.broadcast %cst_320 : f32 to vector<1x1xf32>
    %500 = arith.divf %498, %499 : vector<1x1xf32>
    %501 = vector.broadcast %500 : vector<1x1xf32> to vector<1x64xf32>
    %502 = arith.subf %494, %501 : vector<1x64xf32>
    %503 = arith.mulf %502, %502 : vector<1x64xf32>
    %cst_321 = arith.constant dense<0.000000e+00> : vector<1xf32>
    %504 = vector.multi_reduction <add>, %503, %cst_321 [1] : vector<1x64xf32> to vector<1xf32>
    %505 = vector.shape_cast %504 : vector<1xf32> to vector<1x1xf32>
    %cst_322 = arith.constant 6.400000e+01 : f32
    %506 = vector.broadcast %cst_322 : f32 to vector<1x1xf32>
    %507 = arith.divf %505, %506 : vector<1x1xf32>
    %508 = vector.broadcast %500 : vector<1x1xf32> to vector<1x64xf32>
    %509 = arith.subf %494, %508 : vector<1x64xf32>
    %cst_323 = arith.constant 9.99999974E-6 : f32
    %510 = vector.broadcast %cst_323 : f32 to vector<1x1xf32>
    %511 = arith.addf %507, %510 : vector<1x1xf32>
    %512 = math.rsqrt %511 : vector<1x1xf32>
    %513 = vector.broadcast %512 : vector<1x1xf32> to vector<1x64xf32>
    %514 = arith.mulf %509, %513 : vector<1x64xf32>
    %515 = arith.mulf %514, %495 : vector<1x64xf32>
    %516 = arith.addf %515, %496 : vector<1x64xf32>
    %c0_324 = arith.constant 0 : index
    %c0_325 = arith.constant 0 : index
    %c0_326 = arith.constant 0 : index
    %517 = vector.load %arg26[%c0_324, %c0_325, %c0_326] : memref<1x1x64xf32, #tpu.memory_space<vmem>>, vector<1x1x64xf32>
    %518 = vector.shape_cast %517 : vector<1x1x64xf32> to vector<1x64xf32>
    %519 = vector.shape_cast %516 : vector<1x64xf32> to vector<1x1x64xf32>
    tpu.vector_store %arg26[%c0_324, %c0_325, %c0_326], %519 {strides = array<i32>} : memref<1x1x64xf32, #tpu.memory_space<vmem>>, vector<1x1x64xf32>,
    return
  }
  func.func @transform_0(%arg0: i32) -> (i32, i32, i32) {
    %c0_i32 = arith.constant 0 : i32
    %c0_i32_0 = arith.constant 0 : i32
    %c0_i32_1 = arith.constant 0 : i32
    return %arg0, %c0_i32, %c0_i32_0 : i32, i32, i32
  }
  func.func @transform_1(%arg0: i32) -> (i32, i32) {
    %c0_i32 = arith.constant 0 : i32
    %c0_i32_0 = arith.constant 0 : i32
    %c0_i32_1 = arith.constant 0 : i32
    return %c0_i32, %c0_i32_0 : i32, i32
  }
  func.func @transform_2(%arg0: i32) -> (i32, i32) {
    %c0_i32 = arith.constant 0 : i32
    %c0_i32_0 = arith.constant 0 : i32
    %c0_i32_1 = arith.constant 0 : i32
    return %c0_i32, %c0_i32_0 : i32, i32
  }
  func.func @transform_3(%arg0: i32) -> (i32, i32) {
    %c0_i32 = arith.constant 0 : i32
    %c0_i32_0 = arith.constant 0 : i32
    %c0_i32_1 = arith.constant 0 : i32
    return %c0_i32, %c0_i32_0 : i32, i32
  }
  func.func @transform_4(%arg0: i32) -> (i32, i32) {
    %c0_i32 = arith.constant 0 : i32
    %c0_i32_0 = arith.constant 0 : i32
    %c0_i32_1 = arith.constant 0 : i32
    return %c0_i32, %c0_i32_0 : i32, i32
  }
  func.func @transform_5(%arg0: i32) -> (i32, i32) {
    %c0_i32 = arith.constant 0 : i32
    %c0_i32_0 = arith.constant 0 : i32
    %c0_i32_1 = arith.constant 0 : i32
    return %c0_i32, %c0_i32_0 : i32, i32
  }
  func.func @transform_6(%arg0: i32) -> (i32, i32) {
    %c0_i32 = arith.constant 0 : i32
    %c0_i32_0 = arith.constant 0 : i32
    %c0_i32_1 = arith.constant 0 : i32
    return %c0_i32, %c0_i32_0 : i32, i32
  }
  func.func @transform_7(%arg0: i32) -> (i32, i32) {
    %c0_i32 = arith.constant 0 : i32
    %c0_i32_0 = arith.constant 0 : i32
    %c0_i32_1 = arith.constant 0 : i32
    return %c0_i32, %c0_i32_0 : i32, i32
  }
  func.func @transform_8(%arg0: i32) -> (i32, i32) {
    %c0_i32 = arith.constant 0 : i32
    %c0_i32_0 = arith.constant 0 : i32
    %c0_i32_1 = arith.constant 0 : i32
    return %c0_i32, %c0_i32_0 : i32, i32
  }
  func.func @transform_9(%arg0: i32) -> (i32, i32) {
    %c0_i32 = arith.constant 0 : i32
    %c0_i32_0 = arith.constant 0 : i32
    %c0_i32_1 = arith.constant 0 : i32
    return %c0_i32, %c0_i32_0 : i32, i32
  }
  func.func @transform_10(%arg0: i32) -> (i32, i32, i32) {
    %c0_i32 = arith.constant 0 : i32
    %c0_i32_0 = arith.constant 0 : i32
    %c0_i32_1 = arith.constant 0 : i32
    %c0_i32_2 = arith.constant 0 : i32
    return %c0_i32, %c0_i32_0, %c0_i32_1 : i32, i32, i32
  }
  func.func @transform_11(%arg0: i32) -> (i32, i32, i32) {
    %c0_i32 = arith.constant 0 : i32
    %c0_i32_0 = arith.constant 0 : i32
    %c0_i32_1 = arith.constant 0 : i32
    %c0_i32_2 = arith.constant 0 : i32
    return %c0_i32, %c0_i32_0, %c0_i32_1 : i32, i32, i32
  }
  func.func @transform_12(%arg0: i32) -> (i32, i32, i32, i32) {
    %c0_i32 = arith.constant 0 : i32
    %c0_i32_0 = arith.constant 0 : i32
    %c0_i32_1 = arith.constant 0 : i32
    %c0_i32_2 = arith.constant 0 : i32
    %c0_i32_3 = arith.constant 0 : i32
    return %c0_i32, %c0_i32_0, %c0_i32_1, %c0_i32_2 : i32, i32, i32, i32
  }
  func.func @transform_13(%arg0: i32) -> (i32, i32, i32, i32) {
    %c0_i32 = arith.constant 0 : i32
    %c0_i32_0 = arith.constant 0 : i32
    %c0_i32_1 = arith.constant 0 : i32
    %c0_i32_2 = arith.constant 0 : i32
    %c0_i32_3 = arith.constant 0 : i32
    return %c0_i32, %c0_i32_0, %c0_i32_1, %c0_i32_2 : i32, i32, i32, i32
  }
  func.func @transform_14(%arg0: i32) -> (i32, i32, i32, i32) {
    %c0_i32 = arith.constant 0 : i32
    %c0_i32_0 = arith.constant 0 : i32
    %c0_i32_1 = arith.constant 0 : i32
    %c0_i32_2 = arith.constant 0 : i32
    %c0_i32_3 = arith.constant 0 : i32
    return %c0_i32, %c0_i32_0, %c0_i32_1, %c0_i32_2 : i32, i32, i32, i32
  }
  func.func @transform_15(%arg0: i32) -> (i32, i32, i32, i32) {
    %c0_i32 = arith.constant 0 : i32
    %c0_i32_0 = arith.constant 0 : i32
    %c0_i32_1 = arith.constant 0 : i32
    %c0_i32_2 = arith.constant 0 : i32
    %c0_i32_3 = arith.constant 0 : i32
    return %c0_i32, %c0_i32_0, %c0_i32_1, %c0_i32_2 : i32, i32, i32, i32
  }
  func.func @transform_16(%arg0: i32) -> (i32, i32, i32) {
    %c0_i32 = arith.constant 0 : i32
    %c0_i32_0 = arith.constant 0 : i32
    %c0_i32_1 = arith.constant 0 : i32
    %c0_i32_2 = arith.constant 0 : i32
    return %c0_i32, %c0_i32_0, %c0_i32_1 : i32, i32, i32
  }
  func.func @transform_17(%arg0: i32) -> (i32, i32, i32) {
    %c0_i32 = arith.constant 0 : i32
    %c0_i32_0 = arith.constant 0 : i32
    %c0_i32_1 = arith.constant 0 : i32
    %c0_i32_2 = arith.constant 0 : i32
    return %c0_i32, %c0_i32_0, %c0_i32_1 : i32, i32, i32
  }
  func.func @transform_18(%arg0: i32) -> (i32, i32, i32) {
    %c0_i32 = arith.constant 0 : i32
    %c0_i32_0 = arith.constant 0 : i32
    %c0_i32_1 = arith.constant 0 : i32
    %c0_i32_2 = arith.constant 0 : i32
    return %c0_i32, %c0_i32_0, %c0_i32_1 : i32, i32, i32
  }
  func.func @transform_19(%arg0: i32) -> (i32, i32, i32) {
    %c0_i32 = arith.constant 0 : i32
    %c0_i32_0 = arith.constant 0 : i32
    %c0_i32_1 = arith.constant 0 : i32
    %c0_i32_2 = arith.constant 0 : i32
    return %c0_i32, %c0_i32_0, %c0_i32_1 : i32, i32, i32
  }
  func.func @transform_20(%arg0: i32) -> (i32, i32, i32) {
    %c0_i32 = arith.constant 0 : i32
    %c0_i32_0 = arith.constant 0 : i32
    %c0_i32_1 = arith.constant 0 : i32
    %c0_i32_2 = arith.constant 0 : i32
    return %c0_i32, %c0_i32_0, %c0_i32_1 : i32, i32, i32
  }
  func.func @transform_21(%arg0: i32) -> (i32, i32, i32) {
    %c0_i32 = arith.constant 0 : i32
    %c0_i32_0 = arith.constant 0 : i32
    %c0_i32_1 = arith.constant 0 : i32
    %c0_i32_2 = arith.constant 0 : i32
    return %c0_i32, %c0_i32_0, %c0_i32_1 : i32, i32, i32
  }
  func.func @transform_22(%arg0: i32) -> (i32, i32, i32) {
    %c0_i32 = arith.constant 0 : i32
    %c0_i32_0 = arith.constant 0 : i32
    %c0_i32_1 = arith.constant 0 : i32
    %c0_i32_2 = arith.constant 0 : i32
    return %c0_i32, %c0_i32_0, %c0_i32_1 : i32, i32, i32
  }
  func.func @transform_23(%arg0: i32) -> (i32, i32) {
    %c0_i32 = arith.constant 0 : i32
    %c0_i32_0 = arith.constant 0 : i32
    %c0_i32_1 = arith.constant 0 : i32
    return %c0_i32, %c0_i32_0 : i32, i32
  }
  func.func @transform_24(%arg0: i32) -> (i32, i32) {
    %c0_i32 = arith.constant 0 : i32
    %c0_i32_0 = arith.constant 0 : i32
    %c0_i32_1 = arith.constant 0 : i32
    return %c0_i32, %c0_i32_0 : i32, i32
  }
  func.func @transform_25(%arg0: i32) -> (i32, i32, i32) {
    %c0_i32 = arith.constant 0 : i32
    %c0_i32_0 = arith.constant 0 : i32
    %c0_i32_1 = arith.constant 0 : i32
    return %arg0, %c0_i32, %c0_i32_0 : i32, i32, i32
  }
}

</mosaic_0001>

<bundles_post_ra>
// kernel: vit_forward.1
= control target key start
LH: loop header
LB: loop body
LE: loop exit
PB: predicated region body
PF: predicated region fallthrough
CT: control target
= control target key end

     0   :  { %s8268_s0 = inlined_call_operand.vmem [shape: f32[2,16,64], index: 0, kind: input, shape index: {}]   ;;  %s8269_s1 = inlined_call_operand.vmem [shape: f32[1,64], index: 1, kind: input, shape index: {}]   ;;  %s8270_s2 = inlined_call_operand.vmem [shape: f32[1,64], index: 2, kind: input, shape index: {}]   ;;  %s8271_s3 = inlined_call_operand.vmem [shape: bf16[64,64], index: 3, kind: input, shape index: {}]   ;;  %s8272_s4 = inlined_call_operand.vmem [shape: f32[1,64], index: 4, kind: input, shape index: {}]   ;;  %s8273_s5 = inlined_call_operand.vmem [shape: f32[1,64], index: 5, kind: input, shape index: {}]   ;;  %s8274_s6 = inlined_call_operand.vmem [shape: f32[1,64], index: 6, kind: input, shape index: {}]   ;;  %s8275_s7 = inlined_call_operand.vmem [shape: f32[1,64], index: 7, kind: input, shape index: {}]   ;;  %s8276_s8 = inlined_call_operand.vmem [shape: f32[1,64], index: 8, kind: input, shape index: {}]   ;;  %s8277_s9 = inlined_call_operand.vmem [shape: f32[16,64], index: 9, kind: input, shape index: {}]   ;;  %s8278_s10 = inlined_call_operand.vmem [shape: f32[2,1,64], index: 10, kind: input, shape index: {}]   ;;  %s8279_s11 = inlined_call_operand.vmem [shape: f32[2,1,64], index: 11, kind: input, shape index: {}]   ;;  %s8280_s12 = inlined_call_operand.vmem [shape: bf16[2,4,64,16], index: 12, kind: input, shape index: {}]   ;;  %s8281_s13 = inlined_call_operand.vmem [shape: bf16[2,4,64,16], index: 13, kind: input, shape index: {}]   ;;  %s8282_s14 = inlined_call_operand.vmem [shape: bf16[2,4,64,16], index: 14, kind: input, shape index: {}]   ;;  %s8283_s15 = inlined_call_operand.vmem [shape: bf16[2,4,16,64], index: 15, kind: input, shape index: {}]   ;;  %s8284_s16 = inlined_call_operand.vmem [shape: f32[2,1,64], index: 16, kind: input, shape index: {}]   ;;  %s8285_s17 = inlined_call_operand.vmem [shape: f32[2,1,64], index: 17, kind: input, shape index: {}]   ;;  %s8286_s18 = inlined_call_operand.vmem [shape: f32[2,1,64], index: 18, kind: input, shape index: {}]   ;;  %s8287_s19 = inlined_call_operand.vmem [shape: bf16[2,64,64], index: 19, kind: input, shape index: {}]   ;;  %s8288_s20 = inlined_call_operand.vmem [shape: f32[2,1,64], index: 20, kind: input, shape index: {}]   ;;  %s8289_s21 = inlined_call_operand.vmem [shape: bf16[2,64,64], index: 21, kind: input, shape index: {}]   ;;  %s8290_s22 = inlined_call_operand.vmem [shape: f32[2,1,64], index: 22, kind: input, shape index: {}]   ;;  %s8291_s23 = inlined_call_operand.vmem [shape: f32[1,64], index: 23, kind: input, shape index: {}]   ;;  %s8292_s24 = inlined_call_operand.vmem [shape: f32[1,64], index: 24, kind: input, shape index: {}]   ;;  %s8293_s25 = inlined_call_operand.hbm [shape: f32[2,1,64], index: 25, kind: output, shape index: {}]  }
   0x1   :  { %8303 = sst [smem:[#allocation12_spill]] %s8268_s0 }
   0x2   :  { %8304 = sst [smem:[#allocation13_spill]] %s8269_s1 }
   0x3   :  { %8305 = sst [smem:[#allocation14_spill]] %s8270_s2 }
   0x4   :  { %8306 = sst [smem:[#allocation15_spill]] %s8271_s3 }
   0x5   :  { %8307 = sst [smem:[#allocation16_spill]] %s8272_s4 }
   0x6   :  { %8308 = sst [smem:[#allocation17_spill]] %s8273_s5 }
   0x7   :  { %8309 = sst [smem:[#allocation18_spill]] %s8274_s6 }
   0x8   :  { %8310 = sst [smem:[#allocation19_spill]] %s8275_s7 }
   0x9   :  { %8311 = sst [smem:[#allocation20_spill]] %s8276_s8 }
   0xa   :  { %8312 = sst [smem:[#allocation21_spill]] %s8277_s9 }
   0xb   :  { %30 = vsyncpa [#allocation4], 0 }
   0xc   :  { %32 = vsyncpa [#allocation4 + $0x1], 0  ;;  %s7295_s29 = smov 0   ;;  %s7297_s2 = smov 0  }
   0xd   :  { %s7299_s6 = smov 0   ;;  %s7301_s30 = smov 0  }
   0xe LB: > { %8313 = sst [smem:[#allocation6_spill]] %s7147_s29  ;;  %s7316_s7 = sadd.s32 4294967295, %s7159_s30   ;;  %s7159_s30 = sphi %s7301_s30, %s8334_s30   ;;  %s7155_s6 = sphi %s7299_s6, %s8336_s6   ;;  %s7151_s2 = sphi %s7297_s2, %s8338_s2   ;;  %s7147_s29 = sphi %s7295_s29, %s8337_s29  }
   0xf   : > { %8314 = sst [smem:[#allocation7_spill]] %s7155_s6  ;;  %s5514_s3 = sadd.s32 4294967294, %s7159_s30  }
  0x10   : > { %8315 = sst [smem:[#allocation8_spill]] %s7159_s30  ;;  %s7320_s26 = sadd.s32 1, %s7159_s30  }
  0x11   : > { %8316 = sst [smem:[#allocation9_spill]] %s7320_s26  ;;  %s575_s1 = sadd.s32 1, %s7155_s6 }
  0x12   : > { %s572_s8 = ssub.s32 %s7159_s30, %s7320_s26  ;;  %p585_p0 = scmp.ne.s32.totalorder %s7155_s6, %s7151_s2 }
  0x13   : > { %p573_p1 = scmp.eq.s32.totalorder %s572_s8, 0  ;;  %p586_p2 = scmp.eq.s32.totalorder %s7316_s7, 1 }
  0x14   : > { %p591_p3 = scmp.ne.s32.totalorder %s7151_s2, %s7147_s29  ;;  %p592_p4 = scmp.eq.s32.totalorder %s5514_s3, 1 }
  0x15   : > { %s7331_s27 = scalar_select %p573_p1, %s7155_s6, %s575_s1  }
  0x16   : > { %p7333_p5 = por %p586_p2, %p585_p0  ;;  %p7337_p6 = por %p592_p4, %p591_p3 }
  0x17   : > { %8317 = sst [smem:[#allocation10_spill]] %s7331_s27  ;;  %p5517_p7 = scmp.ge.s32.totalorder %s7159_s30, 1 }
  0x18   : > { %s8319_s28 = scalar_select %p7337_p6, 1, 0 }
  0x19   : > { %p690_p8 = scmp.lt.s32.totalorder %s7159_s30, 3 }
  0x1a   : > { %8320 = sst [smem:[#allocation11_spill]] %s8319_s28 }
  0x1b   : > { %p691_p9 = pnand %p5517_p7, %p690_p8 }
  0x1c   : > { %p757_p10 = scmp.lt.s32.totalorder (!%p691_p9), %s7316_s7, 1  ;;  %vm767_vm0 = vcmask (!%p691_p9), 523264   ;;  %s8321_s1 = sld [smem:[#allocation12_spill]] (!%p691_p9)  ;;  %v7161_v15 = vmov (!%p691_p9), 0.0   ;;  %vm951_vm1 = vcmask (!%p691_p9), 516096   ;;  %vm7162_vm2 = vmmov (!%p691_p9), 0  }
  0x1d   : > { %694 = sbr.rel (%p691_p9) target bundleno = 11845 (0x2e45), region = 120  ;;  %s8322_s0 = sld [smem:[#allocation15_spill]] (!%p691_p9)  ;;  %6238 = vmatprep.subr.bf16.mxu0 (!%p691_p9), %v7161_v15  ;;  %941 = vst.msk [vmem:[#allocation2 + $0x10] sm:$0xff] (!%p691_p9), %vm767_vm0, %v7161_v15  ;;  %939 = vst.msk [vmem:[#allocation2] sm:$0xff] (!%p691_p9), %vm767_vm0, %v7161_v15  ;;  %6246 = vmatprep.mubr.msk.bf16.mxu0 (!%p691_p9), %vm7162_vm2, %v7161_v15  ;;  %vm1272_vm3 = vcmask (!%p691_p9), 130048   ;;  %vm1377_vm4 = vcmask (!%p691_p9), 1043456  }
  0x1e   : > { %940 = vst.msk [vmem:[#allocation2 + $0x8] sm:$0xff] (!%p691_p9), %vm767_vm0, %v7161_v15  ;;  %s8323_s6 = sld [smem:[#allocation19_spill]] (!%p691_p9)  ;;  %s8324_s29 = sld [smem:[#allocation20_spill]] (!%p691_p9)  ;;  %vm1333_vm6 = vcmask (!%p691_p9), 195584  }
  0x1f   : > { %s8325_s30 = sld [smem:[#allocation13_spill]] (!%p691_p9)  ;;  %s8326_s28 = sld [smem:[#allocation14_spill]] (!%p691_p9) }
  0x20   : > { %s8329_s26 = sld [smem:[#allocation18_spill]] (!%p691_p9) }
  0x23   : > { %v6828_v14 = vld [vmem:[%s8322_s0] sm:$0xff] (!%p691_p9)   ;;  %v6829_v16 = vld [vmem:[%s8322_s0 + $0x8] sm:$0xff] (!%p691_p9)   ;;  %v6830_v17 = vld [vmem:[%s8322_s0 + $0x10] sm:$0xff] (!%p691_p9)  }
  0x24   : > { %s758_s9 = scalar_select %p757_p10, %s7316_s7, 1  ;;  %6239 = vmatpush3.bf16.msra.mxu0 %v6828_v14  ;;  %v948_v18 = vld [vmem:[%s8323_s6] sm:$0x1]  ;;  %v6831_v21 = vld [vmem:[%s8322_s0 + $0x18] sm:$0xff]  }
  0x25   : > { %6240 = vmatprep.subr.bf16.mxu0 %v7161_v15  ;;  %v949_v19 = vld [vmem:[%s8324_s29] sm:$0x1]  ;;  %s8328_s29 = sld [smem:[#allocation17_spill]]  ;;  %s5973_s6 = sshll.u32 %s7316_s7, 4 }
  0x26   : > { %s5976_s5 = sshll.u32 %s758_s9, 4  ;;  %v950_v20 = vadd.f32 %v949_v19, %v948_v18  ;;  %v5520_v30 = vld [vmem:[%s8325_s30] ss:$0 sm:$0xff]  ;;  %s8327_s9 = sld [smem:[#allocation16_spill]] }
  0x27   : > { %s761_s8 = scalar_lea.vmem %s8321_s1, %s5976_s5  ;;  %v5521_v34 = vld [vmem:[%s8326_s28] ss:$0 sm:$0xff]  ;;  %s8330_s1 = sld [smem:[#allocation21_spill]] }
  0x28   : > { %v763_v0 = vld [vmem:[%s761_s8] sm:$0xff]  ;;  %v764_v1 = vld [vmem:[%s761_s8 + $0x8] sm:$0xff]  ;;  %6241 = vmatpush3.bf16.msra.mxu0 %v6829_v16  ;;  %952 = vst.msk [vmem:[#allocation2 + $0x10] sm:$0x1] %vm951_vm1, %v950_v20  ;;  %s755_s8 = sand.u32 1, %s7151_s2   ;;  %s8225_s0 = scalar_lea.hbm %s8293_s25, %s5973_s6 }
  0x29   : > { %v768_v2 = vsel %vm767_vm0, %v763_v0, 0.0  ;;  %v771_v3 = vsel %vm767_vm0, %v764_v1, 0.0  ;;  %6242 = vmatprep.subr.bf16.mxu0 %v7161_v15  ;;  %s756_s30 = scalar_lea.vmem [#allocation3], %s755_s8  ;;  %s7164_s7 = smov [#allocation3]  }
  0x2a   : > { %769 = vadd.xlane.f32.xlu0 %v768_v2  ;;  %s7101_s3 = sshll.u32 %s7164_s7, 4  ;;  %s7102_s3 = int_to_ptr.vmem [resolvable:$false] %s7101_s3 }
  0x2c   : > { %6243 = vmatpush3.bf16.msra.mxu0 %v6830_v17  ;;  %v5522_v39 = vld [vmem:[%s8327_s9] ss:$0 sm:$0xff]  ;;  %s5447_s9 = scalar_lea.sflag [#allocation4], %s755_s8 }
  0x2d   : > { %6244 = vmatprep.subr.bf16.mxu0 %v7161_v15 }
  0x2e   : > { %772 = vadd.xlane.f32.xlu0 %v771_v3 }
  0x2f   : > { %v955_v15 = vld [vmem:[#allocation2 + $0x10] sm:$0xff] }
  0x30   : > { %6245 = vmatpush3.bf16.msra.mxu0 %v6831_v21  ;;  %v968_v19 = vsel %vm767_vm0, %v955_v15, 0.0 }
  0xb7   : > { %v770_v4 = vpop.xlane.xlu0 %769 }
  0xb8   : > { %v775_v5 = vmul.f32 0.015625, %v770_v4  ;;  %v5529_v4 = vld [vmem:[%s8329_s26] ss:$0 sm:$0xff]  ;;  %s5459_s26 = sshll.u32 %s756_s30, 4  ;;  %s8227_s26 = int_to_ptr.vmem [resolvable:$true] %s5459_s26 }
  0xb9   : > { %s7097_s5 = scalar_lea.vmem %s8227_s26, 16  ;;  %p7104_p0 = scmp.lt.s32.totalorder %s8227_s26, %s7102_s3 }
  0xba   : > { %v777_v6 = vsub.f32 %v763_v0, %v775_v5  ;;  %p7098_p11 = scmp.ne.s32.totalorder %s8227_s26, %s7097_s5 }
  0xbb   : > { %v773_v7 = vpop.xlane.xlu0 %772 }
  0xbc   : > { %v776_v8 = vmul.f32 0.015625, %v773_v7  ;;  %v779_v9 = vmul.f32 %v777_v6, %v777_v6  ;;  %v942_v7 = vld [vmem:[%s8330_s1] sm:$0xff]  ;;  %p7099_p12 = pnand %p7098_p11, %p7333_p5 }
  0xbe   : > { %v778_v10 = vsub.f32 %v764_v1, %v776_v8  ;;  %v781_v11 = vsel %vm767_vm0, %v779_v9, 0.0  ;;  %v5528_v1 = vld [vmem:[%s8328_s29] ss:$0 sm:$0xff]  ;;  %p7100_p13 = pneg %p7099_p12  ;;  %s7103_s29 = scalar_lea.vmem %s7102_s3, 32 }
  0xbf   : > { %782 = vadd.xlane.f32.xlu1 %v781_v11  ;;  %p7105_p1 = scmp.lt.s32.totalorder %s7103_s29, %s7097_s5 }
  0xc0   : > { %v780_v12 = vmul.f32 %v778_v10, %v778_v10 }
  0xc1   : > { %p7106_p2 = por %p7105_p1, %p7104_p0 }
  0xc2   : > { %v784_v13 = vsel %vm767_vm0, %v780_v12, 0.0 }
  0xc3   : > { %785 = vadd.xlane.f32.xlu1 %v784_v13  ;;  %p7107_p3 = pnand %p7106_p2, %p7100_p13 }
 0x14c   : > { %v783_v22 = vpop.xlane.xlu1 %782 }
 0x14d   : > { %v787_v23 = vmul.f32 0.015625, %v783_v22 }
 0x14f   : > { %v789_v24 = vadd.f32 1e-05, %v787_v23 }
 0x150   : > { %v786_v25 = vpop.xlane.xlu1 %785 }
 0x151   : > { %6952 = vrsqrt.f32 %v789_v24  ;;  %v788_v26 = vmul.f32 0.015625, %v786_v25 }
 0x153   : > { %v790_v27 = vadd.f32 1e-05, %v788_v26 }
 0x155   : > { %6954 = vrsqrt.f32 %v790_v27 }
 0x15b   : > { %v6953_v28 = vpop.eup %6952 }
 0x15c   : > { %v793_v29 = vmul.f32 %v6953_v28, %v777_v6 }
 0x15e   : > { %v801_v33 = vmul.f32 %v5520_v30, %v793_v29 }
 0x15f   : > { %v6955_v31 = vpop.eup %6954 }
 0x160   : > { %v794_v32 = vmul.f32 %v6955_v31, %v778_v10  ;;  %v809_v36 = vadd.f32 %v5521_v34, %v801_v33  ;;  %v943_v10 = vld [vmem:[%s8330_s1 + $0x8] sm:$0xff] }
 0x162   : > { %v802_v35 = vmul.f32 %v5520_v30, %v794_v32 }
 0x164   : > { %v810_v37 = vadd.f32 %v5521_v34, %v802_v35  ;;  %v6832_v35 = vld [vmem:[%s8280_s12] sm:$0xff]  }
 0x165   : > { %6250 = vmatprep.subr.bf16.mxu1 %v6832_v35 }
 0x166   : > { %v819_v38 = vpack.c.bf16 %v810_v37, %v809_v36  ;;  %v6833_v36 = vld [vmem:[%s8281_s13] sm:$0xff]   ;;  %6251 = vmatpush3.bf16.msra.mxu1 %v6832_v35  ;;  %v6834_v37 = vld [vmem:[%s8280_s12 + $0x8] sm:$0xff]   ;;  %v6850_v35 = vld [vmem:[%s8282_s14 + $0x30] sm:$0xff]  }
 0x167   : > { %6262 = vmatprep.subr.bf16.mxu0 %v6833_v36  ;;  %6252 = vmatprep.subr.bf16.mxu1 %v6834_v37 }
 0x168   : > { %6247 = vmatmul.mubr.msk.bf16.vlgmr.msra.gmra.mrb[0].mxu0 %vm767_vm0, %v819_v38  ;;  %v6835_v38 = vld [vmem:[%s8281_s13 + $0x8] sm:$0xff]  }
 0x169   : > { %6263 = vmatpush3.bf16.msra.mxu0 %v6833_v36  ;;  %v6851_v36 = vld [vmem:[%s8282_s14 + $0x38] sm:$0xff]  }
 0x16a   : > { %6253 = vmatpush3.bf16.msra.mxu1 %v6834_v37  ;;  %6264 = vmatprep.subr.bf16.mxu0 %v6835_v38  ;;  %v956_v37 = vlaneseq }
 0x16d   : > { %6265 = vmatpush3.bf16.msra.mxu0 %v6835_v38  ;;  %v957_v38 = vand.u32 127, %v956_v37  ;;  %v6856_v37 = vld [vmem:[%s8281_s13 + $0x38] sm:$0xff]  }
 0x16f   : > { %vm958_vm5 = vcmp.lt.s32.totalorder %v957_v38, 17 }
 0x23b   : > { %v888_v40 = vpop.f32.mrb[0].mxu0 }
 0x23c   : > { %v889_v41 = vadd.f32 %v5522_v39, %v888_v40  ;;  %v6248_v42 = vpop.f32.mrb[1].mxu0  ;;  %v6837_v40 = vld [vmem:[%s8281_s13 + $0x10] sm:$0xff]  }
 0x23d   : > { %v891_v43 = vpop.f32.mrb[2].mxu0  ;;  %6266 = vmatprep.subr.bf16.mxu0 %v6837_v40  ;;  %v6839_v42 = vld [vmem:[%s8281_s13 + $0x18] sm:$0xff]  }
 0x23e   : > { %v892_v44 = vadd.f32 %v5522_v39, %v891_v43  ;;  %v6249_v45 = vpop.f32.mrb[3].mxu0  ;;  %v897_v46 = vsel %vm767_vm0, %v889_v41, 0.0  ;;  %v6836_v39 = vld [vmem:[%s8280_s12 + $0x10] sm:$0xff]   ;;  %6267 = vmatpush3.bf16.msra.mxu0 %v6837_v40  ;;  %v6840_v43 = vld [vmem:[%s8282_s14] sm:$0xff]  }
 0x23f   : > { %898 = vadd.xlane.f32.xlu0 %v897_v46  ;;  %6254 = vmatprep.subr.bf16.mxu1 %v6836_v39 }
 0x240   : > { %v900_v47 = vsel %vm767_vm0, %v892_v44, 0.0  ;;  %6255 = vmatpush3.bf16.msra.mxu1 %v6836_v39  ;;  %6268 = vmatprep.subr.bf16.mxu0 %v6839_v42  ;;  %v7163_v39 = vmov -1e+30  }
 0x241   : > { %901 = vadd.xlane.f32.xlu1 %v900_v47  ;;  %v7506_v40 = vsel %vm958_vm5, 0.0, %v7163_v39 }
 0x242   : > { %6269 = vmatpush3.bf16.msra.mxu0 %v6839_v42 }
 0x2cc   : > { %v899_v48 = vpop.xlane.xlu0 %898 }
 0x2cd   : > { %v903_v49 = vmul.f32 0.015625, %v899_v48 }
 0x2ce   : > { %v902_v50 = vpop.xlane.xlu1 %901 }
 0x2cf   : > { %v905_v51 = vsub.f32 %v889_v41, %v903_v49  ;;  %v904_v52 = vmul.f32 0.015625, %v902_v50  ;;  %v6838_v41 = vld [vmem:[%s8280_s12 + $0x18] sm:$0xff]  }
 0x2d0   : > { %6256 = vmatprep.subr.bf16.mxu1 %v6838_v41 }
 0x2d1   : > { %v906_v53 = vsub.f32 %v892_v44, %v904_v52  ;;  %v907_v54 = vmul.f32 %v905_v51, %v905_v51  ;;  %6257 = vmatpush3.bf16.msra.mxu1 %v6838_v41 }
 0x2d2   : > { %6274 = vmatprep.subr.bf16.mxu1 %v6840_v43 }
 0x2d3   : > { %v909_v55 = vsel %vm767_vm0, %v907_v54, 0.0  ;;  %v908_v56 = vmul.f32 %v906_v53, %v906_v53  ;;  %v5530_v54 = vld [vmem:[%s8278_s10] ss:$0 sm:$0xff] }
 0x2d4   : > { %910 = vadd.xlane.f32.xlu0 %v909_v55 }
 0x2d5   : > { %v912_v57 = vsel %vm767_vm0, %v908_v56, 0.0 }
 0x2d6   : > { %913 = vadd.xlane.f32.xlu1 %v912_v57 }
 0x361   : > { %v911_v58 = vpop.xlane.xlu0 %910 }
 0x362   : > { %v915_v59 = vmul.f32 0.015625, %v911_v58 }
 0x363   : > { %v914_v60 = vpop.xlane.xlu1 %913 }
 0x364   : > { %v917_v61 = vadd.f32 1e-05, %v915_v59  ;;  %v916_v62 = vmul.f32 0.015625, %v914_v60  ;;  %v5531_v60 = vld [vmem:[%s8279_s11] ss:$0 sm:$0xff] }
 0x366   : > { %6956 = vrsqrt.f32 %v917_v61  ;;  %v918_v63 = vadd.f32 1e-05, %v916_v62 }
 0x368   : > { %6958 = vrsqrt.f32 %v918_v63 }
 0x370   : > { %v6957_v0 = vpop.eup %6956 }
 0x371   : > { %v921_v2 = vmul.f32 %v6957_v0, %v905_v51 }
 0x372   : > { %v6959_v3 = vpop.eup %6958 }
 0x373   : > { %v929_v5 = vmul.f32 %v5528_v1, %v921_v2  ;;  %v922_v6 = vmul.f32 %v6959_v3, %v906_v53 }
 0x375   : > { %v937_v8 = vadd.f32 %v5529_v4, %v929_v5  ;;  %v930_v9 = vmul.f32 %v5528_v1, %v922_v6  ;;  %v6841_v5 = vld [vmem:[%s8282_s14 + $0x8] sm:$0xff]   ;;  %v6842_v6 = vld [vmem:[%s8282_s14 + $0x10] sm:$0xff]  }
 0x377   : > { %v944_v11 = vadd.f32 %v942_v7, %v937_v8  ;;  %v938_v12 = vadd.f32 %v5529_v4, %v930_v9  ;;  %v6843_v7 = vld [vmem:[%s8282_s14 + $0x18] sm:$0xff]  }
 0x379   : > { %946 = vst.msk [vmem:[#allocation2] sm:$0xff] %vm767_vm0, %v944_v11  ;;  %v945_v13 = vadd.f32 %v943_v10, %v938_v12 }
 0x37b   : > { %947 = vst.msk [vmem:[#allocation2 + $0x8] sm:$0xff] %vm767_vm0, %v945_v13 }
 0x380   : > { %v953_v14 = vld [vmem:[#allocation2] sm:$0xff] }
 0x381   : > { %v962_v16 = vsel %vm767_vm0, %v953_v14, 0.0 }
 0x382   : > { %963 = vadd.xlane.f32.xlu0 %v962_v16  ;;  %v954_v17 = vld [vmem:[#allocation2 + $0x8] sm:$0xff] }
 0x383   : > { %v965_v18 = vsel %vm767_vm0, %v954_v17, 0.0 }
 0x384   : > { %966 = vadd.xlane.f32.xlu1 %v965_v18 }
 0x386   : > { %969 = vadd.xlane.f32.xlu0 %v968_v19 }
 0x40f   : > { %v964_v20 = vpop.xlane.xlu0 %963 }
 0x410   : > { %v971_v21 = vmul.f32 0.015625, %v964_v20  ;;  %v6844_v20 = vld [vmem:[%s8280_s12 + $0x20] sm:$0xff]  }
 0x411   : > { %v967_v22 = vpop.xlane.xlu1 %966 }
 0x412   : > { %v974_v23 = vsub.f32 %v953_v14, %v971_v21  ;;  %v972_v24 = vmul.f32 0.015625, %v967_v22 }
 0x413   : > { %v970_v25 = vpop.xlane.xlu0 %969 }
 0x414   : > { %v975_v26 = vsub.f32 %v954_v17, %v972_v24  ;;  %v973_v27 = vmul.f32 0.015625, %v970_v25  ;;  %v977_v28 = vmul.f32 %v974_v23, %v974_v23 }
 0x416   : > { %v976_v29 = vsub.f32 %v955_v15, %v973_v27  ;;  %v980_v30 = vsel %vm767_vm0, %v977_v28, 0.0  ;;  %v978_v31 = vmul.f32 %v975_v26, %v975_v26  ;;  %v6845_v28 = vld [vmem:[%s8280_s12 + $0x28] sm:$0xff]  }
 0x417   : > { %981 = vadd.xlane.f32.xlu1 %v980_v30  ;;  %v6846_v30 = vld [vmem:[%s8280_s12 + $0x30] sm:$0xff]  }
 0x418   : > { %v983_v32 = vsel %vm767_vm0, %v978_v31, 0.0  ;;  %v979_v33 = vmul.f32 %v976_v29, %v976_v29 }
 0x419   : > { %984 = vadd.xlane.f32.xlu0 %v983_v32  ;;  %v6847_v32 = vld [vmem:[%s8280_s12 + $0x38] sm:$0xff]  }
 0x41a   : > { %v986_v34 = vsel %vm767_vm0, %v979_v33, 0.0  ;;  %v6848_v33 = vld [vmem:[%s8282_s14 + $0x20] sm:$0xff]  }
 0x41b   : > { %987 = vadd.xlane.f32.xlu1 %v986_v34  ;;  %v6849_v34 = vld [vmem:[%s8282_s14 + $0x28] sm:$0xff]  }
 0x4a4   : > { %v982_v44 = vpop.xlane.xlu1 %981 }
 0x4a5   : > { %v989_v45 = vmul.f32 0.015625, %v982_v44 }
 0x4a6   : > { %v985_v46 = vpop.xlane.xlu0 %984 }
 0x4a7   : > { %v992_v47 = vadd.f32 1e-05, %v989_v45  ;;  %v990_v48 = vmul.f32 0.015625, %v985_v46 }
 0x4a8   : > { %v988_v49 = vpop.xlane.xlu1 %987 }
 0x4a9   : > { %6960 = vrsqrt.f32 %v992_v47  ;;  %v993_v50 = vadd.f32 1e-05, %v990_v48  ;;  %v991_v51 = vmul.f32 0.015625, %v988_v49 }
 0x4ab   : > { %6962 = vrsqrt.f32 %v993_v50  ;;  %v994_v52 = vadd.f32 1e-05, %v991_v51 }
 0x4ad   : > { %6964 = vrsqrt.f32 %v994_v52 }
 0x4b3   : > { %v6961_v53 = vpop.eup %6960 }
 0x4b4   : > { %v998_v55 = vmul.f32 %v6961_v53, %v974_v23 }
 0x4b5   : > { %v6963_v56 = vpop.eup %6962 }
 0x4b6   : > { %v1007_v57 = vmul.f32 %v5530_v54, %v998_v55  ;;  %v999_v58 = vmul.f32 %v6963_v56, %v975_v26 }
 0x4b7   : > { %v6965_v59 = vpop.eup %6964 }
 0x4b8   : > { %v1008_v61 = vmul.f32 %v5530_v54, %v999_v58  ;;  %v1000_v62 = vmul.f32 %v6965_v59, %v976_v29  ;;  %v1016_v63 = vadd.f32 %v5531_v60, %v1007_v57 }
 0x4ba   : > { %v1017_v0 = vadd.f32 %v5531_v60, %v1008_v61  ;;  %v1009_v1 = vmul.f32 %v5530_v54, %v1000_v62 }
 0x4bc   : > { %v7441_v2 = vpack.c.bf16 %v1017_v0, %v1016_v63  ;;  %v1018_v3 = vadd.f32 %v5531_v60, %v1009_v1 }
 0x4be   : > { %v7443_v4 = vpack.c.bf16 %v1018_v3, %v1018_v3  ;;  %6258 = vmatprep.mubr.msk.bf16.mxu1 %vm767_vm0, %v7441_v2  ;;  %6270 = vmatprep.mubr.msk.bf16.mxu0 %vm767_vm0, %v7441_v2 }
 0x4c0   : > { %6259 = vmatmul.mubr.msk.bf16.vlgmr.msra.gmra.mrb[0].mxu1 %vm767_vm0, %v7443_v4  ;;  %6271 = vmatmul.mubr.msk.bf16.vlgmr.msra.gmra.mrb[4].mxu0 %vm767_vm0, %v7443_v4 }
 0x4c1   : > { %6275 = vmatpush3.bf16.msra.mxu1 %v6840_v43  ;;  %6282 = vmatprep.mubr.msk.bf16.mxu1 %vm767_vm0, %v7441_v2 }
 0x4c2   : > { %6276 = vmatprep.subr.bf16.mxu1 %v6841_v5 }
 0x4c5   : > { %6277 = vmatpush3.bf16.msra.mxu1 %v6841_v5 }
 0x4c6   : > { %6278 = vmatprep.subr.bf16.mxu1 %v6842_v6 }
 0x4c9   : > { %6279 = vmatpush3.bf16.msra.mxu1 %v6842_v6 }
 0x4ca   : > { %6280 = vmatprep.subr.bf16.mxu1 %v6843_v7 }
 0x4cd   : > { %6281 = vmatpush3.bf16.msra.mxu1 %v6843_v7 }
 0x4d0   : > { %6283 = vmatmul.mubr.msk.bf16.vlgmr.msra.gmra.mrb[4].mxu1 %vm767_vm0, %v7443_v4 }
 0x593   : > { %v6260_v8 = vpop.f32.mrb[0].mxu1  ;;  %v6272_v9 = vpop.f32.mrb[4].mxu0 }
 0x594   : > { %v1094_v10 = vpop.f32.mrb[1].mxu1  ;;  %v1174_v11 = vpop.f32.mrb[5].mxu0  ;;  %v1271_v18 = vpack.c.bf16 %v6272_v9, %v6272_v9  ;;  %v1269_v26 = vpack.c.bf16 %v6260_v8, %v6260_v8 }
 0x595   : > { %v6261_v12 = vpop.f32.mrb[2].mxu1  ;;  %v6273_v13 = vpop.f32.mrb[6].mxu0 }
 0x596   : > { %v1097_v14 = vpop.f32.mrb[3].mxu1  ;;  %v1177_v15 = vpop.f32.mrb[7].mxu0  ;;  %v1283_v21 = vsel %vm1272_vm3, %v1271_v18, 0 }
 0x597   : > { %v1268_v16 = vpack.c.bf16 %v1097_v14, %v1094_v10  ;;  %v1270_v17 = vpack.c.bf16 %v1177_v15, %v1174_v11 }
 0x599   : > { %v1280_v19 = vsel %vm1272_vm3, %v1270_v17, 0  ;;  %6762 = vmatprep.subr.msk.bf16.mxu0 %vm1272_vm3, %v1270_v17  ;;  %6290 = vmatprep.mubr.msk.bf16.mxu0 %vm1272_vm3, %v1268_v16  ;;  %v6852_v16 = vld [vmem:[%s8283_s15] sm:$0xff]  }
 0x59a   : > { %6287 = vmatpush3.bf16.xpose.msra.mxu0 %v1280_v19 }
 0x59b   : > { %6763 = vmatprep.subr.msk.bf16.mxu0 %vm1272_vm3, %v1271_v18 }
 0x5a2   : > { %6289 = vmatpush3.bf16.xpose.msra.mxu0 %v1283_v21 }
 0x5a3   : > { %v6284_v22 = vpop.f32.mrb[4].mxu1  ;;  %6308 = vmatprep.subr.bf16.mxu0 %v6844_v20 }
 0x5a4   : > { %v1254_v23 = vpop.f32.mrb[5].mxu1  ;;  %v1370_v29 = vpack.c.bf16 %v6284_v22, %v6284_v22 }
 0x5a5   : > { %v6285_v24 = vpop.f32.mrb[6].mxu1 }
 0x5a6   : > { %v1257_v25 = vpop.f32.mrb[7].mxu1  ;;  %v1379_v31 = vsel %vm1377_vm4, %v1370_v29, 0 }
 0x5a7   : > { %v1369_v27 = vpack.c.bf16 %v1257_v25, %v1254_v23 }
 0x5a9   : > { %6294 = vmatprep.subr.bf16.mxu1 %v1369_v27  ;;  %6291 = vmatmul.mubr.msk.bf16.vlgmr.msra.gmra.mrb[8].mxu0 %vm1272_vm3, %v1269_v26 }
 0x5aa   : > { %6295 = vmatpush3.bf16.msra.mxu1 %v1369_v27  ;;  %6309 = vmatpush3.bf16.msra.mxu0 %v6844_v20 }
 0x5ab   : > { %6764 = vmatprep.subr.msk.bf16.mxu1 %vm1377_vm4, %v1370_v29  ;;  %6316 = vmatprep.mubr.msk.bf16.mxu0 %vm767_vm0, %v7441_v2 }
 0x5ac   : > { %6310 = vmatprep.subr.bf16.mxu0 %v6845_v28 }
 0x5ae   : > { %6297 = vmatpush3.bf16.msra.mxu1 %v1379_v31  ;;  %6311 = vmatpush3.bf16.msra.mxu0 %v6845_v28  ;;  %v6853_v28 = vld [vmem:[%s8281_s13 + $0x20] sm:$0xff]  }
 0x5af   : > { %6312 = vmatprep.subr.bf16.mxu0 %v6846_v30  ;;  %6302 = vmatprep.subr.bf16.mxu1 %v6852_v16 }
 0x5b2   : > { %6313 = vmatpush3.bf16.msra.mxu0 %v6846_v30 }
 0x5b3   : > { %6314 = vmatprep.subr.bf16.mxu0 %v6847_v32 }
 0x5b6   : > { %6315 = vmatpush3.bf16.msra.mxu0 %v6847_v32 }
 0x5b7   : > { %6332 = vmatprep.subr.bf16.mxu0 %v6848_v33 }
 0x5b9   : > { %6317 = vmatmul.mubr.msk.bf16.vlgmr.msra.gmra.mrb[12].mxu0 %vm767_vm0, %v7443_v4 }
 0x5ba   : > { %6333 = vmatpush3.bf16.msra.mxu0 %v6848_v33  ;;  %6340 = vmatprep.mubr.msk.bf16.mxu0 %vm767_vm0, %v7441_v2 }
 0x5bb   : > { %6334 = vmatprep.subr.bf16.mxu0 %v6849_v34 }
 0x5be   : > { %6335 = vmatpush3.bf16.msra.mxu0 %v6849_v34 }
 0x5bf   : > { %6336 = vmatprep.subr.bf16.mxu0 %v6850_v35 }
 0x5c2   : > { %6337 = vmatpush3.bf16.msra.mxu0 %v6850_v35  ;;  %v6854_v35 = vld [vmem:[%s8281_s13 + $0x28] sm:$0xff]  }
 0x5c3   : > { %6338 = vmatprep.subr.bf16.mxu0 %v6851_v36 }
 0x5c6   : > { %6339 = vmatpush3.bf16.msra.mxu0 %v6851_v36  ;;  %v6855_v36 = vld [vmem:[%s8281_s13 + $0x30] sm:$0xff]  }
 0x5c9   : > { %6341 = vmatmul.mubr.msk.bf16.vlgmr.msra.gmra.mrb[16].mxu0 %vm767_vm0, %v7443_v4 }
 0x67c   : > { %v6292_v41 = vpop.f32.mrb[8].mxu0 }
 0x67d   : > { %v1319_v42 = vpop.f32.mrb[9].mxu0  ;;  %v1328_v46 = vadd.f32 %v6292_v41, %v7506_v40 }
 0x67e   : > { %v1320_v43 = vadd.f32 %v1319_v42, %v7506_v40  ;;  %v6293_v44 = vpop.f32.mrb[10].mxu0 }
 0x67f   : > { %v1322_v45 = vpop.f32.mrb[11].mxu0  ;;  %v1340_v50 = vsel %vm1333_vm6, %v1328_v46, -inf }
 0x680   : > { %v1323_v47 = vadd.f32 %v1322_v45, %v7506_v40  ;;  %v1334_v48 = vsel %vm1333_vm6, %v1320_v43, -inf }
 0x681   : > { %1335 = vmax.xlane.f32.xlu0 %v1334_v48 }
 0x682   : > { %v1337_v49 = vsel %vm1333_vm6, %v1323_v47, -inf }
 0x683   : > { %1338 = vmax.xlane.f32.xlu1 %v1337_v49 }
 0x685   : > { %1341 = vmax.xlane.f32.xlu0 %v1340_v50 }
 0x68c   : > { %v7514_v51 = vpop.f32.mrb[12].mxu0 }
 0x68d   : > { %v7516_v52 = vpop.f32.mrb[13].mxu0 }
 0x68e   : > { %v6319_v53 = vpop.f32.mrb[14].mxu0 }
 0x68f   : > { %v7518_v54 = vpop.f32.mrb[15].mxu0 }
 0x690   : > { %v1745_v55 = vpack.c.bf16 %v7518_v54, %v7516_v52  ;;  %v1746_v52 = vpack.c.bf16 %v7514_v51, %v7514_v51 }
 0x69c   : > { %v6342_v56 = vpop.f32.mrb[16].mxu0 }
 0x69d   : > { %v1731_v57 = vpop.f32.mrb[17].mxu0  ;;  %v1845_v61 = vpack.c.bf16 %v6342_v56, %v6342_v56 }
 0x69e   : > { %v6343_v58 = vpop.f32.mrb[18].mxu0 }
 0x69f   : > { %v1734_v59 = vpop.f32.mrb[19].mxu0  ;;  %v1853_v62 = vsel %vm1377_vm4, %v1845_v61, 0 }
 0x6a0   : > { %v1844_v60 = vpack.c.bf16 %v1734_v59, %v1731_v57 }
 0x6a2   : > { %6352 = vmatprep.subr.bf16.mxu0 %v1844_v60 }
 0x6a3   : > { %6353 = vmatpush3.bf16.msra.mxu0 %v1844_v60 }
 0x6a4   : > { %6767 = vmatprep.subr.msk.bf16.mxu0 %vm1377_vm4, %v1845_v61 }
 0x6a7   : > { %6355 = vmatpush3.bf16.msra.mxu0 %v1853_v62 }
 0x70e   : > { %v1336_v63 = vpop.xlane.xlu0 %1335 }
 0x70f   : > { %v1343_v0 = vsub.f32 %v1320_v43, %v1336_v63 }
 0x710   : > { %v1339_v1 = vpop.xlane.xlu1 %1338 }
 0x711   : > { %v1346_v3 = vmul.f32 1.442695, %v1343_v0  ;;  %v1344_v5 = vsub.f32 %v1323_v47, %v1339_v1 }
 0x712   : > { %v1342_v6 = vpop.xlane.xlu0 %1341 }
 0x713   : > { %6966 = vpow2.f32 %v1346_v3  ;;  %v1348_v7 = vmul.f32 1.442695, %v1344_v5  ;;  %v1345_v8 = vsub.f32 %v1328_v46, %v1342_v6 }
 0x715   : > { %6968 = vpow2.f32 %v1348_v7  ;;  %v1350_v9 = vmul.f32 1.442695, %v1345_v8 }
 0x717   : > { %6970 = vpow2.f32 %v1350_v9 }
 0x71d   : > { %v6967_v10 = vpop.eup %6966 }
 0x71e   : > { %v1352_v11 = vsel %vm1333_vm6, %v6967_v10, 0.0 }
 0x71f   : > { %v6969_v12 = vpop.eup %6968  ;;  %1353 = vadd.xlane.f32.xlu1 %v1352_v11 }
 0x720   : > { %v1355_v13 = vsel %vm1333_vm6, %v6969_v12, 0.0 }
 0x721   : > { %v6971_v14 = vpop.eup %6970  ;;  %1356 = vadd.xlane.f32.xlu0 %v1355_v13 }
 0x722   : > { %v1358_v15 = vsel %vm1333_vm6, %v6971_v14, 0.0 }
 0x723   : > { %1359 = vadd.xlane.f32.xlu1 %v1358_v15  ;;  %v6857_v15 = vld [vmem:[%s8280_s12 + $0x40] sm:$0xff]  }
 0x724   : > { %6366 = vmatprep.subr.bf16.mxu0 %v6857_v15 }
 0x7ac   : > { %v1354_v17 = vpop.xlane.xlu1 %1353 }
 0x7ad   : > { %6972 = vrcp.f32 %v1354_v17 }
 0x7ae   : > { %v1357_v18 = vpop.xlane.xlu0 %1356 }
 0x7af   : > { %6974 = vrcp.f32 %v1357_v18 }
 0x7b0   : > { %v1360_v19 = vpop.xlane.xlu1 %1359 }
 0x7b1   : > { %6976 = vrcp.f32 %v1360_v19 }
 0x7b7   : > { %v6973_v20 = vpop.eup %6972 }
 0x7b8   : > { %v1364_v22 = vmul.f32 %v6973_v20, %v6967_v10 }
 0x7b9   : > { %v6975_v21 = vpop.eup %6974 }
 0x7ba   : > { %v1365_v23 = vmul.f32 %v6975_v21, %v6969_v12 }
 0x7bb   : > { %v6977_v24 = vpop.eup %6976 }
 0x7bc   : > { %v1366_v25 = vmul.f32 %v6977_v24, %v6971_v14  ;;  %v1367_v26 = vpack.c.bf16 %v1365_v23, %v1364_v22 }
 0x7be   : > { %6298 = vmatprep.mubr.msk.bf16.mxu1 %vm1333_vm6, %v1367_v26  ;;  %v1368_v27 = vpack.c.bf16 %v1366_v25, %v1366_v25 }
 0x7c0   : > { %6299 = vmatmul.mubr.msk.bf16.vlgmr.msra.gmra.mrb[8].mxu1 %vm1333_vm6, %v1368_v27 }
 0x7c1   : > { %6303 = vmatpush3.bf16.msra.mxu1 %v6852_v16  ;;  %v6865_v16 = vld [vmem:[%s8283_s15 + $0x8] sm:$0xff]  }
 0x7c2   : > { %6320 = vmatprep.subr.bf16.mxu1 %v6853_v28 }
 0x893   : > { %v6300_v29 = vpop.f32.mrb[8].mxu1 }
 0x894   : > { %v1415_v30 = vpop.f32.mrb[9].mxu1  ;;  %v1430_v34 = vpack.c.bf16 %v6300_v29, %v6300_v29  ;;  %v6859_v29 = vld [vmem:[%s8280_s12 + $0x50] sm:$0xff]  }
 0x895   : > { %v6301_v31 = vpop.f32.mrb[10].mxu1 }
 0x896   : > { %v1418_v32 = vpop.f32.mrb[11].mxu1  ;;  %v6861_v31 = vld [vmem:[%s8282_s14 + $0x40] sm:$0xff]  }
 0x897   : > { %v1429_v33 = vpack.c.bf16 %v1418_v32, %v1415_v30  ;;  %v6860_v30 = vld [vmem:[%s8280_s12 + $0x58] sm:$0xff]   ;;  %v6862_v32 = vld [vmem:[%s8282_s14 + $0x48] sm:$0xff]  }
 0x899   : > { %6304 = vmatprep.mubr.msk.bf16.mxu1 %vm1272_vm3, %v1429_v33  ;;  %v6863_v33 = vld [vmem:[%s8282_s14 + $0x50] sm:$0xff]  }
 0x89a   : > { %6305 = vmatmul.mubr.msk.bf16.vlgmr.msra.gmra.mrb[12].mxu1 %vm1272_vm3, %v1430_v34  ;;  %v6864_v34 = vld [vmem:[%s8282_s14 + $0x58] sm:$0xff]  }
 0x89b   : > { %6321 = vmatpush3.bf16.msra.mxu1 %v6853_v28  ;;  %6328 = vmatprep.mubr.msk.bf16.mxu1 %vm767_vm0, %v7441_v2  ;;  %v6858_v28 = vld [vmem:[%s8280_s12 + $0x48] sm:$0xff]  }
 0x89c   : > { %6322 = vmatprep.subr.bf16.mxu1 %v6854_v35 }
 0x89f   : > { %6323 = vmatpush3.bf16.msra.mxu1 %v6854_v35  ;;  %v6866_v35 = vld [vmem:[%s8281_s13 + $0x40] sm:$0xff]  }
 0x8a0   : > { %6324 = vmatprep.subr.bf16.mxu1 %v6855_v36 }
 0x8a3   : > { %6325 = vmatpush3.bf16.msra.mxu1 %v6855_v36 }
 0x8a4   : > { %6326 = vmatprep.subr.bf16.mxu1 %v6856_v37 }
 0x8a7   : > { %6327 = vmatpush3.bf16.msra.mxu1 %v6856_v37 }
 0x8aa   : > { %6329 = vmatmul.mubr.msk.bf16.vlgmr.msra.gmra.mrb[16].mxu1 %vm767_vm0, %v7443_v4 }
 0x8ab   : > { %6348 = vmatprep.mubr.msk.bf16.mxu1 %vm1272_vm3, %v1745_v55 }
 0x96d   : > { %v7554_v38 = vpop.f32.mrb[12].mxu1 }
 0x96e   : > { %v7556_v39 = vpop.f32.mrb[13].mxu1 }
 0x96f   : > { %v6307_v41 = vpop.f32.mrb[14].mxu1 }
 0x970   : > { %v7558_v42 = vpop.f32.mrb[15].mxu1 }
 0x97d   : > { %v6330_v43 = vpop.f32.mrb[16].mxu1 }
 0x97e   : > { %v1650_v44 = vpop.f32.mrb[17].mxu1  ;;  %v1748_v48 = vpack.c.bf16 %v6330_v43, %v6330_v43 }
 0x97f   : > { %v6331_v45 = vpop.f32.mrb[18].mxu1 }
 0x980   : > { %v1653_v46 = vpop.f32.mrb[19].mxu1  ;;  %v1759_v50 = vsel %vm1272_vm3, %v1748_v48, 0 }
 0x981   : > { %v1747_v47 = vpack.c.bf16 %v1653_v46, %v1650_v44  ;;  %v6867_v46 = vld [vmem:[%s8281_s13 + $0x48] sm:$0xff]  }
 0x983   : > { %v1756_v49 = vsel %vm1272_vm3, %v1747_v47, 0  ;;  %6765 = vmatprep.subr.msk.bf16.mxu1 %vm1272_vm3, %v1747_v47  ;;  %v6868_v47 = vld [vmem:[%s8281_s13 + $0x50] sm:$0xff]  }
 0x984   : > { %6345 = vmatpush3.bf16.xpose.msra.mxu1 %v1756_v49 }
 0x985   : > { %6766 = vmatprep.subr.msk.bf16.mxu1 %vm1272_vm3, %v1748_v48  ;;  %v6869_v48 = vld [vmem:[%s8281_s13 + $0x58] sm:$0xff]  }
 0x98c   : > { %6347 = vmatpush3.bf16.xpose.msra.mxu1 %v1759_v50 }
 0x98d   : > { %6360 = vmatprep.subr.bf16.mxu1 %v6865_v16 }
 0x993   : > { %6349 = vmatmul.mubr.msk.bf16.vlgmr.msra.gmra.mrb[20].mxu1 %vm1272_vm3, %v1746_v52 }
 0x994   : > { %6361 = vmatpush3.bf16.msra.mxu1 %v6865_v16 }
 0x995   : > { %6378 = vmatprep.subr.bf16.mxu1 %v6866_v35 }
 0xa66   : > { %v6350_v53 = vpop.f32.mrb[20].mxu1 }
 0xa67   : > { %v1795_v54 = vpop.f32.mrb[21].mxu1  ;;  %v1804_v58 = vadd.f32 %v6350_v53, %v7506_v40 }
 0xa68   : > { %v1796_v55 = vadd.f32 %v1795_v54, %v7506_v40  ;;  %v6351_v56 = vpop.f32.mrb[22].mxu1 }
 0xa69   : > { %v1798_v57 = vpop.f32.mrb[23].mxu1  ;;  %v1815_v51 = vsel %vm1333_vm6, %v1804_v58, -inf }
 0xa6a   : > { %v1799_v59 = vadd.f32 %v1798_v57, %v7506_v40  ;;  %v1809_v60 = vsel %vm1333_vm6, %v1796_v55, -inf }
 0xa6b   : > { %1810 = vmax.xlane.f32.xlu0 %v1809_v60 }
 0xa6c   : > { %v1812_v61 = vsel %vm1333_vm6, %v1799_v59, -inf }
 0xa6d   : > { %1813 = vmax.xlane.f32.xlu1 %v1812_v61 }
 0xa6f   : > { %1816 = vmax.xlane.f32.xlu0 %v1815_v51  ;;  %v5557_v51 = vld [vmem:[%s8284_s16] ss:$0 sm:$0xff] }
 0xaf8   : > { %v1811_v62 = vpop.xlane.xlu0 %1810 }
 0xaf9   : > { %v1818_v63 = vsub.f32 %v1796_v55, %v1811_v62  ;;  %v1501_v62 = vadd.f32 %v7554_v38, %v5557_v51 }
 0xafa   : > { %v1814_v0 = vpop.xlane.xlu1 %1813 }
 0xafb   : > { %v1821_v1 = vmul.f32 1.442695, %v1818_v63  ;;  %v1819_v3 = vsub.f32 %v1799_v59, %v1814_v0  ;;  %v1499_v63 = vadd.f32 %v5557_v51, %v7556_v39 }
 0xafc   : > { %v1817_v5 = vpop.xlane.xlu0 %1816 }
 0xafd   : > { %6978 = vpow2.f32 %v1821_v1  ;;  %v1823_v6 = vmul.f32 1.442695, %v1819_v3  ;;  %v1820_v7 = vsub.f32 %v1804_v58, %v1817_v5  ;;  %v1500_v5 = vadd.f32 %v5557_v51, %v7558_v42  ;;  %v6874_v51 = vld [vmem:[%s8282_s14 + $0x60] sm:$0xff]  }
 0xaff   : > { %6980 = vpow2.f32 %v1823_v6  ;;  %v1825_v8 = vmul.f32 1.442695, %v1820_v7 }
 0xb01   : > { %6982 = vpow2.f32 %v1825_v8 }
 0xb07   : > { %v6979_v9 = vpop.eup %6978 }
 0xb08   : > { %v1827_v10 = vsel %vm1333_vm6, %v6979_v9, 0.0 }
 0xb09   : > { %v6981_v11 = vpop.eup %6980  ;;  %1828 = vadd.xlane.f32.xlu1 %v1827_v10 }
 0xb0a   : > { %v1830_v12 = vsel %vm1333_vm6, %v6981_v11, 0.0 }
 0xb0b   : > { %v6983_v13 = vpop.eup %6982  ;;  %1831 = vadd.xlane.f32.xlu0 %v1830_v12 }
 0xb0c   : > { %v1833_v14 = vsel %vm1333_vm6, %v6983_v13, 0.0 }
 0xb0d   : > { %1834 = vadd.xlane.f32.xlu1 %v1833_v14 }
 0xb96   : > { %v1829_v17 = vpop.xlane.xlu1 %1828 }
 0xb97   : > { %6984 = vrcp.f32 %v1829_v17 }
 0xb98   : > { %v1832_v18 = vpop.xlane.xlu0 %1831 }
 0xb99   : > { %6986 = vrcp.f32 %v1832_v18 }
 0xb9a   : > { %v1835_v19 = vpop.xlane.xlu1 %1834 }
 0xb9b   : > { %6988 = vrcp.f32 %v1835_v19 }
 0xba1   : > { %v6985_v20 = vpop.eup %6984 }
 0xba2   : > { %v1839_v22 = vmul.f32 %v6985_v20, %v6979_v9 }
 0xba3   : > { %v6987_v21 = vpop.eup %6986 }
 0xba4   : > { %v1840_v23 = vmul.f32 %v6987_v21, %v6981_v11 }
 0xba5   : > { %v6989_v24 = vpop.eup %6988 }
 0xba6   : > { %v1841_v25 = vmul.f32 %v6989_v24, %v6983_v13  ;;  %v1842_v26 = vpack.c.bf16 %v1840_v23, %v1839_v22 }
 0xba8   : > { %6356 = vmatprep.mubr.msk.bf16.mxu0 %vm1333_vm6, %v1842_v26  ;;  %v1843_v27 = vpack.c.bf16 %v1841_v25, %v1841_v25 }
 0xbaa   : > { %6357 = vmatmul.mubr.msk.bf16.vlgmr.msra.gmra.mrb[20].mxu0 %vm1333_vm6, %v1843_v27 }
 0xbab   : > { %6367 = vmatpush3.bf16.msra.mxu0 %v6857_v15  ;;  %6374 = vmatprep.mubr.msk.bf16.mxu0 %vm767_vm0, %v7441_v2 }
 0xbac   : > { %6368 = vmatprep.subr.bf16.mxu0 %v6858_v28 }
 0xbaf   : > { %6369 = vmatpush3.bf16.msra.mxu0 %v6858_v28 }
 0xbb0   : > { %6370 = vmatprep.subr.bf16.mxu0 %v6859_v29 }
 0xbb3   : > { %6371 = vmatpush3.bf16.msra.mxu0 %v6859_v29 }
 0xbb4   : > { %6372 = vmatprep.subr.bf16.mxu0 %v6860_v30 }
 0xbb7   : > { %6373 = vmatpush3.bf16.msra.mxu0 %v6860_v30 }
 0xbb8   : > { %6390 = vmatprep.subr.bf16.mxu0 %v6861_v31 }
 0xbba   : > { %6375 = vmatmul.mubr.msk.bf16.vlgmr.msra.gmra.mrb[24].mxu0 %vm767_vm0, %v7443_v4 }
 0xbbb   : > { %6391 = vmatpush3.bf16.msra.mxu0 %v6861_v31  ;;  %6398 = vmatprep.mubr.msk.bf16.mxu0 %vm767_vm0, %v7441_v2 }
 0xbbc   : > { %6392 = vmatprep.subr.bf16.mxu0 %v6862_v32 }
 0xbbf   : > { %6393 = vmatpush3.bf16.msra.mxu0 %v6862_v32 }
 0xbc0   : > { %6394 = vmatprep.subr.bf16.mxu0 %v6863_v33 }
 0xbc3   : > { %6395 = vmatpush3.bf16.msra.mxu0 %v6863_v33 }
 0xbc4   : > { %6396 = vmatprep.subr.bf16.mxu0 %v6864_v34 }
 0xbc7   : > { %6397 = vmatpush3.bf16.msra.mxu0 %v6864_v34 }
 0xbca   : > { %6399 = vmatmul.mubr.msk.bf16.vlgmr.msra.gmra.mrb[28].mxu0 %vm767_vm0, %v7443_v4 }
 0xc7d   : > { %v6358_v36 = vpop.f32.mrb[20].mxu0 }
 0xc7e   : > { %v1889_v37 = vpop.f32.mrb[21].mxu0  ;;  %v1904_v45 = vpack.c.bf16 %v6358_v36, %v6358_v36 }
 0xc7f   : > { %v6359_v41 = vpop.f32.mrb[22].mxu0 }
 0xc80   : > { %v1892_v43 = vpop.f32.mrb[23].mxu0 }
 0xc81   : > { %v1903_v44 = vpack.c.bf16 %v1892_v43, %v1889_v37 }
 0xc83   : > { %6362 = vmatprep.mubr.msk.bf16.mxu1 %vm1272_vm3, %v1903_v44 }
 0xc84   : > { %6363 = vmatmul.mubr.msk.bf16.vlgmr.msra.gmra.mrb[24].mxu1 %vm1272_vm3, %v1904_v45  ;;  %v6870_v45 = vld [vmem:[%s8280_s12 + $0x60] sm:$0xff]  }
 0xc85   : > { %6379 = vmatpush3.bf16.msra.mxu1 %v6866_v35  ;;  %6386 = vmatprep.mubr.msk.bf16.mxu1 %vm767_vm0, %v7441_v2 }
 0xc86   : > { %6380 = vmatprep.subr.bf16.mxu1 %v6867_v46 }
 0xc89   : > { %6381 = vmatpush3.bf16.msra.mxu1 %v6867_v46  ;;  %v6878_v46 = vld [vmem:[%s8283_s15 + $0x10] sm:$0xff]  }
 0xc8a   : > { %6382 = vmatprep.subr.bf16.mxu1 %v6868_v47 }
 0xc8d   : > { %v6376_v49 = vpop.f32.mrb[24].mxu0  ;;  %6383 = vmatpush3.bf16.msra.mxu1 %v6868_v47 }
 0xc8e   : > { %v2038_v50 = vpop.f32.mrb[25].mxu0  ;;  %6384 = vmatprep.subr.bf16.mxu1 %v6869_v48  ;;  %v2215_v15 = vpack.c.bf16 %v6376_v49, %v6376_v49 }
 0xc8f   : > { %v6377_v52 = vpop.f32.mrb[26].mxu0 }
 0xc90   : > { %v2041_v53 = vpop.f32.mrb[27].mxu0 }
 0xc91   : > { %v2214_v54 = vpack.c.bf16 %v2041_v53, %v2038_v50  ;;  %6385 = vmatpush3.bf16.msra.mxu1 %v6869_v48 }
 0xc94   : > { %6387 = vmatmul.mubr.msk.bf16.vlgmr.msra.gmra.mrb[28].mxu1 %vm767_vm0, %v7443_v4 }
 0xc95   : > { %6406 = vmatprep.mubr.msk.bf16.mxu1 %vm1272_vm3, %v2214_v54 }
 0xc9d   : > { %v6400_v55 = vpop.f32.mrb[28].mxu0 }
 0xc9e   : > { %v2200_v56 = vpop.f32.mrb[29].mxu0  ;;  %v2314_v60 = vpack.c.bf16 %v6400_v55, %v6400_v55 }
 0xc9f   : > { %v6401_v57 = vpop.f32.mrb[30].mxu0 }
 0xca0   : > { %v2203_v58 = vpop.f32.mrb[31].mxu0  ;;  %v2322_v61 = vsel %vm1377_vm4, %v2314_v60, 0 }
 0xca1   : > { %v2313_v59 = vpack.c.bf16 %v2203_v58, %v2200_v56 }
 0xca3   : > { %6410 = vmatprep.subr.bf16.mxu0 %v2313_v59 }
 0xca4   : > { %6411 = vmatpush3.bf16.msra.mxu0 %v2313_v59  ;;  %v6871_v59 = vld [vmem:[%s8280_s12 + $0x68] sm:$0xff]  }
 0xca5   : > { %6770 = vmatprep.subr.msk.bf16.mxu0 %vm1377_vm4, %v2314_v60  ;;  %v6872_v60 = vld [vmem:[%s8280_s12 + $0x70] sm:$0xff]  }
 0xca8   : > { %6413 = vmatpush3.bf16.msra.mxu0 %v2322_v61  ;;  %v6873_v61 = vld [vmem:[%s8280_s12 + $0x78] sm:$0xff]  }
 0xca9   : > { %6424 = vmatprep.subr.bf16.mxu0 %v6870_v45 }
 0xd57   : > { %v6364_v0 = vpop.f32.mrb[24].mxu1 }
 0xd58   : > { %v7639_v1 = vadd.f32 %v6364_v0, %v1501_v62  ;;  %v1954_v3 = vpop.f32.mrb[25].mxu1  ;;  %v6875_v62 = vld [vmem:[%s8282_s14 + $0x68] sm:$0xff]   ;;  %v6877_v0 = vld [vmem:[%s8282_s14 + $0x78] sm:$0xff]  }
 0xd59   : > { %v7642_v6 = vadd.f32 %v1954_v3, %v1499_v63  ;;  %v6365_v7 = vpop.f32.mrb[26].mxu1  ;;  %v6876_v63 = vld [vmem:[%s8282_s14 + $0x70] sm:$0xff]   ;;  %v6879_v3 = vld [vmem:[%s8281_s13 + $0x60] sm:$0xff]  }
 0xd5a   : > { %v1957_v8 = vpop.f32.mrb[27].mxu1 }
 0xd5b   : > { %v7644_v9 = vadd.f32 %v1957_v8, %v1500_v5 }
 0xd67   : > { %v6388_v10 = vpop.f32.mrb[28].mxu1 }
 0xd68   : > { %v2119_v11 = vpop.f32.mrb[29].mxu1  ;;  %v2217_v38 = vpack.c.bf16 %v6388_v10, %v6388_v10 }
 0xd69   : > { %v6389_v12 = vpop.f32.mrb[30].mxu1 }
 0xd6a   : > { %v2122_v13 = vpop.f32.mrb[31].mxu1  ;;  %v2228_v42 = vsel %vm1272_vm3, %v2217_v38, 0 }
 0xd6b   : > { %v2216_v14 = vpack.c.bf16 %v2122_v13, %v2119_v11  ;;  %v6880_v13 = vld [vmem:[%s8281_s13 + $0x68] sm:$0xff]  }
 0xd6d   : > { %v2225_v39 = vsel %vm1272_vm3, %v2216_v14, 0  ;;  %6768 = vmatprep.subr.msk.bf16.mxu1 %vm1272_vm3, %v2216_v14  ;;  %v6881_v14 = vld [vmem:[%s8281_s13 + $0x70] sm:$0xff]  }
 0xd6e   : > { %6403 = vmatpush3.bf16.xpose.msra.mxu1 %v2225_v39 }
 0xd6f   : > { %6769 = vmatprep.subr.msk.bf16.mxu1 %vm1272_vm3, %v2217_v38  ;;  %v6882_v38 = vld [vmem:[%s8281_s13 + $0x78] sm:$0xff]  }
 0xd76   : > { %6405 = vmatpush3.bf16.xpose.msra.mxu1 %v2228_v42 }
 0xd77   : > { %6418 = vmatprep.subr.bf16.mxu1 %v6878_v46 }
 0xd7d   : > { %6407 = vmatmul.mubr.msk.bf16.vlgmr.msra.gmra.mrb[32].mxu1 %vm1272_vm3, %v2215_v15 }
 0xd7e   : > { %6419 = vmatpush3.bf16.msra.mxu1 %v6878_v46 }
 0xd7f   : > { %6436 = vmatprep.subr.bf16.mxu1 %v6879_v3 }
 0xe50   : > { %v6408_v16 = vpop.f32.mrb[32].mxu1 }
 0xe51   : > { %v2264_v17 = vpop.f32.mrb[33].mxu1  ;;  %v2273_v21 = vadd.f32 %v6408_v16, %v7506_v40 }
 0xe52   : > { %v2265_v18 = vadd.f32 %v2264_v17, %v7506_v40  ;;  %v6409_v19 = vpop.f32.mrb[34].mxu1 }
 0xe53   : > { %v2267_v20 = vpop.f32.mrb[35].mxu1  ;;  %v2284_v25 = vsel %vm1333_vm6, %v2273_v21, -inf }
 0xe54   : > { %v2268_v22 = vadd.f32 %v2267_v20, %v7506_v40  ;;  %v2278_v23 = vsel %vm1333_vm6, %v2265_v18, -inf }
 0xe55   : > { %2279 = vmax.xlane.f32.xlu0 %v2278_v23 }
 0xe56   : > { %v2281_v24 = vsel %vm1333_vm6, %v2268_v22, -inf }
 0xe57   : > { %2282 = vmax.xlane.f32.xlu1 %v2281_v24 }
 0xe59   : > { %2285 = vmax.xlane.f32.xlu0 %v2284_v25 }
 0xee2   : > { %v2280_v26 = vpop.xlane.xlu0 %2279 }
 0xee3   : > { %v2287_v27 = vsub.f32 %v2265_v18, %v2280_v26 }
 0xee4   : > { %v2283_v28 = vpop.xlane.xlu1 %2282 }
 0xee5   : > { %v2290_v29 = vmul.f32 1.442695, %v2287_v27  ;;  %v2288_v30 = vsub.f32 %v2268_v22, %v2283_v28 }
 0xee6   : > { %v2286_v31 = vpop.xlane.xlu0 %2285 }
 0xee7   : > { %6990 = vpow2.f32 %v2290_v29  ;;  %v2292_v32 = vmul.f32 1.442695, %v2288_v30  ;;  %v2289_v33 = vsub.f32 %v2273_v21, %v2286_v31 }
 0xee9   : > { %6992 = vpow2.f32 %v2292_v32  ;;  %v2294_v34 = vmul.f32 1.442695, %v2289_v33 }
 0xeeb   : > { %6994 = vpow2.f32 %v2294_v34 }
 0xef1   : > { %v6991_v35 = vpop.eup %6990 }
 0xef2   : > { %v2296_v36 = vsel %vm1333_vm6, %v6991_v35, 0.0 }
 0xef3   : > { %v6993_v37 = vpop.eup %6992  ;;  %2297 = vadd.xlane.f32.xlu1 %v2296_v36 }
 0xef4   : > { %v2299_v41 = vsel %vm1333_vm6, %v6993_v37, 0.0 }
 0xef5   : > { %v6995_v43 = vpop.eup %6994  ;;  %2300 = vadd.xlane.f32.xlu0 %v2299_v41 }
 0xef6   : > { %v2302_v44 = vsel %vm1333_vm6, %v6995_v43, 0.0 }
 0xef7   : > { %2303 = vadd.xlane.f32.xlu1 %v2302_v44 }
 0xf80   : > { %v2298_v47 = vpop.xlane.xlu1 %2297 }
 0xf81   : > { %6996 = vrcp.f32 %v2298_v47 }
 0xf82   : > { %v2301_v48 = vpop.xlane.xlu0 %2300 }
 0xf83   : > { %6998 = vrcp.f32 %v2301_v48 }
 0xf84   : > { %v2304_v49 = vpop.xlane.xlu1 %2303 }
 0xf85   : > { %7000 = vrcp.f32 %v2304_v49 }
 0xf8b   : > { %v6997_v50 = vpop.eup %6996 }
 0xf8c   : > { %v2308_v53 = vmul.f32 %v6997_v50, %v6991_v35 }
 0xf8d   : > { %v6999_v52 = vpop.eup %6998 }
 0xf8e   : > { %v2309_v54 = vmul.f32 %v6999_v52, %v6993_v37 }
 0xf8f   : > { %v7001_v55 = vpop.eup %7000 }
 0xf90   : > { %v2310_v56 = vmul.f32 %v7001_v55, %v6995_v43  ;;  %v2311_v57 = vpack.c.bf16 %v2309_v54, %v2308_v53 }
 0xf92   : > { %6414 = vmatprep.mubr.msk.bf16.mxu0 %vm1333_vm6, %v2311_v57  ;;  %v2312_v58 = vpack.c.bf16 %v2310_v56, %v2310_v56 }
 0xf94   : > { %6415 = vmatmul.mubr.msk.bf16.vlgmr.msra.gmra.mrb[32].mxu0 %vm1333_vm6, %v2312_v58 }
 0xf95   : > { %6425 = vmatpush3.bf16.msra.mxu0 %v6870_v45  ;;  %6432 = vmatprep.mubr.msk.bf16.mxu0 %vm767_vm0, %v7441_v2 }
 0xf96   : > { %6426 = vmatprep.subr.bf16.mxu0 %v6871_v59 }
 0xf99   : > { %6427 = vmatpush3.bf16.msra.mxu0 %v6871_v59 }
 0xf9a   : > { %6428 = vmatprep.subr.bf16.mxu0 %v6872_v60 }
 0xf9d   : > { %6429 = vmatpush3.bf16.msra.mxu0 %v6872_v60 }
 0xf9e   : > { %6430 = vmatprep.subr.bf16.mxu0 %v6873_v61 }
 0xfa1   : > { %6431 = vmatpush3.bf16.msra.mxu0 %v6873_v61 }
 0xfa2   : > { %6448 = vmatprep.subr.bf16.mxu0 %v6874_v51 }
 0xfa4   : > { %6433 = vmatmul.mubr.msk.bf16.vlgmr.msra.gmra.mrb[36].mxu0 %vm767_vm0, %v7443_v4 }
 0xfa5   : > { %6449 = vmatpush3.bf16.msra.mxu0 %v6874_v51  ;;  %6456 = vmatprep.mubr.msk.bf16.mxu0 %vm767_vm0, %v7441_v2 }
 0xfa6   : > { %6450 = vmatprep.subr.bf16.mxu0 %v6875_v62 }
 0xfa9   : > { %6451 = vmatpush3.bf16.msra.mxu0 %v6875_v62 }
 0xfaa   : > { %6452 = vmatprep.subr.bf16.mxu0 %v6876_v63 }
 0xfad   : > { %6453 = vmatpush3.bf16.msra.mxu0 %v6876_v63 }
 0xfae   : > { %6454 = vmatprep.subr.bf16.mxu0 %v6877_v0 }
 0xfb1   : > { %6455 = vmatpush3.bf16.msra.mxu0 %v6877_v0 }
 0xfb4   : > { %6457 = vmatmul.mubr.msk.bf16.vlgmr.msra.gmra.mrb[40].mxu0 %vm767_vm0, %v7443_v4 }
0x1067   : > { %v6416_v5 = vpop.f32.mrb[32].mxu0 }
0x1068   : > { %v2358_v7 = vpop.f32.mrb[33].mxu0  ;;  %v2373_v12 = vpack.c.bf16 %v6416_v5, %v6416_v5 }
0x1069   : > { %v6417_v8 = vpop.f32.mrb[34].mxu0 }
0x106a   : > { %v2361_v10 = vpop.f32.mrb[35].mxu0 }
0x106b   : > { %v2372_v11 = vpack.c.bf16 %v2361_v10, %v2358_v7 }
0x106d   : > { %6420 = vmatprep.mubr.msk.bf16.mxu1 %vm1272_vm3, %v2372_v11 }
0x106e   : > { %6421 = vmatmul.mubr.msk.bf16.vlgmr.msra.gmra.mrb[36].mxu1 %vm1272_vm3, %v2373_v12 }
0x106f   : > { %6437 = vmatpush3.bf16.msra.mxu1 %v6879_v3  ;;  %6444 = vmatprep.mubr.msk.bf16.mxu1 %vm767_vm0, %v7441_v2  ;;  %v6883_v3 = vld [vmem:[%s8283_s15 + $0x18] sm:$0xff]  }
0x1070   : > { %6438 = vmatprep.subr.bf16.mxu1 %v6880_v13 }
0x1073   : > { %6439 = vmatpush3.bf16.msra.mxu1 %v6880_v13 }
0x1074   : > { %6440 = vmatprep.subr.bf16.mxu1 %v6881_v14 }
0x1077   : > { %v6434_v39 = vpop.f32.mrb[36].mxu0  ;;  %6441 = vmatpush3.bf16.msra.mxu1 %v6881_v14 }
0x1078   : > { %v2507_v42 = vpop.f32.mrb[37].mxu0  ;;  %6442 = vmatprep.subr.bf16.mxu1 %v6882_v38 }
0x1079   : > { %v6435_v15 = vpop.f32.mrb[38].mxu0 }
0x107a   : > { %v2510_v16 = vpop.f32.mrb[39].mxu0 }
0x107b   : > { %v2683_v17 = vpack.c.bf16 %v2510_v16, %v2507_v42  ;;  %6443 = vmatpush3.bf16.msra.mxu1 %v6882_v38 }
0x107e   : > { %6445 = vmatmul.mubr.msk.bf16.vlgmr.msra.gmra.mrb[40].mxu1 %vm767_vm0, %v7443_v4 }
0x107f   : > { %6464 = vmatprep.mubr.msk.bf16.mxu1 %vm1272_vm3, %v2683_v17 }
0x1087   : > { %v6458_v2 = vpop.f32.mrb[40].mxu0 }
0x1088   : > { %v2669_v18 = vpop.f32.mrb[41].mxu0  ;;  %v2783_v22 = vpack.c.bf16 %v6458_v2, %v6458_v2 }
0x1089   : > { %v6459_v19 = vpop.f32.mrb[42].mxu0 }
0x108a   : > { %v2672_v20 = vpop.f32.mrb[43].mxu0  ;;  %v2791_v23 = vsel %vm1377_vm4, %v2783_v22, 0 }
0x108b   : > { %v2782_v21 = vpack.c.bf16 %v2672_v20, %v2669_v18 }
0x108d   : > { %6468 = vmatprep.subr.bf16.mxu0 %v2782_v21 }
0x108e   : > { %6469 = vmatpush3.bf16.msra.mxu0 %v2782_v21 }
0x108f   : > { %6773 = vmatprep.subr.msk.bf16.mxu0 %vm1377_vm4, %v2783_v22 }
0x1092   : > { %6471 = vmatpush3.bf16.msra.mxu0 %v2791_v23 }
0x1141   : > { %v6422_v24 = vpop.f32.mrb[36].mxu1 }
0x1142   : > { %v7719_v25 = vadd.f32 %v6422_v24, %v7639_v1  ;;  %v2423_v4 = vpop.f32.mrb[37].mxu1 }
0x1143   : > { %v7722_v26 = vadd.f32 %v2423_v4, %v7642_v6  ;;  %v6423_v27 = vpop.f32.mrb[38].mxu1  ;;  %v2684_v6 = vpack.c.bf16 %v6434_v39, %v6434_v39 }
0x1144   : > { %v2426_v28 = vpop.f32.mrb[39].mxu1  ;;  %v7094_v27 = vld [vmem:[#allocation2] sm:$0xff] }
0x1145   : > { %v7725_v29 = vadd.f32 %v2426_v28, %v7644_v9 }
0x1151   : > { %v6446_v30 = vpop.f32.mrb[40].mxu1 }
0x1152   : > { %v2588_v31 = vpop.f32.mrb[41].mxu1  ;;  %v2686_v35 = vpack.c.bf16 %v6446_v30, %v6446_v30 }
0x1153   : > { %v6447_v32 = vpop.f32.mrb[42].mxu1 }
0x1154   : > { %v2591_v33 = vpop.f32.mrb[43].mxu1  ;;  %v2697_v1 = vsel %vm1272_vm3, %v2686_v35, 0 }
0x1155   : > { %v2685_v34 = vpack.c.bf16 %v2591_v33, %v2588_v31  ;;  %v7095_v31 = vld [vmem:[#allocation2 + $0x10] sm:$0xff]  ;;  %v7096_v33 = vld [vmem:[#allocation2 + $0x8] sm:$0xff] }
0x1157   : > { %v2694_v36 = vsel %vm1272_vm3, %v2685_v34, 0  ;;  %6771 = vmatprep.subr.msk.bf16.mxu1 %vm1272_vm3, %v2685_v34 }
0x1158   : > { %6461 = vmatpush3.bf16.xpose.msra.mxu1 %v2694_v36 }
0x1159   : > { %6772 = vmatprep.subr.msk.bf16.mxu1 %vm1272_vm3, %v2686_v35 }
0x1160   : > { %6463 = vmatpush3.bf16.xpose.msra.mxu1 %v2697_v1 }
0x1161   : > { %6476 = vmatprep.subr.bf16.mxu1 %v6883_v3 }
0x1167   : > { %6465 = vmatmul.mubr.msk.bf16.vlgmr.msra.gmra.mrb[44].mxu1 %vm1272_vm3, %v2684_v6 }
0x1168   : > { %6477 = vmatpush3.bf16.msra.mxu1 %v6883_v3  ;;  %v5711_v3 = vld [vmem:[%s8285_s17] ss:$0 sm:$0xff] }
0x123a   : > { %v6466_v9 = vpop.f32.mrb[44].mxu1 }
0x123b   : > { %v2733_v37 = vpop.f32.mrb[45].mxu1  ;;  %v2742_v45 = vadd.f32 %v6466_v9, %v7506_v40 }
0x123c   : > { %v2734_v41 = vadd.f32 %v2733_v37, %v7506_v40  ;;  %v6467_v43 = vpop.f32.mrb[46].mxu1 }
0x123d   : > { %v2736_v44 = vpop.f32.mrb[47].mxu1  ;;  %v2753_v49 = vsel %vm1333_vm6, %v2742_v45, -inf }
0x123e   : > { %v2737_v46 = vadd.f32 %v2736_v44, %v7506_v40  ;;  %v2747_v47 = vsel %vm1333_vm6, %v2734_v41, -inf }
0x123f   : > { %2748 = vmax.xlane.f32.xlu0 %v2747_v47 }
0x1240   : > { %v2750_v48 = vsel %vm1333_vm6, %v2737_v46, -inf }
0x1241   : > { %2751 = vmax.xlane.f32.xlu1 %v2750_v48 }
0x1243   : > { %2754 = vmax.xlane.f32.xlu0 %v2753_v49 }
0x12cc   : > { %v2749_v50 = vpop.xlane.xlu0 %2748 }
0x12cd   : > { %v2756_v52 = vsub.f32 %v2734_v41, %v2749_v50 }
0x12ce   : > { %v2752_v53 = vpop.xlane.xlu1 %2751 }
0x12cf   : > { %v2759_v54 = vmul.f32 1.442695, %v2756_v52  ;;  %v2757_v55 = vsub.f32 %v2737_v46, %v2752_v53  ;;  %v6884_v52 = vld [vmem:[%s8287_s19] sm:$0xff]   ;;  %v6885_v53 = vld [vmem:[%s8287_s19 + $0x8] sm:$0xff]  }
0x12d0   : > { %v2755_v56 = vpop.xlane.xlu0 %2754  ;;  %6482 = vmatprep.subr.bf16.mxu0 %v6884_v52 }
0x12d1   : > { %7002 = vpow2.f32 %v2759_v54  ;;  %v2761_v57 = vmul.f32 1.442695, %v2757_v55  ;;  %v2758_v58 = vsub.f32 %v2742_v45, %v2755_v56  ;;  %v6886_v54 = vld [vmem:[%s8287_s19 + $0x10] sm:$0xff]   ;;  %v6887_v55 = vld [vmem:[%s8287_s19 + $0x18] sm:$0xff]  }
0x12d3   : > { %7004 = vpow2.f32 %v2761_v57  ;;  %v2763_v59 = vmul.f32 1.442695, %v2758_v58 }
0x12d5   : > { %7006 = vpow2.f32 %v2763_v59 }
0x12db   : > { %v7003_v60 = vpop.eup %7002 }
0x12dc   : > { %v2765_v61 = vsel %vm1333_vm6, %v7003_v60, 0.0 }
0x12dd   : > { %v7005_v51 = vpop.eup %7004  ;;  %2766 = vadd.xlane.f32.xlu1 %v2765_v61 }
0x12de   : > { %v2768_v62 = vsel %vm1333_vm6, %v7005_v51, 0.0 }
0x12df   : > { %v7007_v63 = vpop.eup %7006  ;;  %2769 = vadd.xlane.f32.xlu0 %v2768_v62 }
0x12e0   : > { %v2771_v0 = vsel %vm1333_vm6, %v7007_v63, 0.0 }
0x12e1   : > { %2772 = vadd.xlane.f32.xlu1 %v2771_v0 }
0x136a   : > { %v2767_v5 = vpop.xlane.xlu1 %2766 }
0x136b   : > { %7008 = vrcp.f32 %v2767_v5 }
0x136c   : > { %v2770_v7 = vpop.xlane.xlu0 %2769 }
0x136d   : > { %7010 = vrcp.f32 %v2770_v7 }
0x136e   : > { %v2773_v8 = vpop.xlane.xlu1 %2772 }
0x136f   : > { %7012 = vrcp.f32 %v2773_v8 }
0x1375   : > { %v7009_v10 = vpop.eup %7008 }
0x1376   : > { %v2777_v12 = vmul.f32 %v7009_v10, %v7003_v60 }
0x1377   : > { %v7011_v11 = vpop.eup %7010 }
0x1378   : > { %v2778_v13 = vmul.f32 %v7011_v11, %v7005_v51 }
0x1379   : > { %v7013_v14 = vpop.eup %7012 }
0x137a   : > { %v2779_v38 = vmul.f32 %v7013_v14, %v7007_v63  ;;  %v2780_v39 = vpack.c.bf16 %v2778_v13, %v2777_v12  ;;  %v5712_v12 = vld [vmem:[%s8286_s18] ss:$0 sm:$0xff] }
0x137c   : > { %6472 = vmatprep.mubr.msk.bf16.mxu0 %vm1333_vm6, %v2780_v39  ;;  %v2781_v42 = vpack.c.bf16 %v2779_v38, %v2779_v38 }
0x137e   : > { %6473 = vmatmul.mubr.msk.bf16.vlgmr.msra.gmra.mrb[44].mxu0 %vm1333_vm6, %v2781_v42 }
0x137f   : > { %6483 = vmatpush3.bf16.msra.mxu0 %v6884_v52 }
0x1380   : > { %6484 = vmatprep.subr.bf16.mxu0 %v6885_v53 }
0x1383   : > { %6485 = vmatpush3.bf16.msra.mxu0 %v6885_v53 }
0x1384   : > { %6486 = vmatprep.subr.bf16.mxu0 %v6886_v54 }
0x1387   : > { %6487 = vmatpush3.bf16.msra.mxu0 %v6886_v54 }
0x1388   : > { %6488 = vmatprep.subr.bf16.mxu0 %v6887_v55 }
0x138b   : > { %6489 = vmatpush3.bf16.msra.mxu0 %v6887_v55 }
0x1451   : > { %v6474_v15 = vpop.f32.mrb[44].mxu0 }
0x1452   : > { %v2827_v16 = vpop.f32.mrb[45].mxu0  ;;  %v2842_v19 = vpack.c.bf16 %v6474_v15, %v6474_v15 }
0x1453   : > { %v6475_v17 = vpop.f32.mrb[46].mxu0 }
0x1454   : > { %v2830_v2 = vpop.f32.mrb[47].mxu0 }
0x1455   : > { %v2841_v18 = vpack.c.bf16 %v2830_v2, %v2827_v16  ;;  %v6888_v2 = vld [vmem:[%s8289_s21] sm:$0xff]  }
0x1456   : > { %6494 = vmatprep.subr.bf16.mxu1 %v6888_v2 }
0x1457   : > { %6478 = vmatprep.mubr.msk.bf16.mxu1 %vm1272_vm3, %v2841_v18  ;;  %v6889_v18 = vld [vmem:[%s8289_s21 + $0x8] sm:$0xff]  }
0x1458   : > { %6479 = vmatmul.mubr.msk.bf16.vlgmr.msra.gmra.mrb[48].mxu1 %vm1272_vm3, %v2842_v19  ;;  %v6890_v19 = vld [vmem:[%s8289_s21 + $0x10] sm:$0xff]  }
0x1459   : > { %6495 = vmatpush3.bf16.msra.mxu1 %v6888_v2 }
0x145a   : > { %6496 = vmatprep.subr.bf16.mxu1 %v6889_v18 }
0x145d   : > { %6497 = vmatpush3.bf16.msra.mxu1 %v6889_v18 }
0x145e   : > { %6498 = vmatprep.subr.bf16.mxu1 %v6890_v19 }
0x1461   : > { %6499 = vmatpush3.bf16.msra.mxu1 %v6890_v19 }
0x152b   : > { %v6480_v20 = vpop.f32.mrb[48].mxu1 }
0x152c   : > { %v2908_v21 = vadd.f32 %v6480_v20, %v7719_v25  ;;  %v2892_v22 = vpop.f32.mrb[49].mxu1  ;;  %v6891_v20 = vld [vmem:[%s8289_s21 + $0x18] sm:$0xff]  }
0x152d   : > { %v2906_v23 = vadd.f32 %v2892_v22, %v7722_v26  ;;  %v6481_v24 = vpop.f32.mrb[50].mxu1  ;;  %6500 = vmatprep.subr.bf16.mxu1 %v6891_v20 }
0x152e   : > { %v2895_v4 = vpop.f32.mrb[51].mxu1  ;;  %v7753_v32 = vadd.f32 %v7095_v31, %v2908_v21  ;;  %6501 = vmatpush3.bf16.msra.mxu1 %v6891_v20  ;;  %v5713_v21 = vld [vmem:[%s8288_s20] ss:$0 sm:$0xff] }
0x152f   : > { %v7750_v28 = vadd.f32 %v7094_v27, %v2906_v23  ;;  %v2907_v30 = vadd.f32 %v2895_v4, %v7725_v29 }
0x1530   : > { %v2920_v26 = vsel %vm767_vm0, %v7753_v32, 0.0 }
0x1531   : > { %v7755_v34 = vadd.f32 %v7096_v33, %v2907_v30  ;;  %v2914_v35 = vsel %vm767_vm0, %v7750_v28, 0.0 }
0x1532   : > { %2915 = vadd.xlane.f32.xlu0 %v2914_v35 }
0x1533   : > { %v2917_v25 = vsel %vm767_vm0, %v7755_v34, 0.0 }
0x1534   : > { %2918 = vadd.xlane.f32.xlu1 %v2917_v25 }
0x1536   : > { %2921 = vadd.xlane.f32.xlu0 %v2920_v26 }
0x15bf   : > { %v2916_v36 = vpop.xlane.xlu0 %2915 }
0x15c0   : > { %v2923_v29 = vmul.f32 0.015625, %v2916_v36 }
0x15c1   : > { %v2919_v1 = vpop.xlane.xlu1 %2918 }
0x15c2   : > { %v2926_v6 = vsub.f32 %v7750_v28, %v2923_v29  ;;  %v2924_v9 = vmul.f32 0.015625, %v2919_v1 }
0x15c3   : > { %v2922_v37 = vpop.xlane.xlu0 %2921 }
0x15c4   : > { %v2927_v41 = vsub.f32 %v7755_v34, %v2924_v9  ;;  %v2925_v43 = vmul.f32 0.015625, %v2922_v37  ;;  %v2929_v44 = vmul.f32 %v2926_v6, %v2926_v6 }
0x15c6   : > { %v2928_v45 = vsub.f32 %v7753_v32, %v2925_v43  ;;  %v2932_v46 = vsel %vm767_vm0, %v2929_v44, 0.0  ;;  %v2930_v47 = vmul.f32 %v2927_v41, %v2927_v41 }
0x15c7   : > { %2933 = vadd.xlane.f32.xlu1 %v2932_v46 }
0x15c8   : > { %v2935_v48 = vsel %vm767_vm0, %v2930_v47, 0.0  ;;  %v2931_v49 = vmul.f32 %v2928_v45, %v2928_v45 }
0x15c9   : > { %2936 = vadd.xlane.f32.xlu0 %v2935_v48 }
0x15ca   : > { %v2938_v50 = vsel %vm767_vm0, %v2931_v49, 0.0 }
0x15cb   : > { %2939 = vadd.xlane.f32.xlu1 %v2938_v50 }
0x1654   : > { %v2934_v56 = vpop.xlane.xlu1 %2933 }
0x1655   : > { %v2941_v57 = vmul.f32 0.015625, %v2934_v56 }
0x1656   : > { %v2937_v58 = vpop.xlane.xlu0 %2936 }
0x1657   : > { %v2944_v59 = vadd.f32 1e-05, %v2941_v57  ;;  %v2942_v60 = vmul.f32 0.015625, %v2937_v58 }
0x1658   : > { %v2940_v61 = vpop.xlane.xlu1 %2939 }
0x1659   : > { %7014 = vrsqrt.f32 %v2944_v59  ;;  %v2945_v51 = vadd.f32 1e-05, %v2942_v60  ;;  %v2943_v62 = vmul.f32 0.015625, %v2940_v61 }
0x165b   : > { %7016 = vrsqrt.f32 %v2945_v51  ;;  %v2946_v63 = vadd.f32 1e-05, %v2943_v62  ;;  %v5720_v51 = vld [vmem:[%s8290_s22] ss:$0 sm:$0xff] }
0x165d   : > { %7018 = vrsqrt.f32 %v2946_v63 }
0x1663   : > { %v7015_v0 = vpop.eup %7014 }
0x1664   : > { %v2950_v5 = vmul.f32 %v7015_v0, %v2926_v6 }
0x1665   : > { %v7017_v7 = vpop.eup %7016 }
0x1666   : > { %v2951_v8 = vmul.f32 %v7017_v7, %v2927_v41  ;;  %v2959_v10 = vmul.f32 %v5711_v3, %v2950_v5 }
0x1667   : > { %v7019_v11 = vpop.eup %7018 }
0x1668   : > { %v2952_v13 = vmul.f32 %v7019_v11, %v2928_v45  ;;  %v2960_v14 = vmul.f32 %v5711_v3, %v2951_v8  ;;  %v2968_v38 = vadd.f32 %v5712_v12, %v2959_v10 }
0x166a   : > { %v2969_v39 = vadd.f32 %v5712_v12, %v2960_v14  ;;  %v2961_v42 = vmul.f32 %v5711_v3, %v2952_v13 }
0x166c   : > { %v2979_v15 = vpack.c.bf16 %v2969_v39, %v2968_v38  ;;  %v2970_v16 = vadd.f32 %v5712_v12, %v2961_v42 }
0x166e   : > { %6490 = vmatprep.mubr.msk.bf16.mxu0 %vm767_vm0, %v2979_v15  ;;  %v2980_v17 = vpack.c.bf16 %v2970_v16, %v2970_v16 }
0x1670   : > { %6491 = vmatmul.mubr.msk.bf16.vlgmr.msra.gmra.mrb[48].mxu0 %vm767_vm0, %v2980_v17 }
0x1743   : > { %v6492_v22 = vpop.f32.mrb[48].mxu0 }
0x1744   : > { %v3061_v23 = vadd.f32 %v6492_v22, %v5713_v21  ;;  %v3052_v24 = vpop.f32.mrb[49].mxu0 }
0x1745   : > { %v3053_v4 = vadd.f32 %v5713_v21, %v3052_v24  ;;  %v6493_v27 = vpop.f32.mrb[50].mxu0  ;;  %v6892_v24 = vld [vmem:[%s8280_s12 + $0x80] sm:$0xff]  }
0x1746   : > { %v3068_v30 = vmul.f32 %v3061_v23, %v3061_v23  ;;  %v3055_v31 = vpop.f32.mrb[51].mxu0  ;;  %6506 = vmatprep.subr.bf16.mxu0 %v6892_v24  ;;  %v6894_v27 = vld [vmem:[%s8280_s12 + $0x88] sm:$0xff]  }
0x1747   : > { %v3066_v33 = vmul.f32 %v3053_v4, %v3053_v4  ;;  %v3056_v35 = vadd.f32 %v5713_v21, %v3055_v31  ;;  %6507 = vmatpush3.bf16.msra.mxu0 %v6892_v24  ;;  %v6896_v31 = vld [vmem:[%s8280_s12 + $0x90] sm:$0xff]  }
0x1748   : > { %v3071_v25 = vmul.f32 %v3068_v30, %v3061_v23  ;;  %v6895_v30 = vld [vmem:[%s8281_s13 + $0x88] sm:$0xff]   ;;  %6508 = vmatprep.subr.bf16.mxu0 %v6894_v27 }
0x1749   : > { %v3069_v26 = vmul.f32 %v3066_v33, %v3053_v4  ;;  %v3067_v36 = vmul.f32 %v3056_v35, %v3056_v35  ;;  %v6897_v33 = vld [vmem:[%s8281_s13 + $0x90] sm:$0xff]  }
0x174a   : > { %v3074_v29 = vmul.f32 0.044715, %v3071_v25  ;;  %v6899_v25 = vld [vmem:[%s8281_s13 + $0x98] sm:$0xff]  }
0x174b   : > { %v3072_v1 = vmul.f32 0.044715, %v3069_v26  ;;  %v3070_v6 = vmul.f32 %v3067_v36, %v3056_v35  ;;  %6509 = vmatpush3.bf16.msra.mxu0 %v6894_v27  ;;  %v6900_v26 = vld [vmem:[%s8282_s14 + $0x80] sm:$0xff]  }
0x174c   : > { %v3077_v9 = vadd.f32 %v3074_v29, %v3061_v23  ;;  %6510 = vmatprep.subr.bf16.mxu0 %v6896_v31 }
0x174d   : > { %v3075_v37 = vadd.f32 %v3072_v1, %v3053_v4  ;;  %v3073_v41 = vmul.f32 0.044715, %v3070_v6 }
0x174e   : > { %v3080_v43 = vmul.f32 0.7978846, %v3077_v9 }
0x174f   : > { %v3078_v44 = vmul.f32 0.7978846, %v3075_v37  ;;  %v3076_v45 = vadd.f32 %v3073_v41, %v3056_v35  ;;  %6511 = vmatpush3.bf16.msra.mxu0 %v6896_v31 }
0x1750   : > { %7020 = vtanh.f32 %v3080_v43 }
0x1751   : > { %7022 = vtanh.f32 %v3078_v44  ;;  %v3079_v46 = vmul.f32 0.7978846, %v3076_v45 }
0x1753   : > { %7024 = vtanh.f32 %v3079_v46  ;;  %v5729_v46 = vld [vmem:[%s8278_s10 + $0x1] ss:$0 sm:$0xff] }
0x175a   : > { %v7021_v47 = vpop.eup %7020 }
0x175b   : > { %v7023_v48 = vpop.eup %7022  ;;  %v3086_v49 = vadd.f32 1.0, %v7021_v47 }
0x175c   : > { %v3084_v50 = vadd.f32 1.0, %v7023_v48 }
0x175d   : > { %v7025_v52 = vpop.eup %7024  ;;  %v3089_v53 = vmul.f32 0.5, %v3086_v49 }
0x175e   : > { %v3087_v54 = vmul.f32 0.5, %v3084_v50  ;;  %v3085_v55 = vadd.f32 1.0, %v7025_v52 }
0x175f   : > { %v3092_v57 = vmul.f32 %v3089_v53, %v3061_v23  ;;  %v5730_v53 = vld [vmem:[%s8279_s11 + $0x1] ss:$0 sm:$0xff] }
0x1760   : > { %v3088_v56 = vmul.f32 0.5, %v3085_v55  ;;  %v3090_v58 = vmul.f32 %v3087_v54, %v3053_v4  ;;  %v6893_v4 = vld [vmem:[%s8281_s13 + $0x80] sm:$0xff]  }
0x1761   : > { %v3102_v61 = vpack.c.bf16 %v3092_v57, %v3092_v57  ;;  %6518 = vmatprep.subr.bf16.mxu1 %v6893_v4 }
0x1762   : > { %v3091_v59 = vmul.f32 %v3088_v56, %v3056_v35  ;;  %v6898_v35 = vld [vmem:[%s8280_s12 + $0x98] sm:$0xff]  }
0x1763   : > { %6512 = vmatprep.subr.bf16.mxu0 %v6898_v35 }
0x1764   : > { %v3101_v60 = vpack.c.bf16 %v3091_v59, %v3090_v58  ;;  %6513 = vmatpush3.bf16.msra.mxu0 %v6898_v35 }
0x1765   : > { %6530 = vmatprep.subr.bf16.mxu0 %v6900_v26 }
0x1766   : > { %6502 = vmatprep.mubr.msk.bf16.mxu1 %vm767_vm0, %v3101_v60 }
0x1767   : > { %6503 = vmatmul.mubr.msk.bf16.vlgmr.msra.gmra.mrb[52].mxu1 %vm767_vm0, %v3102_v61 }
0x1768   : > { %6519 = vmatpush3.bf16.msra.mxu1 %v6893_v4 }
0x1769   : > { %6520 = vmatprep.subr.bf16.mxu1 %v6895_v30 }
0x176c   : > { %6521 = vmatpush3.bf16.msra.mxu1 %v6895_v30 }
0x176d   : > { %6522 = vmatprep.subr.bf16.mxu1 %v6897_v33 }
0x1770   : > { %6523 = vmatpush3.bf16.msra.mxu1 %v6897_v33 }
0x1771   : > { %6524 = vmatprep.subr.bf16.mxu1 %v6899_v25 }
0x1774   : > { %6525 = vmatpush3.bf16.msra.mxu1 %v6899_v25 }
0x183a   : > { %v6504_v62 = vpop.f32.mrb[52].mxu1 }
0x183b   : > { %v3174_v63 = vpop.f32.mrb[53].mxu1  ;;  %v3183_v0 = vadd.f32 %v6504_v62, %v5720_v51  ;;  %v6902_v62 = vld [vmem:[%s8282_s14 + $0x90] sm:$0xff]  }
0x183c   : > { %v3175_v3 = vadd.f32 %v5720_v51, %v3174_v63  ;;  %v6505_v5 = vpop.f32.mrb[54].mxu1  ;;  %v6903_v63 = vld [vmem:[%s8282_s14 + $0x98] sm:$0xff]  }
0x183d   : > { %v3177_v7 = vpop.f32.mrb[55].mxu1  ;;  %v7813_v11 = vadd.f32 %v3183_v0, %v7753_v32 }
0x183e   : > { %v7810_v8 = vadd.f32 %v3175_v3, %v7750_v28  ;;  %v3178_v10 = vadd.f32 %v5720_v51, %v3177_v7  ;;  %v6901_v51 = vld [vmem:[%s8282_s14 + $0x88] sm:$0xff]  }
0x183f   : > { %v3201_v38 = vsel %vm767_vm0, %v7813_v11, 0.0 }
0x1840   : > { %v7816_v12 = vadd.f32 %v3178_v10, %v7755_v34  ;;  %v3195_v13 = vsel %vm767_vm0, %v7810_v8, 0.0 }
0x1841   : > { %3196 = vadd.xlane.f32.xlu0 %v3195_v13 }
0x1842   : > { %v3198_v14 = vsel %vm767_vm0, %v7816_v12, 0.0 }
0x1843   : > { %3199 = vadd.xlane.f32.xlu1 %v3198_v14 }
0x1845   : > { %3202 = vadd.xlane.f32.xlu0 %v3201_v38 }
0x18ce   : > { %v3197_v28 = vpop.xlane.xlu0 %3196 }
0x18cf   : > { %v3204_v39 = vmul.f32 0.015625, %v3197_v28 }
0x18d0   : > { %v3200_v42 = vpop.xlane.xlu1 %3199 }
0x18d1   : > { %v3207_v32 = vsub.f32 %v7810_v8, %v3204_v39  ;;  %v3205_v15 = vmul.f32 0.015625, %v3200_v42 }
0x18d2   : > { %v3203_v34 = vpop.xlane.xlu0 %3202 }
0x18d3   : > { %v3208_v16 = vsub.f32 %v7816_v12, %v3205_v15  ;;  %v3206_v17 = vmul.f32 0.015625, %v3203_v34  ;;  %v3210_v2 = vmul.f32 %v3207_v32, %v3207_v32 }
0x18d5   : > { %v3209_v18 = vsub.f32 %v7813_v11, %v3206_v17  ;;  %v3213_v19 = vsel %vm767_vm0, %v3210_v2, 0.0  ;;  %v3211_v20 = vmul.f32 %v3208_v16, %v3208_v16 }
0x18d6   : > { %3214 = vadd.xlane.f32.xlu1 %v3213_v19 }
0x18d7   : > { %v3216_v21 = vsel %vm767_vm0, %v3211_v20, 0.0  ;;  %v3212_v22 = vmul.f32 %v3209_v18, %v3209_v18 }
0x18d8   : > { %3217 = vadd.xlane.f32.xlu0 %v3216_v21 }
0x18d9   : > { %v3219_v23 = vsel %vm767_vm0, %v3212_v22, 0.0 }
0x18da   : > { %3220 = vadd.xlane.f32.xlu1 %v3219_v23 }
0x1963   : > { %v3215_v36 = vpop.xlane.xlu1 %3214 }
0x1964   : > { %v3222_v29 = vmul.f32 0.015625, %v3215_v36 }
0x1965   : > { %v3218_v1 = vpop.xlane.xlu0 %3217 }
0x1966   : > { %v3225_v6 = vadd.f32 1e-05, %v3222_v29  ;;  %v3223_v9 = vmul.f32 0.015625, %v3218_v1 }
0x1967   : > { %v3221_v37 = vpop.xlane.xlu1 %3220 }
0x1968   : > { %7026 = vrsqrt.f32 %v3225_v6  ;;  %v3226_v41 = vadd.f32 1e-05, %v3223_v9  ;;  %v3224_v43 = vmul.f32 0.015625, %v3221_v37 }
0x196a   : > { %7028 = vrsqrt.f32 %v3226_v41  ;;  %v3227_v44 = vadd.f32 1e-05, %v3224_v43 }
0x196c   : > { %7030 = vrsqrt.f32 %v3227_v44 }
0x1972   : > { %v7027_v45 = vpop.eup %7026 }
0x1973   : > { %v3231_v47 = vmul.f32 %v7027_v45, %v3207_v32 }
0x1974   : > { %v7029_v48 = vpop.eup %7028 }
0x1975   : > { %v3240_v49 = vmul.f32 %v5729_v46, %v3231_v47  ;;  %v3232_v50 = vmul.f32 %v7029_v48, %v3208_v16 }
0x1976   : > { %v7031_v52 = vpop.eup %7030 }
0x1977   : > { %v3241_v54 = vmul.f32 %v5729_v46, %v3232_v50  ;;  %v3233_v55 = vmul.f32 %v7031_v52, %v3209_v18  ;;  %v3249_v56 = vadd.f32 %v5730_v53, %v3240_v49  ;;  %v6904_v50 = vld [vmem:[%s8280_s12 + $0xa0] sm:$0xff]  }
0x1978   : > { %v6912_v52 = vld [vmem:[%s8283_s15 + $0x20] sm:$0xff]  }
0x1979   : > { %v3250_v57 = vadd.f32 %v5730_v53, %v3241_v54  ;;  %v3242_v58 = vmul.f32 %v5729_v46, %v3233_v55 }
0x197b   : > { %v7863_v59 = vpack.c.bf16 %v3250_v57, %v3249_v56  ;;  %v3251_v60 = vadd.f32 %v5730_v53, %v3242_v58 }
0x197d   : > { %v7865_v61 = vpack.c.bf16 %v3251_v60, %v3251_v60  ;;  %6514 = vmatprep.mubr.msk.bf16.mxu0 %vm767_vm0, %v7863_v59  ;;  %6526 = vmatprep.mubr.msk.bf16.mxu1 %vm767_vm0, %v7863_v59 }
0x197f   : > { %6515 = vmatmul.mubr.msk.bf16.vlgmr.msra.gmra.mrb[52].mxu0 %vm767_vm0, %v7865_v61  ;;  %6527 = vmatmul.mubr.msk.bf16.vlgmr.msra.gmra.mrb[56].mxu1 %vm767_vm0, %v7865_v61 }
0x1980   : > { %6531 = vmatpush3.bf16.msra.mxu0 %v6900_v26  ;;  %6538 = vmatprep.mubr.msk.bf16.mxu0 %vm767_vm0, %v7863_v59 }
0x1981   : > { %6532 = vmatprep.subr.bf16.mxu0 %v6901_v51 }
0x1984   : > { %6533 = vmatpush3.bf16.msra.mxu0 %v6901_v51 }
0x1985   : > { %6534 = vmatprep.subr.bf16.mxu0 %v6902_v62 }
0x1988   : > { %6535 = vmatpush3.bf16.msra.mxu0 %v6902_v62 }
0x1989   : > { %6536 = vmatprep.subr.bf16.mxu0 %v6903_v63 }
0x198c   : > { %6537 = vmatpush3.bf16.msra.mxu0 %v6903_v63 }
0x198f   : > { %6539 = vmatmul.mubr.msk.bf16.vlgmr.msra.gmra.mrb[56].mxu0 %vm767_vm0, %v7865_v61 }
0x1a52   : > { %v6516_v0 = vpop.f32.mrb[52].mxu0  ;;  %v6528_v3 = vpop.f32.mrb[56].mxu1 }
0x1a53   : > { %v3329_v5 = vpop.f32.mrb[53].mxu0  ;;  %v3410_v7 = vpop.f32.mrb[57].mxu1  ;;  %v3508_v42 = vpack.c.bf16 %v6528_v3, %v6528_v3  ;;  %v3506_v18 = vpack.c.bf16 %v6516_v0, %v6516_v0  ;;  %v6905_v3 = vld [vmem:[%s8280_s12 + $0xa8] sm:$0xff]  }
0x1a54   : > { %v6517_v10 = vpop.f32.mrb[54].mxu0  ;;  %v6529_v13 = vpop.f32.mrb[58].mxu1 }
0x1a55   : > { %v3332_v14 = vpop.f32.mrb[55].mxu0  ;;  %v3413_v38 = vpop.f32.mrb[59].mxu1  ;;  %v3519_v15 = vsel %vm1272_vm3, %v3508_v42, 0  ;;  %v6908_v10 = vld [vmem:[%s8282_s14 + $0xa0] sm:$0xff]   ;;  %v6909_v13 = vld [vmem:[%s8282_s14 + $0xa8] sm:$0xff]  }
0x1a56   : > { %v3505_v28 = vpack.c.bf16 %v3332_v14, %v3329_v5  ;;  %v3507_v39 = vpack.c.bf16 %v3413_v38, %v3410_v7  ;;  %v6906_v5 = vld [vmem:[%s8280_s12 + $0xb0] sm:$0xff]   ;;  %v6907_v7 = vld [vmem:[%s8280_s12 + $0xb8] sm:$0xff]  }
0x1a57   : > { %v6910_v14 = vld [vmem:[%s8282_s14 + $0xb0] sm:$0xff]   ;;  %v6911_v38 = vld [vmem:[%s8282_s14 + $0xb8] sm:$0xff]  }
0x1a58   : > { %v3516_v32 = vsel %vm1272_vm3, %v3507_v39, 0  ;;  %6774 = vmatprep.subr.msk.bf16.mxu1 %vm1272_vm3, %v3507_v39  ;;  %6546 = vmatprep.mubr.msk.bf16.mxu1 %vm1272_vm3, %v3505_v28  ;;  %v6913_v28 = vld [vmem:[%s8281_s13 + $0xa0] sm:$0xff]  }
0x1a59   : > { %6543 = vmatpush3.bf16.xpose.msra.mxu1 %v3516_v32 }
0x1a5a   : > { %6775 = vmatprep.subr.msk.bf16.mxu1 %vm1272_vm3, %v3508_v42 }
0x1a61   : > { %6545 = vmatpush3.bf16.xpose.msra.mxu1 %v3519_v15 }
0x1a62   : > { %v6540_v34 = vpop.f32.mrb[56].mxu0  ;;  %6558 = vmatprep.subr.bf16.mxu1 %v6912_v52 }
0x1a63   : > { %v3491_v16 = vpop.f32.mrb[57].mxu0  ;;  %v3605_v20 = vpack.c.bf16 %v6540_v34, %v6540_v34 }
0x1a64   : > { %v6541_v17 = vpop.f32.mrb[58].mxu0 }
0x1a65   : > { %v3494_v2 = vpop.f32.mrb[59].mxu0  ;;  %v3613_v21 = vsel %vm1377_vm4, %v3605_v20, 0  ;;  %v6914_v17 = vld [vmem:[%s8281_s13 + $0xa8] sm:$0xff]  }
0x1a66   : > { %v3604_v19 = vpack.c.bf16 %v3494_v2, %v3491_v16  ;;  %v6915_v2 = vld [vmem:[%s8281_s13 + $0xb0] sm:$0xff]  }
0x1a68   : > { %6550 = vmatprep.subr.bf16.mxu0 %v3604_v19  ;;  %6547 = vmatmul.mubr.msk.bf16.vlgmr.msra.gmra.mrb[60].mxu1 %vm1272_vm3, %v3506_v18  ;;  %v6916_v18 = vld [vmem:[%s8281_s13 + $0xb8] sm:$0xff]  }
0x1a69   : > { %6551 = vmatpush3.bf16.msra.mxu0 %v3604_v19  ;;  %6559 = vmatpush3.bf16.msra.mxu1 %v6912_v52 }
0x1a6a   : > { %6776 = vmatprep.subr.msk.bf16.mxu0 %vm1377_vm4, %v3605_v20  ;;  %6576 = vmatprep.subr.bf16.mxu1 %v6913_v28 }
0x1a6d   : > { %6553 = vmatpush3.bf16.msra.mxu0 %v3613_v21 }
0x1a6e   : > { %6564 = vmatprep.subr.bf16.mxu0 %v6904_v50 }
0x1b3b   : > { %v6548_v22 = vpop.f32.mrb[60].mxu1 }
0x1b3c   : > { %v3555_v23 = vpop.f32.mrb[61].mxu1  ;;  %v3564_v30 = vadd.f32 %v6548_v22, %v7506_v40 }
0x1b3d   : > { %v3556_v24 = vadd.f32 %v3555_v23, %v7506_v40  ;;  %v6549_v4 = vpop.f32.mrb[62].mxu1 }
0x1b3e   : > { %v3558_v27 = vpop.f32.mrb[63].mxu1  ;;  %v3575_v25 = vsel %vm1333_vm6, %v3564_v30, -inf }
0x1b3f   : > { %v3559_v31 = vadd.f32 %v3558_v27, %v7506_v40  ;;  %v3569_v33 = vsel %vm1333_vm6, %v3556_v24, -inf }
0x1b40   : > { %3570 = vmax.xlane.f32.xlu0 %v3569_v33 }
0x1b41   : > { %v3572_v35 = vsel %vm1333_vm6, %v3559_v31, -inf }
0x1b42   : > { %3573 = vmax.xlane.f32.xlu1 %v3572_v35 }
0x1b44   : > { %3576 = vmax.xlane.f32.xlu0 %v3575_v25 }
0x1bcd   : > { %v3571_v26 = vpop.xlane.xlu0 %3570 }
0x1bce   : > { %v3578_v36 = vsub.f32 %v3556_v24, %v3571_v26 }
0x1bcf   : > { %v3574_v29 = vpop.xlane.xlu1 %3573 }
0x1bd0   : > { %v3581_v1 = vmul.f32 1.442695, %v3578_v36  ;;  %v3579_v6 = vsub.f32 %v3559_v31, %v3574_v29 }
0x1bd1   : > { %v3577_v9 = vpop.xlane.xlu0 %3576 }
0x1bd2   : > { %7032 = vpow2.f32 %v3581_v1  ;;  %v3583_v37 = vmul.f32 1.442695, %v3579_v6  ;;  %v3580_v41 = vsub.f32 %v3564_v30, %v3577_v9 }
0x1bd4   : > { %7034 = vpow2.f32 %v3583_v37  ;;  %v3585_v43 = vmul.f32 1.442695, %v3580_v41 }
0x1bd6   : > { %7036 = vpow2.f32 %v3585_v43 }
0x1bdc   : > { %v7033_v44 = vpop.eup %7032 }
0x1bdd   : > { %v3587_v45 = vsel %vm1333_vm6, %v7033_v44, 0.0 }
0x1bde   : > { %v7035_v46 = vpop.eup %7034  ;;  %3588 = vadd.xlane.f32.xlu1 %v3587_v45 }
0x1bdf   : > { %v3590_v47 = vsel %vm1333_vm6, %v7035_v46, 0.0 }
0x1be0   : > { %v7037_v48 = vpop.eup %7036  ;;  %3591 = vadd.xlane.f32.xlu0 %v3590_v47 }
0x1be1   : > { %v3593_v49 = vsel %vm1333_vm6, %v7037_v48, 0.0 }
0x1be2   : > { %3594 = vadd.xlane.f32.xlu1 %v3593_v49 }
0x1c6b   : > { %v3589_v53 = vpop.xlane.xlu1 %3588 }
0x1c6c   : > { %7038 = vrcp.f32 %v3589_v53 }
0x1c6d   : > { %v3592_v54 = vpop.xlane.xlu0 %3591 }
0x1c6e   : > { %7040 = vrcp.f32 %v3592_v54 }
0x1c6f   : > { %v3595_v55 = vpop.xlane.xlu1 %3594 }
0x1c70   : > { %7042 = vrcp.f32 %v3595_v55 }
0x1c76   : > { %v7039_v56 = vpop.eup %7038 }
0x1c77   : > { %v3599_v58 = vmul.f32 %v7039_v56, %v7033_v44 }
0x1c78   : > { %v7041_v57 = vpop.eup %7040 }
0x1c79   : > { %v3600_v60 = vmul.f32 %v7041_v57, %v7035_v46 }
0x1c7a   : > { %v7043_v51 = vpop.eup %7042 }
0x1c7b   : > { %v3601_v62 = vmul.f32 %v7043_v51, %v7037_v48  ;;  %v3602_v63 = vpack.c.bf16 %v3600_v60, %v3599_v58 }
0x1c7d   : > { %6554 = vmatprep.mubr.msk.bf16.mxu0 %vm1333_vm6, %v3602_v63  ;;  %v3603_v0 = vpack.c.bf16 %v3601_v62, %v3601_v62 }
0x1c7f   : > { %6555 = vmatmul.mubr.msk.bf16.vlgmr.msra.gmra.mrb[60].mxu0 %vm1333_vm6, %v3603_v0 }
0x1c80   : > { %6565 = vmatpush3.bf16.msra.mxu0 %v6904_v50  ;;  %6572 = vmatprep.mubr.msk.bf16.mxu0 %vm767_vm0, %v7863_v59 }
0x1c81   : > { %6566 = vmatprep.subr.bf16.mxu0 %v6905_v3 }
0x1c84   : > { %6567 = vmatpush3.bf16.msra.mxu0 %v6905_v3 }
0x1c85   : > { %6568 = vmatprep.subr.bf16.mxu0 %v6906_v5 }
0x1c88   : > { %6569 = vmatpush3.bf16.msra.mxu0 %v6906_v5 }
0x1c89   : > { %6570 = vmatprep.subr.bf16.mxu0 %v6907_v7 }
0x1c8c   : > { %6571 = vmatpush3.bf16.msra.mxu0 %v6907_v7 }
0x1c8d   : > { %6588 = vmatprep.subr.bf16.mxu0 %v6908_v10 }
0x1c8f   : > { %6573 = vmatmul.mubr.msk.bf16.vlgmr.msra.gmra.mrb[64].mxu0 %vm767_vm0, %v7865_v61 }
0x1c90   : > { %6589 = vmatpush3.bf16.msra.mxu0 %v6908_v10  ;;  %6596 = vmatprep.mubr.msk.bf16.mxu0 %vm767_vm0, %v7863_v59 }
0x1c91   : > { %6590 = vmatprep.subr.bf16.mxu0 %v6909_v13 }
0x1c94   : > { %6591 = vmatpush3.bf16.msra.mxu0 %v6909_v13 }
0x1c95   : > { %6592 = vmatprep.subr.bf16.mxu0 %v6910_v14 }
0x1c98   : > { %6593 = vmatpush3.bf16.msra.mxu0 %v6910_v14 }
0x1c99   : > { %6594 = vmatprep.subr.bf16.mxu0 %v6911_v38 }
0x1c9c   : > { %6595 = vmatpush3.bf16.msra.mxu0 %v6911_v38 }
0x1c9f   : > { %6597 = vmatmul.mubr.msk.bf16.vlgmr.msra.gmra.mrb[68].mxu0 %vm767_vm0, %v7865_v61 }
0x1d52   : > { %v6556_v39 = vpop.f32.mrb[60].mxu0 }
0x1d53   : > { %v3649_v42 = vpop.f32.mrb[61].mxu0  ;;  %v3664_v16 = vpack.c.bf16 %v6556_v39, %v6556_v39 }
0x1d54   : > { %v6557_v32 = vpop.f32.mrb[62].mxu0 }
0x1d55   : > { %v3652_v15 = vpop.f32.mrb[63].mxu0  ;;  %v6925_v32 = vld [vmem:[%s8283_s15 + $0x28] sm:$0xff]  }
0x1d56   : > { %v3663_v34 = vpack.c.bf16 %v3652_v15, %v3649_v42  ;;  %v6917_v42 = vld [vmem:[%s8280_s12 + $0xc0] sm:$0xff]  }
0x1d58   : > { %6560 = vmatprep.mubr.msk.bf16.mxu1 %vm1272_vm3, %v3663_v34 }
0x1d59   : > { %6561 = vmatmul.mubr.msk.bf16.vlgmr.msra.gmra.mrb[64].mxu1 %vm1272_vm3, %v3664_v16 }
0x1d5a   : > { %6577 = vmatpush3.bf16.msra.mxu1 %v6913_v28  ;;  %6584 = vmatprep.mubr.msk.bf16.mxu1 %vm767_vm0, %v7863_v59 }
0x1d5b   : > { %6578 = vmatprep.subr.bf16.mxu1 %v6914_v17 }
0x1d5e   : > { %6579 = vmatpush3.bf16.msra.mxu1 %v6914_v17 }
0x1d5f   : > { %6580 = vmatprep.subr.bf16.mxu1 %v6915_v2 }
0x1d62   : > { %v6574_v19 = vpop.f32.mrb[64].mxu0  ;;  %6581 = vmatpush3.bf16.msra.mxu1 %v6915_v2 }
0x1d63   : > { %v3804_v20 = vpop.f32.mrb[65].mxu0  ;;  %6582 = vmatprep.subr.bf16.mxu1 %v6916_v18  ;;  %v3981_v46 = vpack.c.bf16 %v6574_v19, %v6574_v19 }
0x1d64   : > { %v6575_v21 = vpop.f32.mrb[66].mxu0 }
0x1d65   : > { %v3807_v22 = vpop.f32.mrb[67].mxu0 }
0x1d66   : > { %v3980_v23 = vpack.c.bf16 %v3807_v22, %v3804_v20  ;;  %6583 = vmatpush3.bf16.msra.mxu1 %v6916_v18 }
0x1d69   : > { %6585 = vmatmul.mubr.msk.bf16.vlgmr.msra.gmra.mrb[68].mxu1 %vm767_vm0, %v7865_v61 }
0x1d6a   : > { %6604 = vmatprep.mubr.msk.bf16.mxu1 %vm1272_vm3, %v3980_v23 }
0x1d72   : > { %v6598_v24 = vpop.f32.mrb[68].mxu0 }
0x1d73   : > { %v3966_v4 = vpop.f32.mrb[69].mxu0  ;;  %v4080_v33 = vpack.c.bf16 %v6598_v24, %v6598_v24  ;;  %v6918_v24 = vld [vmem:[%s8280_s12 + $0xc8] sm:$0xff]  }
0x1d74   : > { %v6599_v27 = vpop.f32.mrb[70].mxu0 }
0x1d75   : > { %v3969_v30 = vpop.f32.mrb[71].mxu0  ;;  %v4088_v35 = vsel %vm1377_vm4, %v4080_v33, 0  ;;  %v6920_v27 = vld [vmem:[%s8280_s12 + $0xd8] sm:$0xff]  }
0x1d76   : > { %v4079_v31 = vpack.c.bf16 %v3969_v30, %v3966_v4  ;;  %v6919_v4 = vld [vmem:[%s8280_s12 + $0xd0] sm:$0xff]   ;;  %v6921_v30 = vld [vmem:[%s8282_s14 + $0xc0] sm:$0xff]  }
0x1d78   : > { %6608 = vmatprep.subr.bf16.mxu0 %v4079_v31 }
0x1d79   : > { %6609 = vmatpush3.bf16.msra.mxu0 %v4079_v31  ;;  %v6922_v31 = vld [vmem:[%s8282_s14 + $0xc8] sm:$0xff]  }
0x1d7a   : > { %6779 = vmatprep.subr.msk.bf16.mxu0 %vm1377_vm4, %v4080_v33  ;;  %v6923_v33 = vld [vmem:[%s8282_s14 + $0xd0] sm:$0xff]  }
0x1d7d   : > { %6611 = vmatpush3.bf16.msra.mxu0 %v4088_v35  ;;  %v6924_v35 = vld [vmem:[%s8282_s14 + $0xd8] sm:$0xff]  }
0x1d7e   : > { %6622 = vmatprep.subr.bf16.mxu0 %v6917_v42 }
0x1e2c   : > { %v7963_v25 = vpop.f32.mrb[64].mxu1 }
0x1e2d   : > { %v7965_v26 = vpop.f32.mrb[65].mxu1 }
0x1e2e   : > { %v6563_v36 = vpop.f32.mrb[66].mxu1 }
0x1e2f   : > { %v7967_v29 = vpop.f32.mrb[67].mxu1  ;;  %v6926_v36 = vld [vmem:[%s8281_s13 + $0xc0] sm:$0xff]  }
0x1e3c   : > { %v6586_v1 = vpop.f32.mrb[68].mxu1 }
0x1e3d   : > { %v3885_v6 = vpop.f32.mrb[69].mxu1  ;;  %v3983_v43 = vpack.c.bf16 %v6586_v1, %v6586_v1 }
0x1e3e   : > { %v6587_v9 = vpop.f32.mrb[70].mxu1 }
0x1e3f   : > { %v3888_v37 = vpop.f32.mrb[71].mxu1  ;;  %v3994_v45 = vsel %vm1272_vm3, %v3983_v43, 0 }
0x1e40   : > { %v3982_v41 = vpack.c.bf16 %v3888_v37, %v3885_v6 }
0x1e42   : > { %v3991_v44 = vsel %vm1272_vm3, %v3982_v41, 0  ;;  %6777 = vmatprep.subr.msk.bf16.mxu1 %vm1272_vm3, %v3982_v41 }
0x1e43   : > { %6601 = vmatpush3.bf16.xpose.msra.mxu1 %v3991_v44  ;;  %v6927_v44 = vld [vmem:[%s8281_s13 + $0xc8] sm:$0xff]  }
0x1e44   : > { %6778 = vmatprep.subr.msk.bf16.mxu1 %vm1272_vm3, %v3983_v43 }
0x1e4b   : > { %6603 = vmatpush3.bf16.xpose.msra.mxu1 %v3994_v45  ;;  %v6928_v45 = vld [vmem:[%s8281_s13 + $0xd0] sm:$0xff]  }
0x1e4c   : > { %6616 = vmatprep.subr.bf16.mxu1 %v6925_v32 }
0x1e52   : > { %6605 = vmatmul.mubr.msk.bf16.vlgmr.msra.gmra.mrb[72].mxu1 %vm1272_vm3, %v3981_v46  ;;  %v6929_v46 = vld [vmem:[%s8281_s13 + $0xd8] sm:$0xff]  }
0x1e53   : > { %6617 = vmatpush3.bf16.msra.mxu1 %v6925_v32 }
0x1e54   : > { %6634 = vmatprep.subr.bf16.mxu1 %v6926_v36 }
0x1f25   : > { %v6606_v47 = vpop.f32.mrb[72].mxu1 }
0x1f26   : > { %v4030_v48 = vpop.f32.mrb[73].mxu1  ;;  %v4039_v53 = vadd.f32 %v6606_v47, %v7506_v40 }
0x1f27   : > { %v4031_v49 = vadd.f32 %v4030_v48, %v7506_v40  ;;  %v6607_v50 = vpop.f32.mrb[74].mxu1 }
0x1f28   : > { %v4033_v52 = vpop.f32.mrb[75].mxu1  ;;  %v4050_v57 = vsel %vm1333_vm6, %v4039_v53, -inf }
0x1f29   : > { %v4034_v54 = vadd.f32 %v4033_v52, %v7506_v40  ;;  %v4044_v55 = vsel %vm1333_vm6, %v4031_v49, -inf }
0x1f2a   : > { %4045 = vmax.xlane.f32.xlu0 %v4044_v55 }
0x1f2b   : > { %v4047_v56 = vsel %vm1333_vm6, %v4034_v54, -inf }
0x1f2c   : > { %4048 = vmax.xlane.f32.xlu1 %v4047_v56 }
0x1f2e   : > { %4051 = vmax.xlane.f32.xlu0 %v4050_v57 }
0x1fb7   : > { %v4046_v58 = vpop.xlane.xlu0 %4045 }
0x1fb8   : > { %v4053_v60 = vsub.f32 %v4031_v49, %v4046_v58 }
0x1fb9   : > { %v4049_v51 = vpop.xlane.xlu1 %4048 }
0x1fba   : > { %v4056_v62 = vmul.f32 1.442695, %v4053_v60  ;;  %v4054_v63 = vsub.f32 %v4034_v54, %v4049_v51  ;;  %v5783_v51 = vld [vmem:[%s8284_s16 + $0x1] ss:$0 sm:$0xff] }
0x1fbb   : > { %v4052_v0 = vpop.xlane.xlu0 %4051 }
0x1fbc   : > { %7044 = vpow2.f32 %v4056_v62  ;;  %v4058_v3 = vmul.f32 1.442695, %v4054_v63  ;;  %v4055_v5 = vsub.f32 %v4039_v53, %v4052_v0  ;;  %v3736_v62 = vadd.f32 %v7963_v25, %v5783_v51 }
0x1fbd   : > { %v3734_v63 = vadd.f32 %v5783_v51, %v7965_v26 }
0x1fbe   : > { %7046 = vpow2.f32 %v4058_v3  ;;  %v4060_v7 = vmul.f32 1.442695, %v4055_v5 }
0x1fc0   : > { %7048 = vpow2.f32 %v4060_v7  ;;  %v3735_v7 = vadd.f32 %v5783_v51, %v7967_v29  ;;  %v6931_v51 = vld [vmem:[%s8280_s12 + $0xe8] sm:$0xff]  }
0x1fc6   : > { %v7045_v10 = vpop.eup %7044 }
0x1fc7   : > { %v4062_v13 = vsel %vm1333_vm6, %v7045_v10, 0.0 }
0x1fc8   : > { %v7047_v14 = vpop.eup %7046  ;;  %4063 = vadd.xlane.f32.xlu1 %v4062_v13 }
0x1fc9   : > { %v4065_v38 = vsel %vm1333_vm6, %v7047_v14, 0.0 }
0x1fca   : > { %v7049_v28 = vpop.eup %7048  ;;  %4066 = vadd.xlane.f32.xlu0 %v4065_v38 }
0x1fcb   : > { %v4068_v39 = vsel %vm1333_vm6, %v7049_v28, 0.0 }
0x1fcc   : > { %4069 = vadd.xlane.f32.xlu1 %v4068_v39 }
0x2055   : > { %v4064_v15 = vpop.xlane.xlu1 %4063 }
0x2056   : > { %7050 = vrcp.f32 %v4064_v15 }
0x2057   : > { %v4067_v34 = vpop.xlane.xlu0 %4066 }
0x2058   : > { %7052 = vrcp.f32 %v4067_v34 }
0x2059   : > { %v4070_v16 = vpop.xlane.xlu1 %4069 }
0x205a   : > { %7054 = vrcp.f32 %v4070_v16 }
0x2060   : > { %v7051_v17 = vpop.eup %7050 }
0x2061   : > { %v4074_v18 = vmul.f32 %v7051_v17, %v7045_v10 }
0x2062   : > { %v7053_v2 = vpop.eup %7052 }
0x2063   : > { %v4075_v19 = vmul.f32 %v7053_v2, %v7047_v14 }
0x2064   : > { %v7055_v20 = vpop.eup %7054 }
0x2065   : > { %v4076_v21 = vmul.f32 %v7055_v20, %v7049_v28  ;;  %v4077_v22 = vpack.c.bf16 %v4075_v19, %v4074_v18 }
0x2067   : > { %6612 = vmatprep.mubr.msk.bf16.mxu0 %vm1333_vm6, %v4077_v22  ;;  %v4078_v23 = vpack.c.bf16 %v4076_v21, %v4076_v21 }
0x2069   : > { %6613 = vmatmul.mubr.msk.bf16.vlgmr.msra.gmra.mrb[72].mxu0 %vm1333_vm6, %v4078_v23 }
0x206a   : > { %6623 = vmatpush3.bf16.msra.mxu0 %v6917_v42  ;;  %6630 = vmatprep.mubr.msk.bf16.mxu0 %vm767_vm0, %v7863_v59 }
0x206b   : > { %6624 = vmatprep.subr.bf16.mxu0 %v6918_v24 }
0x206e   : > { %6625 = vmatpush3.bf16.msra.mxu0 %v6918_v24 }
0x206f   : > { %6626 = vmatprep.subr.bf16.mxu0 %v6919_v4 }
0x2072   : > { %6627 = vmatpush3.bf16.msra.mxu0 %v6919_v4 }
0x2073   : > { %6628 = vmatprep.subr.bf16.mxu0 %v6920_v27 }
0x2076   : > { %6629 = vmatpush3.bf16.msra.mxu0 %v6920_v27 }
0x2077   : > { %6646 = vmatprep.subr.bf16.mxu0 %v6921_v30 }
0x2079   : > { %6631 = vmatmul.mubr.msk.bf16.vlgmr.msra.gmra.mrb[76].mxu0 %vm767_vm0, %v7865_v61 }
0x207a   : > { %6647 = vmatpush3.bf16.msra.mxu0 %v6921_v30  ;;  %6654 = vmatprep.mubr.msk.bf16.mxu0 %vm767_vm0, %v7863_v59 }
0x207b   : > { %6648 = vmatprep.subr.bf16.mxu0 %v6922_v31 }
0x207e   : > { %6649 = vmatpush3.bf16.msra.mxu0 %v6922_v31 }
0x207f   : > { %6650 = vmatprep.subr.bf16.mxu0 %v6923_v33 }
0x2082   : > { %6651 = vmatpush3.bf16.msra.mxu0 %v6923_v33 }
0x2083   : > { %6652 = vmatprep.subr.bf16.mxu0 %v6924_v35 }
0x2086   : > { %6653 = vmatpush3.bf16.msra.mxu0 %v6924_v35 }
0x2089   : > { %6655 = vmatmul.mubr.msk.bf16.vlgmr.msra.gmra.mrb[80].mxu0 %vm767_vm0, %v7865_v61 }
0x213c   : > { %v6614_v1 = vpop.f32.mrb[72].mxu0 }
0x213d   : > { %v4124_v6 = vpop.f32.mrb[73].mxu0  ;;  %v4139_v43 = vpack.c.bf16 %v6614_v1, %v6614_v1 }
0x213e   : > { %v6615_v9 = vpop.f32.mrb[74].mxu0 }
0x213f   : > { %v4127_v37 = vpop.f32.mrb[75].mxu0 }
0x2140   : > { %v4138_v41 = vpack.c.bf16 %v4127_v37, %v4124_v6 }
0x2142   : > { %6618 = vmatprep.mubr.msk.bf16.mxu1 %vm1272_vm3, %v4138_v41 }
0x2143   : > { %6619 = vmatmul.mubr.msk.bf16.vlgmr.msra.gmra.mrb[76].mxu1 %vm1272_vm3, %v4139_v43 }
0x2144   : > { %6635 = vmatpush3.bf16.msra.mxu1 %v6926_v36  ;;  %6642 = vmatprep.mubr.msk.bf16.mxu1 %vm767_vm0, %v7863_v59 }
0x2145   : > { %6636 = vmatprep.subr.bf16.mxu1 %v6927_v44 }
0x2148   : > { %6637 = vmatpush3.bf16.msra.mxu1 %v6927_v44 }
0x2149   : > { %6638 = vmatprep.subr.bf16.mxu1 %v6928_v45 }
0x214c   : > { %v6632_v47 = vpop.f32.mrb[76].mxu0  ;;  %6639 = vmatpush3.bf16.msra.mxu1 %v6928_v45 }
0x214d   : > { %v4273_v48 = vpop.f32.mrb[77].mxu0  ;;  %6640 = vmatprep.subr.bf16.mxu1 %v6929_v46  ;;  %v4450_v34 = vpack.c.bf16 %v6632_v47, %v6632_v47  ;;  %v6938_v47 = vld [vmem:[%s8283_s15 + $0x30] sm:$0xff]  }
0x214e   : > { %v6633_v49 = vpop.f32.mrb[78].mxu0 }
0x214f   : > { %v4276_v50 = vpop.f32.mrb[79].mxu0 }
0x2150   : > { %v4449_v52 = vpack.c.bf16 %v4276_v50, %v4273_v48  ;;  %6641 = vmatpush3.bf16.msra.mxu1 %v6929_v46  ;;  %v6930_v46 = vld [vmem:[%s8280_s12 + $0xe0] sm:$0xff]  }
0x2153   : > { %6643 = vmatmul.mubr.msk.bf16.vlgmr.msra.gmra.mrb[80].mxu1 %vm767_vm0, %v7865_v61 }
0x2154   : > { %6662 = vmatprep.mubr.msk.bf16.mxu1 %vm1272_vm3, %v4449_v52 }
0x215c   : > { %v6656_v53 = vpop.f32.mrb[80].mxu0 }
0x215d   : > { %v4435_v54 = vpop.f32.mrb[81].mxu0  ;;  %v4549_v58 = vpack.c.bf16 %v6656_v53, %v6656_v53 }
0x215e   : > { %v6657_v55 = vpop.f32.mrb[82].mxu0 }
0x215f   : > { %v4438_v56 = vpop.f32.mrb[83].mxu0  ;;  %v4557_v60 = vsel %vm1377_vm4, %v4549_v58, 0 }
0x2160   : > { %v4548_v57 = vpack.c.bf16 %v4438_v56, %v4435_v54 }
0x2162   : > { %6666 = vmatprep.subr.bf16.mxu0 %v4548_v57 }
0x2163   : > { %6667 = vmatpush3.bf16.msra.mxu0 %v4548_v57 }
0x2164   : > { %6782 = vmatprep.subr.msk.bf16.mxu0 %vm1377_vm4, %v4549_v58 }
0x2167   : > { %6669 = vmatpush3.bf16.msra.mxu0 %v4557_v60 }
0x2168   : > { %6680 = vmatprep.subr.bf16.mxu0 %v6930_v46 }
0x2216   : > { %v6620_v0 = vpop.f32.mrb[76].mxu1 }
0x2217   : > { %v8046_v3 = vadd.f32 %v6620_v0, %v3736_v62  ;;  %v4189_v5 = vpop.f32.mrb[77].mxu1  ;;  %v6932_v62 = vld [vmem:[%s8280_s12 + $0xf0] sm:$0xff]   ;;  %v6934_v0 = vld [vmem:[%s8282_s14 + $0xe0] sm:$0xff]  }
0x2218   : > { %v8049_v10 = vadd.f32 %v4189_v5, %v3734_v63  ;;  %v6621_v13 = vpop.f32.mrb[78].mxu1  ;;  %v6933_v63 = vld [vmem:[%s8280_s12 + $0xf8] sm:$0xff]   ;;  %v6935_v5 = vld [vmem:[%s8282_s14 + $0xe8] sm:$0xff]  }
0x2219   : > { %v4192_v14 = vpop.f32.mrb[79].mxu1  ;;  %v6937_v13 = vld [vmem:[%s8282_s14 + $0xf8] sm:$0xff]  }
0x221a   : > { %v8051_v38 = vadd.f32 %v4192_v14, %v3735_v7  ;;  %v6936_v7 = vld [vmem:[%s8282_s14 + $0xf0] sm:$0xff]   ;;  %v6939_v14 = vld [vmem:[%s8281_s13 + $0xe0] sm:$0xff]  }
0x2226   : > { %v6644_v28 = vpop.f32.mrb[80].mxu1 }
0x2227   : > { %v4354_v39 = vpop.f32.mrb[81].mxu1  ;;  %v4452_v25 = vpack.c.bf16 %v6644_v28, %v6644_v28 }
0x2228   : > { %v6645_v42 = vpop.f32.mrb[82].mxu1 }
0x2229   : > { %v4357_v32 = vpop.f32.mrb[83].mxu1  ;;  %v4463_v29 = vsel %vm1272_vm3, %v4452_v25, 0 }
0x222a   : > { %v4451_v15 = vpack.c.bf16 %v4357_v32, %v4354_v39 }
0x222c   : > { %v4460_v26 = vsel %vm1272_vm3, %v4451_v15, 0  ;;  %6780 = vmatprep.subr.msk.bf16.mxu1 %vm1272_vm3, %v4451_v15 }
0x222d   : > { %6659 = vmatpush3.bf16.xpose.msra.mxu1 %v4460_v26  ;;  %v6940_v26 = vld [vmem:[%s8281_s13 + $0xe8] sm:$0xff]  }
0x222e   : > { %6781 = vmatprep.subr.msk.bf16.mxu1 %vm1272_vm3, %v4452_v25 }
0x2235   : > { %6661 = vmatpush3.bf16.xpose.msra.mxu1 %v4463_v29  ;;  %v6941_v29 = vld [vmem:[%s8281_s13 + $0xf0] sm:$0xff]  }
0x2236   : > { %6674 = vmatprep.subr.bf16.mxu1 %v6938_v47 }
0x223c   : > { %6663 = vmatmul.mubr.msk.bf16.vlgmr.msra.gmra.mrb[84].mxu1 %vm1272_vm3, %v4450_v34  ;;  %v6942_v34 = vld [vmem:[%s8281_s13 + $0xf8] sm:$0xff]  }
0x223d   : > { %6675 = vmatpush3.bf16.msra.mxu1 %v6938_v47 }
0x223e   : > { %6692 = vmatprep.subr.bf16.mxu1 %v6939_v14 }
0x230f   : > { %v6664_v16 = vpop.f32.mrb[84].mxu1 }
0x2310   : > { %v4499_v17 = vpop.f32.mrb[85].mxu1  ;;  %v4508_v20 = vadd.f32 %v6664_v16, %v7506_v40 }
0x2311   : > { %v4500_v2 = vadd.f32 %v4499_v17, %v7506_v40  ;;  %v6665_v18 = vpop.f32.mrb[86].mxu1 }
0x2312   : > { %v4502_v19 = vpop.f32.mrb[87].mxu1  ;;  %v4519_v24 = vsel %vm1333_vm6, %v4508_v20, -inf }
0x2313   : > { %v4503_v21 = vadd.f32 %v4502_v19, %v7506_v40  ;;  %v4513_v22 = vsel %vm1333_vm6, %v4500_v2, -inf }
0x2314   : > { %4514 = vmax.xlane.f32.xlu0 %v4513_v22 }
0x2315   : > { %v4516_v23 = vsel %vm1333_vm6, %v4503_v21, -inf }
0x2316   : > { %4517 = vmax.xlane.f32.xlu1 %v4516_v23 }
0x2318   : > { %4520 = vmax.xlane.f32.xlu0 %v4519_v24 }
0x23a1   : > { %v4515_v4 = vpop.xlane.xlu0 %4514 }
0x23a2   : > { %v4522_v27 = vsub.f32 %v4500_v2, %v4515_v4 }
0x23a3   : > { %v4518_v30 = vpop.xlane.xlu1 %4517 }
0x23a4   : > { %v4525_v31 = vmul.f32 1.442695, %v4522_v27  ;;  %v4523_v33 = vsub.f32 %v4503_v21, %v4518_v30 }
0x23a5   : > { %v4521_v35 = vpop.xlane.xlu0 %4520 }
0x23a6   : > { %7056 = vpow2.f32 %v4525_v31  ;;  %v4527_v36 = vmul.f32 1.442695, %v4523_v33  ;;  %v4524_v1 = vsub.f32 %v4508_v20, %v4521_v35 }
0x23a8   : > { %7058 = vpow2.f32 %v4527_v36  ;;  %v4529_v6 = vmul.f32 1.442695, %v4524_v1 }
0x23aa   : > { %7060 = vpow2.f32 %v4529_v6 }
0x23b0   : > { %v7057_v9 = vpop.eup %7056 }
0x23b1   : > { %v4531_v37 = vsel %vm1333_vm6, %v7057_v9, 0.0 }
0x23b2   : > { %v7059_v41 = vpop.eup %7058  ;;  %4532 = vadd.xlane.f32.xlu1 %v4531_v37 }
0x23b3   : > { %v4534_v43 = vsel %vm1333_vm6, %v7059_v41, 0.0 }
0x23b4   : > { %v7061_v44 = vpop.eup %7060  ;;  %4535 = vadd.xlane.f32.xlu0 %v4534_v43 }
0x23b5   : > { %v4537_v45 = vsel %vm1333_vm6, %v7061_v44, 0.0 }
0x23b6   : > { %4538 = vadd.xlane.f32.xlu1 %v4537_v45 }
0x243f   : > { %v4533_v48 = vpop.xlane.xlu1 %4532 }
0x2440   : > { %7062 = vrcp.f32 %v4533_v48 }
0x2441   : > { %v4536_v49 = vpop.xlane.xlu0 %4535 }
0x2442   : > { %7064 = vrcp.f32 %v4536_v49 }
0x2443   : > { %v4539_v50 = vpop.xlane.xlu1 %4538 }
0x2444   : > { %7066 = vrcp.f32 %v4539_v50 }
0x244a   : > { %v7063_v52 = vpop.eup %7062 }
0x244b   : > { %v4543_v54 = vmul.f32 %v7063_v52, %v7057_v9 }
0x244c   : > { %v7065_v53 = vpop.eup %7064 }
0x244d   : > { %v4544_v55 = vmul.f32 %v7065_v53, %v7059_v41 }
0x244e   : > { %v7067_v56 = vpop.eup %7066 }
0x244f   : > { %v4545_v57 = vmul.f32 %v7067_v56, %v7061_v44  ;;  %v4546_v58 = vpack.c.bf16 %v4544_v55, %v4543_v54 }
0x2451   : > { %6670 = vmatprep.mubr.msk.bf16.mxu0 %vm1333_vm6, %v4546_v58  ;;  %v4547_v60 = vpack.c.bf16 %v4545_v57, %v4545_v57 }
0x2453   : > { %6671 = vmatmul.mubr.msk.bf16.vlgmr.msra.gmra.mrb[84].mxu0 %vm1333_vm6, %v4547_v60 }
0x2454   : > { %6681 = vmatpush3.bf16.msra.mxu0 %v6930_v46  ;;  %6688 = vmatprep.mubr.msk.bf16.mxu0 %vm767_vm0, %v7863_v59 }
0x2455   : > { %6682 = vmatprep.subr.bf16.mxu0 %v6931_v51 }
0x2458   : > { %6683 = vmatpush3.bf16.msra.mxu0 %v6931_v51 }
0x2459   : > { %6684 = vmatprep.subr.bf16.mxu0 %v6932_v62 }
0x245c   : > { %6685 = vmatpush3.bf16.msra.mxu0 %v6932_v62 }
0x245d   : > { %6686 = vmatprep.subr.bf16.mxu0 %v6933_v63 }
0x2460   : > { %6687 = vmatpush3.bf16.msra.mxu0 %v6933_v63 }
0x2461   : > { %6704 = vmatprep.subr.bf16.mxu0 %v6934_v0 }
0x2463   : > { %6689 = vmatmul.mubr.msk.bf16.vlgmr.msra.gmra.mrb[88].mxu0 %vm767_vm0, %v7865_v61 }
0x2464   : > { %6705 = vmatpush3.bf16.msra.mxu0 %v6934_v0  ;;  %6712 = vmatprep.mubr.msk.bf16.mxu0 %vm767_vm0, %v7863_v59 }
0x2465   : > { %6706 = vmatprep.subr.bf16.mxu0 %v6935_v5 }
0x2468   : > { %6707 = vmatpush3.bf16.msra.mxu0 %v6935_v5 }
0x2469   : > { %6708 = vmatprep.subr.bf16.mxu0 %v6936_v7 }
0x246c   : > { %6709 = vmatpush3.bf16.msra.mxu0 %v6936_v7 }
0x246d   : > { %6710 = vmatprep.subr.bf16.mxu0 %v6937_v13 }
0x2470   : > { %6711 = vmatpush3.bf16.msra.mxu0 %v6937_v13 }
0x2473   : > { %6713 = vmatmul.mubr.msk.bf16.vlgmr.msra.gmra.mrb[92].mxu0 %vm767_vm0, %v7865_v61 }
0x2526   : > { %v6672_v28 = vpop.f32.mrb[84].mxu0 }
0x2527   : > { %v4593_v39 = vpop.f32.mrb[85].mxu0  ;;  %v4608_v25 = vpack.c.bf16 %v6672_v28, %v6672_v28 }
0x2528   : > { %v6673_v42 = vpop.f32.mrb[86].mxu0 }
0x2529   : > { %v4596_v32 = vpop.f32.mrb[87].mxu0 }
0x252a   : > { %v4607_v15 = vpack.c.bf16 %v4596_v32, %v4593_v39  ;;  %v6943_v39 = vld [vmem:[%s8283_s15 + $0x38] sm:$0xff]  }
0x252c   : > { %6676 = vmatprep.mubr.msk.bf16.mxu1 %vm1272_vm3, %v4607_v15 }
0x252d   : > { %6677 = vmatmul.mubr.msk.bf16.vlgmr.msra.gmra.mrb[88].mxu1 %vm1272_vm3, %v4608_v25 }
0x252e   : > { %6693 = vmatpush3.bf16.msra.mxu1 %v6939_v14  ;;  %6700 = vmatprep.mubr.msk.bf16.mxu1 %vm767_vm0, %v7863_v59 }
0x252f   : > { %6694 = vmatprep.subr.bf16.mxu1 %v6940_v26 }
0x2532   : > { %6695 = vmatpush3.bf16.msra.mxu1 %v6940_v26 }
0x2533   : > { %6696 = vmatprep.subr.bf16.mxu1 %v6941_v29 }
0x2536   : > { %v6690_v16 = vpop.f32.mrb[88].mxu0  ;;  %6697 = vmatpush3.bf16.msra.mxu1 %v6941_v29 }
0x2537   : > { %v4742_v17 = vpop.f32.mrb[89].mxu0  ;;  %6698 = vmatprep.subr.bf16.mxu1 %v6942_v34 }
0x2538   : > { %v6691_v2 = vpop.f32.mrb[90].mxu0 }
0x2539   : > { %v4745_v18 = vpop.f32.mrb[91].mxu0 }
0x253a   : > { %v4918_v19 = vpack.c.bf16 %v4745_v18, %v4742_v17  ;;  %6699 = vmatpush3.bf16.msra.mxu1 %v6942_v34 }
0x253d   : > { %6701 = vmatmul.mubr.msk.bf16.vlgmr.msra.gmra.mrb[92].mxu1 %vm767_vm0, %v7865_v61 }
0x253e   : > { %6720 = vmatprep.mubr.msk.bf16.mxu1 %vm1272_vm3, %v4918_v19 }
0x2546   : > { %v6714_v59 = vpop.f32.mrb[92].mxu0 }
0x2547   : > { %v4904_v20 = vpop.f32.mrb[93].mxu0  ;;  %v5018_v24 = vpack.c.bf16 %v6714_v59, %v6714_v59 }
0x2548   : > { %v6715_v21 = vpop.f32.mrb[94].mxu0 }
0x2549   : > { %v4907_v22 = vpop.f32.mrb[95].mxu0  ;;  %v5026_v4 = vsel %vm1377_vm4, %v5018_v24, 0 }
0x254a   : > { %v5017_v23 = vpack.c.bf16 %v4907_v22, %v4904_v20 }
0x254c   : > { %6724 = vmatprep.subr.bf16.mxu0 %v5017_v23 }
0x254d   : > { %6725 = vmatpush3.bf16.msra.mxu0 %v5017_v23 }
0x254e   : > { %6785 = vmatprep.subr.msk.bf16.mxu0 %vm1377_vm4, %v5018_v24 }
0x2551   : > { %6727 = vmatpush3.bf16.msra.mxu0 %v5026_v4 }
0x2600   : > { %v6678_v27 = vpop.f32.mrb[88].mxu1 }
0x2601   : > { %v8126_v30 = vadd.f32 %v6678_v27, %v8046_v3  ;;  %v4658_v61 = vpop.f32.mrb[89].mxu1 }
0x2602   : > { %v8129_v31 = vadd.f32 %v4658_v61, %v8049_v10  ;;  %v6679_v33 = vpop.f32.mrb[90].mxu1  ;;  %v4919_v10 = vpack.c.bf16 %v6690_v16, %v6690_v16 }
0x2603   : > { %v4661_v35 = vpop.f32.mrb[91].mxu1 }
0x2604   : > { %v8132_v36 = vadd.f32 %v4661_v35, %v8051_v38 }
0x2610   : > { %v6702_v1 = vpop.f32.mrb[92].mxu1 }
0x2611   : > { %v4823_v6 = vpop.f32.mrb[93].mxu1  ;;  %v4921_v43 = vpack.c.bf16 %v6702_v1, %v6702_v1 }
0x2612   : > { %v6703_v9 = vpop.f32.mrb[94].mxu1 }
0x2613   : > { %v4826_v37 = vpop.f32.mrb[95].mxu1  ;;  %v4932_v3 = vsel %vm1272_vm3, %v4921_v43, 0 }
0x2614   : > { %v4920_v41 = vpack.c.bf16 %v4826_v37, %v4823_v6 }
0x2616   : > { %v4929_v44 = vsel %vm1272_vm3, %v4920_v41, 0  ;;  %6783 = vmatprep.subr.msk.bf16.mxu1 %vm1272_vm3, %v4920_v41 }
0x2617   : > { %6717 = vmatpush3.bf16.xpose.msra.mxu1 %v4929_v44 }
0x2618   : > { %6784 = vmatprep.subr.msk.bf16.mxu1 %vm1272_vm3, %v4921_v43 }
0x261f   : > { %6719 = vmatpush3.bf16.xpose.msra.mxu1 %v4932_v3 }
0x2620   : > { %6732 = vmatprep.subr.bf16.mxu1 %v6943_v39 }
0x2626   : > { %6721 = vmatmul.mubr.msk.bf16.vlgmr.msra.gmra.mrb[96].mxu1 %vm1272_vm3, %v4919_v10 }
0x2627   : > { %6733 = vmatpush3.bf16.msra.mxu1 %v6943_v39 }
0x26f9   : > { %v6722_v38 = vpop.f32.mrb[96].mxu1 }
0x26fa   : > { %v4968_v45 = vpop.f32.mrb[97].mxu1  ;;  %v4977_v49 = vadd.f32 %v6722_v38, %v7506_v40 }
0x26fb   : > { %v4969_v46 = vadd.f32 %v4968_v45, %v7506_v40  ;;  %v6723_v47 = vpop.f32.mrb[98].mxu1 }
0x26fc   : > { %v4971_v48 = vpop.f32.mrb[99].mxu1  ;;  %v4988_v54 = vsel %vm1333_vm6, %v4977_v49, -inf }
0x26fd   : > { %v4972_v50 = vadd.f32 %v4971_v48, %v7506_v40  ;;  %v4982_v52 = vsel %vm1333_vm6, %v4969_v46, -inf }
0x26fe   : > { %4983 = vmax.xlane.f32.xlu0 %v4982_v52  ;;  %v6944_v52 = vld [vmem:[%s8287_s19 + $0x20] sm:$0xff]  }
0x26ff   : > { %v4985_v53 = vsel %vm1333_vm6, %v4972_v50, -inf  ;;  %6738 = vmatprep.subr.bf16.mxu0 %v6944_v52 }
0x2700   : > { %4986 = vmax.xlane.f32.xlu1 %v4985_v53  ;;  %v6945_v53 = vld [vmem:[%s8287_s19 + $0x28] sm:$0xff]  }
0x2702   : > { %4989 = vmax.xlane.f32.xlu0 %v4988_v54  ;;  %v6946_v54 = vld [vmem:[%s8287_s19 + $0x30] sm:$0xff]  }
0x278b   : > { %v4984_v55 = vpop.xlane.xlu0 %4983 }
0x278c   : > { %v4991_v56 = vsub.f32 %v4969_v46, %v4984_v55  ;;  %v6947_v55 = vld [vmem:[%s8287_s19 + $0x38] sm:$0xff]  }
0x278d   : > { %v4987_v57 = vpop.xlane.xlu1 %4986 }
0x278e   : > { %v4994_v58 = vmul.f32 1.442695, %v4991_v56  ;;  %v4992_v60 = vsub.f32 %v4972_v50, %v4987_v57 }
0x278f   : > { %v4990_v51 = vpop.xlane.xlu0 %4989 }
0x2790   : > { %7068 = vpow2.f32 %v4994_v58  ;;  %v4996_v62 = vmul.f32 1.442695, %v4992_v60  ;;  %v4993_v63 = vsub.f32 %v4977_v49, %v4990_v51 }
0x2792   : > { %7070 = vpow2.f32 %v4996_v62  ;;  %v4998_v40 = vmul.f32 1.442695, %v4993_v63 }
0x2794   : > { %7072 = vpow2.f32 %v4998_v40 }
0x279a   : > { %v7069_v0 = vpop.eup %7068 }
0x279b   : > { %v5000_v5 = vsel %vm1333_vm6, %v7069_v0, 0.0 }
0x279c   : > { %v7071_v7 = vpop.eup %7070  ;;  %5001 = vadd.xlane.f32.xlu1 %v5000_v5 }
0x279d   : > { %v5003_v13 = vsel %vm1333_vm6, %v7071_v7, 0.0 }
0x279e   : > { %v7073_v14 = vpop.eup %7072  ;;  %5004 = vadd.xlane.f32.xlu0 %v5003_v13 }
0x279f   : > { %v5006_v28 = vsel %vm1333_vm6, %v7073_v14, 0.0 }
0x27a0   : > { %5007 = vadd.xlane.f32.xlu1 %v5006_v28 }
0x2829   : > { %v5002_v42 = vpop.xlane.xlu1 %5001 }
0x282a   : > { %7074 = vrcp.f32 %v5002_v42 }
0x282b   : > { %v5005_v32 = vpop.xlane.xlu0 %5004 }
0x282c   : > { %7076 = vrcp.f32 %v5005_v32  ;;  %v5940_v32 = vld [vmem:[%s8286_s18 + $0x1] ss:$0 sm:$0xff] }
0x282d   : > { %v5008_v15 = vpop.xlane.xlu1 %5007 }
0x282e   : > { %7078 = vrcp.f32 %v5008_v15 }
0x2834   : > { %v7075_v25 = vpop.eup %7074 }
0x2835   : > { %v5012_v29 = vmul.f32 %v7075_v25, %v7069_v0 }
0x2836   : > { %v7077_v26 = vpop.eup %7076 }
0x2837   : > { %v5013_v34 = vmul.f32 %v7077_v26, %v7071_v7  ;;  %v5939_v7 = vld [vmem:[%s8285_s17 + $0x1] ss:$0 sm:$0xff] }
0x2838   : > { %v7079_v16 = vpop.eup %7078 }
0x2839   : > { %v5014_v17 = vmul.f32 %v7079_v16, %v7073_v14  ;;  %v5015_v2 = vpack.c.bf16 %v5013_v34, %v5012_v29 }
0x283b   : > { %6728 = vmatprep.mubr.msk.bf16.mxu0 %vm1333_vm6, %v5015_v2  ;;  %v5016_v18 = vpack.c.bf16 %v5014_v17, %v5014_v17 }
0x283d   : > { %6729 = vmatmul.mubr.msk.bf16.vlgmr.msra.gmra.mrb[96].mxu0 %vm1333_vm6, %v5016_v18  ;;  %v6948_v18 = vld [vmem:[%s8289_s21 + $0x20] sm:$0xff]  }
0x283e   : > { %6739 = vmatpush3.bf16.msra.mxu0 %v6944_v52  ;;  %6750 = vmatprep.subr.bf16.mxu1 %v6948_v18 }
0x283f   : > { %6740 = vmatprep.subr.bf16.mxu0 %v6945_v53 }
0x2842   : > { %6741 = vmatpush3.bf16.msra.mxu0 %v6945_v53 }
0x2843   : > { %6742 = vmatprep.subr.bf16.mxu0 %v6946_v54 }
0x2846   : > { %6743 = vmatpush3.bf16.msra.mxu0 %v6946_v54 }
0x2847   : > { %6744 = vmatprep.subr.bf16.mxu0 %v6947_v55 }
0x284a   : > { %6745 = vmatpush3.bf16.msra.mxu0 %v6947_v55 }
0x2910   : > { %v6730_v19 = vpop.f32.mrb[96].mxu0 }
0x2911   : > { %v5062_v59 = vpop.f32.mrb[97].mxu0  ;;  %v5077_v23 = vpack.c.bf16 %v6730_v19, %v6730_v19  ;;  %v6949_v19 = vld [vmem:[%s8289_s21 + $0x28] sm:$0xff]  }
0x2912   : > { %v6731_v20 = vpop.f32.mrb[98].mxu0 }
0x2913   : > { %v5065_v21 = vpop.f32.mrb[99].mxu0  ;;  %v6951_v20 = vld [vmem:[%s8289_s21 + $0x38] sm:$0xff]  }
0x2914   : > { %v5076_v22 = vpack.c.bf16 %v5065_v21, %v5062_v59  ;;  %v6950_v59 = vld [vmem:[%s8289_s21 + $0x30] sm:$0xff]   ;;  %v5950_v21 = vld [vmem:[%s8288_s20 + $0x1] ss:$0 sm:$0xff] }
0x2916   : > { %6734 = vmatprep.mubr.msk.bf16.mxu1 %vm1272_vm3, %v5076_v22 }
0x2917   : > { %6735 = vmatmul.mubr.msk.bf16.vlgmr.msra.gmra.mrb[100].mxu1 %vm1272_vm3, %v5077_v23 }
0x2918   : > { %6751 = vmatpush3.bf16.msra.mxu1 %v6948_v18 }
0x2919   : > { %6752 = vmatprep.subr.bf16.mxu1 %v6949_v19 }
0x291c   : > { %6753 = vmatpush3.bf16.msra.mxu1 %v6949_v19 }
0x291d   : > { %6754 = vmatprep.subr.bf16.mxu1 %v6950_v59 }
0x2920   : > { %6755 = vmatpush3.bf16.msra.mxu1 %v6950_v59 }
0x2921   : > { %6756 = vmatprep.subr.bf16.mxu1 %v6951_v20 }
0x2924   : > { %6757 = vmatpush3.bf16.msra.mxu1 %v6951_v20 }
0x29ea   : > { %v6736_v24 = vpop.f32.mrb[100].mxu1 }
0x29eb   : > { %v5143_v4 = vadd.f32 %v6736_v24, %v8126_v30  ;;  %v5127_v27 = vpop.f32.mrb[101].mxu1 }
0x29ec   : > { %v5141_v61 = vadd.f32 %v5127_v27, %v8129_v31  ;;  %v6737_v33 = vpop.f32.mrb[102].mxu1 }
0x29ed   : > { %v5130_v35 = vpop.f32.mrb[103].mxu1  ;;  %v8160_v9 = vadd.f32 %v5143_v4, %v7813_v11 }
0x29ee   : > { %v5142_v1 = vadd.f32 %v5130_v35, %v8132_v36  ;;  %v5144_v6 = vadd.f32 %v5141_v61, %v7810_v8 }
0x29ef   : > { %v5157_v30 = vsel %vm767_vm0, %v8160_v9, 0.0 }
0x29f0   : > { %v5151_v37 = vsel %vm767_vm0, %v5144_v6, 0.0  ;;  %v5145_v41 = vadd.f32 %v5142_v1, %v7816_v12 }
0x29f1   : > { %5152 = vadd.xlane.f32.xlu0 %v5151_v37 }
0x29f2   : > { %v5154_v43 = vsel %vm767_vm0, %v5145_v41, 0.0 }
0x29f3   : > { %5155 = vadd.xlane.f32.xlu1 %v5154_v43 }
0x29f5   : > { %5158 = vadd.xlane.f32.xlu0 %v5157_v30 }
0x2a7e   : > { %v5153_v31 = vpop.xlane.xlu0 %5152 }
0x2a7f   : > { %v5160_v44 = vmul.f32 0.015625, %v5153_v31 }
0x2a80   : > { %v5156_v36 = vpop.xlane.xlu1 %5155 }
0x2a81   : > { %v5163_v3 = vsub.f32 %v5144_v6, %v5160_v44  ;;  %v5161_v8 = vmul.f32 0.015625, %v5156_v36 }
0x2a82   : > { %v5159_v10 = vpop.xlane.xlu0 %5158 }
0x2a83   : > { %v5164_v11 = vsub.f32 %v5145_v41, %v5161_v8  ;;  %v5162_v38 = vmul.f32 0.015625, %v5159_v10  ;;  %v5166_v45 = vmul.f32 %v5163_v3, %v5163_v3 }
0x2a85   : > { %v5165_v46 = vsub.f32 %v8160_v9, %v5162_v38  ;;  %v5169_v12 = vsel %vm767_vm0, %v5166_v45, 0.0  ;;  %v5167_v47 = vmul.f32 %v5164_v11, %v5164_v11 }
0x2a86   : > { %5170 = vadd.xlane.f32.xlu1 %v5169_v12 }
0x2a87   : > { %v5172_v48 = vsel %vm767_vm0, %v5167_v47, 0.0  ;;  %v5168_v49 = vmul.f32 %v5165_v46, %v5165_v46 }
0x2a88   : > { %5173 = vadd.xlane.f32.xlu0 %v5172_v48 }
0x2a89   : > { %v5175_v50 = vsel %vm767_vm0, %v5168_v49, 0.0 }
0x2a8a   : > { %5176 = vadd.xlane.f32.xlu1 %v5175_v50 }
0x2b13   : > { %v5171_v56 = vpop.xlane.xlu1 %5170 }
0x2b14   : > { %v5178_v57 = vmul.f32 0.015625, %v5171_v56 }
0x2b15   : > { %v5174_v58 = vpop.xlane.xlu0 %5173 }
0x2b16   : > { %v5181_v60 = vadd.f32 1e-05, %v5178_v57  ;;  %v5179_v51 = vmul.f32 0.015625, %v5174_v58 }
0x2b17   : > { %v5177_v62 = vpop.xlane.xlu1 %5176 }
0x2b18   : > { %7080 = vrsqrt.f32 %v5181_v60  ;;  %v5182_v63 = vadd.f32 1e-05, %v5179_v51  ;;  %v5180_v40 = vmul.f32 0.015625, %v5177_v62  ;;  %v5966_v60 = vld [vmem:[%s8290_s22 + $0x1] ss:$0 sm:$0xff] }
0x2b1a   : > { %7082 = vrsqrt.f32 %v5182_v63  ;;  %v5183_v0 = vadd.f32 1e-05, %v5180_v40 }
0x2b1c   : > { %7084 = vrsqrt.f32 %v5183_v0 }
0x2b22   : > { %v7081_v5 = vpop.eup %7080 }
0x2b23   : > { %v5187_v13 = vmul.f32 %v7081_v5, %v5163_v3 }
0x2b24   : > { %v7083_v14 = vpop.eup %7082 }
0x2b25   : > { %v5188_v28 = vmul.f32 %v7083_v14, %v5164_v11  ;;  %v5196_v39 = vmul.f32 %v5939_v7, %v5187_v13 }
0x2b26   : > { %v7085_v42 = vpop.eup %7084 }
0x2b27   : > { %v5189_v15 = vmul.f32 %v7085_v42, %v5165_v46  ;;  %v5197_v25 = vmul.f32 %v5939_v7, %v5188_v28  ;;  %v5205_v26 = vadd.f32 %v5940_v32, %v5196_v39 }
0x2b29   : > { %v5206_v29 = vadd.f32 %v5940_v32, %v5197_v25  ;;  %v5198_v34 = vmul.f32 %v5939_v7, %v5189_v15 }
0x2b2b   : > { %v5217_v16 = vpack.c.bf16 %v5206_v29, %v5205_v26  ;;  %v5207_v17 = vadd.f32 %v5940_v32, %v5198_v34  ;;  %v5429_v34 = vld [vmem:[%s8292_s24] sm:$0x1] }
0x2b2d   : > { %6746 = vmatprep.mubr.msk.bf16.mxu0 %vm767_vm0, %v5217_v16  ;;  %v5218_v2 = vpack.c.bf16 %v5207_v17, %v5207_v17 }
0x2b2f   : > { %6747 = vmatmul.mubr.msk.bf16.vlgmr.msra.gmra.mrb[100].mxu0 %vm767_vm0, %v5218_v2 }
0x2c02   : > { %v6748_v22 = vpop.f32.mrb[100].mxu0 }
0x2c03   : > { %v5300_v23 = vadd.f32 %v6748_v22, %v5950_v21  ;;  %v5291_v24 = vpop.f32.mrb[101].mxu0 }
0x2c04   : > { %v5292_v4 = vadd.f32 %v5950_v21, %v5291_v24  ;;  %v6749_v27 = vpop.f32.mrb[102].mxu0 }
0x2c05   : > { %v5307_v61 = vmul.f32 %v5300_v23, %v5300_v23  ;;  %v5294_v33 = vpop.f32.mrb[103].mxu0 }
0x2c06   : > { %v5305_v35 = vmul.f32 %v5292_v4, %v5292_v4  ;;  %v5295_v1 = vadd.f32 %v5950_v21, %v5294_v33 }
0x2c07   : > { %v5310_v6 = vmul.f32 %v5307_v61, %v5300_v23 }
0x2c08   : > { %v5308_v37 = vmul.f32 %v5305_v35, %v5292_v4  ;;  %v5306_v41 = vmul.f32 %v5295_v1, %v5295_v1 }
0x2c09   : > { %v5313_v43 = vmul.f32 0.044715, %v5310_v6 }
0x2c0a   : > { %v5311_v30 = vmul.f32 0.044715, %v5308_v37  ;;  %v5309_v31 = vmul.f32 %v5306_v41, %v5295_v1 }
0x2c0b   : > { %v5316_v44 = vadd.f32 %v5313_v43, %v5300_v23 }
0x2c0c   : > { %v5314_v36 = vadd.f32 %v5311_v30, %v5292_v4  ;;  %v5312_v3 = vmul.f32 0.044715, %v5309_v31 }
0x2c0d   : > { %v5319_v8 = vmul.f32 0.7978846, %v5316_v44 }
0x2c0e   : > { %v5317_v10 = vmul.f32 0.7978846, %v5314_v36  ;;  %v5315_v11 = vadd.f32 %v5312_v3, %v5295_v1 }
0x2c0f   : > { %7086 = vtanh.f32 %v5319_v8 }
0x2c10   : > { %7088 = vtanh.f32 %v5317_v10  ;;  %v5318_v38 = vmul.f32 0.7978846, %v5315_v11 }
0x2c12   : > { %7090 = vtanh.f32 %v5318_v38 }
0x2c19   : > { %v7087_v45 = vpop.eup %7086 }
0x2c1a   : > { %v7089_v46 = vpop.eup %7088  ;;  %v5325_v12 = vadd.f32 1.0, %v7087_v45 }
0x2c1b   : > { %v5323_v47 = vadd.f32 1.0, %v7089_v46 }
0x2c1c   : > { %v7091_v48 = vpop.eup %7090  ;;  %v5328_v49 = vmul.f32 0.5, %v5325_v12 }
0x2c1d   : > { %v5326_v50 = vmul.f32 0.5, %v5323_v47  ;;  %v5324_v52 = vadd.f32 1.0, %v7091_v48 }
0x2c1e   : > { %v5331_v54 = vmul.f32 %v5328_v49, %v5300_v23 }
0x2c1f   : > { %v5327_v53 = vmul.f32 0.5, %v5324_v52  ;;  %v5329_v55 = vmul.f32 %v5326_v50, %v5292_v4 }
0x2c20   : > { %v5342_v58 = vpack.c.bf16 %v5331_v54, %v5331_v54 }
0x2c21   : > { %v5330_v56 = vmul.f32 %v5327_v53, %v5295_v1 }
0x2c23   : > { %v5341_v57 = vpack.c.bf16 %v5330_v56, %v5329_v55 }
0x2c25   : > { %6758 = vmatprep.mubr.msk.bf16.mxu1 %vm767_vm0, %v5341_v57 }
0x2c26   : > { %6759 = vmatmul.mubr.msk.bf16.vlgmr.msra.gmra.mrb[104].mxu1 %vm767_vm0, %v5342_v58 }
0x2cf9   : > { %v6760_v51 = vpop.f32.mrb[104].mxu1 }
0x2cfa   : > { %v5422_v62 = vadd.f32 %v6760_v51, %v5966_v60  ;;  %v5415_v63 = vpop.f32.mrb[105].mxu1 }
0x2cfb   : > { %v6761_v40 = vpop.f32.mrb[106].mxu1 }
0x2cfc   : > { %v5417_v0 = vpop.f32.mrb[107].mxu1  ;;  %v5427_v5 = vadd.f32 %v5422_v62, %v8160_v9  ;;  %v5428_v9 = vld [vmem:[%s8291_s23] sm:$0x1] }
0x2cfe   : > { %v5430_v7 = vsel %vm951_vm1, %v5427_v5, 0.0 }
0x2cff   : > { %5431 = vadd.xlane.f32.xlu0 %v5430_v7 }
0x2d8c   : > { %v5432_v13 = vpop.xlane.xlu0 %5431 }
0x2d8d   : > { %v5433_v14 = vmul.f32 0.015625, %v5432_v13 }
0x2d8f   : > { %v5434_v28 = vsub.f32 %v5427_v5, %v5433_v14 }
0x2d91   : > { %v5435_v39 = vmul.f32 %v5434_v28, %v5434_v28 }
0x2d93   : > { %v5436_v42 = vsel %vm951_vm1, %v5435_v39, 0.0 }
0x2d94   : > { %5437 = vadd.xlane.f32.xlu1 %v5436_v42 }
0x2e21   : > { %v5438_v32 = vpop.xlane.xlu1 %5437 }
0x2e22   : > { %v5439_v15 = vmul.f32 0.015625, %v5438_v32 }
0x2e24   : > { %v5440_v25 = vadd.f32 1e-05, %v5439_v15 }
0x2e26   : > { %7092 = vrsqrt.f32 %v5440_v25 }
0x2e30   : > { %v7093_v26 = vpop.eup %7092 }
0x2e31   : > { %v5442_v29 = vmul.f32 %v7093_v26, %v5434_v28 }
0x2e33   : > { %v5443_v16 = vmul.f32 %v5442_v29, %v5428_v9 }
0x2e35   : > { %v5444_v17 = vadd.f32 %v5443_v16, %v5429_v34 }
0x2e37   : > { %5445 = vst.msk [vmem:[%s756_s30] sm:$0x1] %vm951_vm1, %v5444_v17 }
0x2e38   : > { %7110 = shalt.err (!%p7107_p3)
}
0x2e39   : > { %s7111_s8 = scalar_lea.hbm %s8225_s0, 16  ;;  %s7115_s27 = scalar_lea.hbm %s8293_s25, 32 }
0x2e3a   : > { %p7112_p4 = scmp.ne.s32.totalorder %s8225_s0, %s7111_s8  ;;  %p7116_p9 = scmp.lt.u32.totalorder %s8225_s0, %s8293_s25 }
0x2e3b   : > { %p7117_p10 = scmp.lt.u32.totalorder %s7115_s27, %s7111_s8  ;;  %p7119_p12 = scmp.lt.u32.totalorder %s7111_s8, %s8225_s0 }
0x2e3c   : > { %p7113_p7 = pnand %p7112_p4, %p7333_p5 }
0x2e3d   : > { %p7118_p11 = por %p7117_p10, %p7116_p9 }
0x2e3e   : > { %p7114_p8 = pneg %p7113_p7 }
0x2e3f   : > { %p7120_p13 = por %p7119_p12, %p7118_p11 }
0x2e41   : > { %p7121_p0 = pnand %p7120_p13, %p7114_p8 }
0x2e43   : > { %7124 = shalt.err (!%p7121_p0)
}
0x2e44   : > { %6786 = dma.vmem_to_hbm [thread:$0]  (%p7333_p5), %s8227_s26, 16, %s8225_s0, %s5447_s9  }
0x2e45 PF: > { %s8331_s5 = sld [smem:[#allocation8_spill]]  ;;  %s8332_s3 = sld [smem:[#allocation6_spill]] }
0x2e4b   : > { %p6792_p1 = scmp.ge.s32.totalorder %s8331_s5, 2  ;;  %s5471_s6 = sand.u32 1, %s8332_s3  }
0x2e4c   : > { %s5472_s30 = scalar_lea.sflag [#allocation4], %s5471_s6 }
0x2e4d   : > { %p6789_p2 = pnand %p6792_p1, %p7337_p6 }
0x2e4f   : > { %7142 = dma.done.wait (!%p6789_p2), %s5472_s30, 16  }
0x2e50   : > { %7144 = vsyncadd (!%p6789_p2), %s5472_s30, 4294967280  ;;  %s8334_s30 = sld [smem:[#allocation9_spill]]  ;;  %s8335_s8 = sld [smem:[#allocation7_spill]] }
0x2e51   : > { %s8336_s6 = sld [smem:[#allocation10_spill]]  ;;  %s8337_s29 = smov %s7151_s2 }
0x2e56   : > { %p35_p3 = scmp.ge.s32.totalorder %s8334_s30, 4   ;;  %s8338_s2 = smov %s8335_s8 }
0x2e58   :  { %37 = sbr.rel (!%p35_p3) target bundleno = 14 (0xe), region = 192 }
0x2e5f   :  { %5476 = vsyncpa [#allocation4], 1 }
0x2e60   :  { %5478 = vsyncpa [#allocation4 + $0x1], 1 }

</bundles_post_ra>
